<compile_context>
chip_gen: v5e
topology: v5e:2x2
jax: 0.10.0
libtpu: 0.0.40
codegen_flags: <defaults>
</compile_context>

<pallas_src>
import jax
import jax.numpy as jnp
from jax.experimental import pallas as pl
from jax.experimental.pallas import tpu as pltpu


# ---------------------------------------------------------------------------
# In-kernel helpers
# ---------------------------------------------------------------------------
def _matmul_bias_relu_pool(patches, w_ref, bias_ref):
    """im2col-patches matmul -> (+bias) -> ReLU -> 2x2 maxpool.

    patches:  (nb, H, W, K) bf16 value (K = 9*Cin, scale already folded into w)
    w_ref:    (K, Cout)     bf16 ref
    bias_ref: (1, Cout)     f32 ref
    returns:  (nb, H//2, W//2, Cout) f32 value
    """
    nb, H, W, K = patches.shape
    cout = w_ref.shape[-1]

    acc = jnp.dot(patches.reshape(nb * H * W, K), w_ref[...],
                  preferred_element_type=jnp.float32)
    y = jnp.maximum(acc + bias_ref[...], 0.0)           # folded BN + ReLU (f32)

    # 2x2 max pool, stride 2 (known-good reshape+max lowering).
    y = y.reshape(nb, H, W, cout)
    y = y.reshape(nb, H // 2, 2, W, cout).max(axis=2)
    y = y.reshape(nb, H // 2, W // 2, 2, cout).max(axis=3)
    return y


def _store_into_pad(pad_ref, y):
    """Zero only the 1-pixel border of pad_ref and write y into its interior.

    pad_ref: (nb, H+2, W+2, C) bf16 VMEM scratch
    y:       (nb, H, W, C)     f32 value
    """
    nb, Hp, Wp, C = pad_ref.shape
    zrow = jnp.zeros((nb, 1, Wp, C), pad_ref.dtype)
    zcol = jnp.zeros((nb, Hp, 1, C), pad_ref.dtype)
    pad_ref[:, 0:1, :, :] = zrow
    pad_ref[:, Hp - 1:Hp, :, :] = zrow
    pad_ref[:, :, 0:1, :] = zcol
    pad_ref[:, :, Wp - 1:Wp, :] = zcol
    # Interior is fully rewritten every grid step (keeps the border-only
    # zeroing correct on every core).
    pad_ref[:, 1:Hp - 1, 1:Wp - 1, :] = y.astype(pad_ref.dtype)


def _patches_from_pad(pad_ref):
    """Register-level im2col: concat the 9 shifted taps on the lane axis."""
    nb, Hp, Wp, cin = pad_ref.shape
    H, W = Hp - 2, Wp - 2
    taps = [pad_ref[:, dy:dy + H, dx:dx + W, :]          # bf16 loads
            for dy in range(3) for dx in range(3)]
    return jnp.concatenate(taps, axis=-1)                # (nb, H, W, 9*cin) bf16


# ---------------------------------------------------------------------------
# Fused 4-block kernel
# ---------------------------------------------------------------------------
def convnet_kernel(xp_ref,
                   w1, b1, w2, b2, w3, b3, w4, b4,
                   o_ref,
                   pad2, pad3, pad4):
    """xp_ref: (nb, H, W, 9*C0) bf16, layer-1 patches pre-built in the wrapper."""
    nb = xp_ref.shape[0]

    # Block 1: patches come straight from the input DMA.
    y = _matmul_bias_relu_pool(xp_ref[...], w1, b1)
    _store_into_pad(pad2, y)

    # Block 2.
    y = _matmul_bias_relu_pool(_patches_from_pad(pad2), w2, b2)
    _store_into_pad(pad3, y)

    # Block 3.
    y = _matmul_bias_relu_pool(_patches_from_pad(pad3), w3, b3)
    _store_into_pad(pad4, y)

    # Block 4: store flattened (lane-dense-as-possible) output.
    y = _matmul_bias_relu_pool(_patches_from_pad(pad4), w4, b4)
    o_ref[...] = y.reshape(nb, 1, -1).astype(o_ref.dtype)


# ---------------------------------------------------------------------------
# Wrapper
# ---------------------------------------------------------------------------
def _choose_nb(N, H, W, c0, hid, z_dim, budget_bytes=20 * 1024 * 1024):
    """Pick a batch tile that fits a conservative per-core VMEM budget."""
    per_img = 2 * H * W * 9 * c0 * 2                      # bf16 input patches (x2 bufs)
    for d in (2, 4, 8):
        per_img += (H // d + 2) * (W // d + 2) * hid * 2  # bf16 pad scratch
    per_img += max(H * W * 9 * c0, (H // 2) * (W // 2) * 9 * hid) * 2  # live patches
    per_img += H * W * hid * 4                            # f32 matmul accumulator
    per_img += 2 * (H // 16) * (W // 16) * z_dim * 4      # f32 output (x2 bufs)

    cap = max(1, budget_bytes // max(per_img, 1))
    cap = min(cap, 32, N)
    if N >= 2:
        cap = min(cap, max(1, N // 2))   # keep grid length >= 2 for v7x megacore
    nb = 1
    for cand in range(cap, 0, -1):
        if N % cand == 0:
            nb = cand
            break
    return nb


def _convnet_forward_impl(x_nchw, params):
    """x_nchw: (N, C, H, W) as in PyTorch. Returns NCHW output (N, z, H/16, W/16)."""
    N, C0, H, W = x_nchw.shape
    assert H % 16 == 0 and W % 16 == 0, "spatial dims must be divisible by 16"
    hid = params[0][0].shape[-1]
    z_dim = params[3][0].shape[-1]

    # NCHW -> NHWC, then layer-1 im2col in the wrapper (tiny; becomes a DMA the
    # pipeline hides instead of masked 3-lane stores inside the kernel).
    x = jnp.transpose(x_nchw, (0, 2, 3, 1))
    xp = jnp.pad(x, ((0, 0), (1, 1), (1, 1), (0, 0)))
    xp = jnp.concatenate(
        [xp[:, dy:dy + H, dx:dx + W, :] for dy in range(3) for dx in range(3)],
        axis=-1).astype(jnp.bfloat16)                     # (N, H, W, 9*C0)

    nb = _choose_nb(N, H, W, C0, hid, z_dim)
    grid = (N // nb,)
    Hf, Wf = H // 16, W // 16
    out_lanes = Hf * Wf * z_dim
    c_in = [C0, hid, hid, hid]

    flat_inputs = [xp]
    in_specs = [pl.BlockSpec((nb, H, W, 9 * C0), lambda i: (i, 0, 0, 0))]
    for (w, scale, bias), cin in zip(params, c_in):
        cout = w.shape[-1]
        # Fold BN scale into the weight columns (exact), cast to bf16 for MXU.
        w2d = (w.reshape(9 * cin, cout) * scale[None, :]).astype(jnp.bfloat16)
        flat_inputs += [w2d, bias.reshape(1, cout).astype(jnp.float32)]
        in_specs += [
            pl.BlockSpec((9 * cin, cout), lambda i: (0, 0)),
            pl.BlockSpec((1, cout), lambda i: (0, 0)),
        ]

    # bf16 padded-activation scratch for blocks 2-4 (persist across grid steps).
    scratch_shapes = [
        pltpu.VMEM((nb, H // 2 + 2, W // 2 + 2, hid), jnp.bfloat16),
        pltpu.VMEM((nb, H // 4 + 2, W // 4 + 2, hid), jnp.bfloat16),
        pltpu.VMEM((nb, H // 8 + 2, W // 8 + 2, hid), jnp.bfloat16),
    ]

    out = pl.pallas_call(
        convnet_kernel,
        out_shape=jax.ShapeDtypeStruct((N, 1, out_lanes), jnp.float32),
        grid_spec=pltpu.PrefetchScalarGridSpec(
            num_scalar_prefetch=0,
            grid=grid,
            in_specs=in_specs,
            out_specs=pl.BlockSpec((nb, 1, out_lanes), lambda i: (i, 0, 0)),
            scratch_shapes=scratch_shapes,
        ),
        compiler_params=pltpu.CompilerParams(
            dimension_semantics=("parallel",),
            vmem_limit_bytes=48 * 1024 * 1024,   # safe under v7x's 64 MiB/TC
        ),
    )(*flat_inputs)

    out = out.reshape(N, Hf, Wf, z_dim)          # undo lane flattening
    return jnp.transpose(out, (0, 3, 1, 2))      # NHWC -> NCHW


convnet_forward = jax.jit(_convnet_forward_impl)


# ---------------------------------------------------------------------------
# Pure-JAX reference (f32) for parity checking
# ---------------------------------------------------------------------------
def _reference_forward(x_nchw, params):
    y = x_nchw
    for (w, scale, bias) in params:
        y = jax.lax.conv_general_dilated(
            y, w, window_strides=(1, 1), padding="SAME",
            dimension_numbers=("NCHW", "HWIO", "NCHW"))
        y = y * scale[None, :, None, None] + bias[None, :, None, None]
        y = jnp.maximum(y, 0.0)
        y = jax.lax.reduce_window(y, -jnp.inf, jax.lax.max,
                                  (1, 1, 2, 2), (1, 1, 2, 2), "VALID")
    return y


# ---------------------------------------------------------------------------
# Parameter init (eval-mode BN folded into (scale, bias))
# ---------------------------------------------------------------------------
def init_convnet_params(key, x_dim, hid_dim, z_dim):
    dims = [(x_dim, hid_dim), (hid_dim, hid_dim),
            (hid_dim, hid_dim), (hid_dim, z_dim)]
    params = []
    eps = 1e-5
    for (cin, cout) in dims:
        key, kw, kb, kg, kbeta, km, kv = jax.random.split(key, 7)
        fan_in = cin * 9
        w = jax.random.normal(kw, (3, 3, cin, cout), jnp.float32) * (2.0 / fan_in) ** 0.5
        conv_b = jax.random.normal(kb, (cout,), jnp.float32) * 0.01
        gamma = 1.0 + 0.1 * jax.random.normal(kg, (cout,), jnp.float32)
        beta = 0.1 * jax.random.normal(kbeta, (cout,), jnp.float32)
        running_mean = 0.05 * jax.random.normal(km, (cout,), jnp.float32)
        running_var = 1.0 + 0.1 * jax.random.uniform(kv, (cout,), jnp.float32)
        scale = gamma / jnp.sqrt(running_var + eps)
        bias = scale * (conv_b - running_mean) + beta
        params.append((w, scale, bias))
    return params


if __name__ == "__main__":
    # Small shapes consistent with the module defaults: batch=2, x_dim=3,
    # hid=z=64, spatial 16 (halves 4 times -> 1x1 output).
    N, X_DIM, HID, Z_DIM, S = 2, 3, 64, 64, 16

    key = jax.random.PRNGKey(0)
    key, kx = jax.random.split(key)
    x = jax.random.normal(kx, (N, X_DIM, S, S), jnp.float32)

    params = init_convnet_params(key, X_DIM, HID, Z_DIM)

    out = convnet_forward(x, params)
    out = jax.block_until_ready(out)

    assert out.shape == (N, Z_DIM, S // 16, S // 16), out.shape
    assert bool(jnp.all(jnp.isfinite(out)))

    # Parity vs. f32 reference (kernel uses bf16 weights/activation storage).
    ref = _reference_forward(x, params)
    assert bool(jnp.max(jnp.abs(out - ref)) < 0.25), float(jnp.max(jnp.abs(out - ref)))

    print("KERNEL_OK")
</pallas_src>

<mosaic_0001>
module attributes {stable_mosaic.version = 11 : i64} {
  func.func @convnet_kernel(%arg0: i32, %arg1: memref<1x16x16x27xbf16, #tpu.memory_space<vmem>>, %arg2: memref<27x64xbf16, #tpu.memory_space<vmem>>, %arg3: memref<1x64xf32, #tpu.memory_space<vmem>>, %arg4: memref<576x64xbf16, #tpu.memory_space<vmem>>, %arg5: memref<1x64xf32, #tpu.memory_space<vmem>>, %arg6: memref<576x64xbf16, #tpu.memory_space<vmem>>, %arg7: memref<1x64xf32, #tpu.memory_space<vmem>>, %arg8: memref<576x64xbf16, #tpu.memory_space<vmem>>, %arg9: memref<1x64xf32, #tpu.memory_space<vmem>>, %arg10: memref<1x1x64xf32, #tpu.memory_space<vmem>>, %arg11: memref<1x10x10x64xbf16, #tpu.memory_space<vmem>>, %arg12: memref<1x6x6x64xbf16, #tpu.memory_space<vmem>>, %arg13: memref<1x4x4x64xbf16, #tpu.memory_space<vmem>>) attributes {dimension_semantics = [#tpu.dimension_semantics<parallel>], iteration_bounds = array<i64: 2>, scalar_prefetch = 0 : i64, scratch_operands = 3 : i64, tpu.core_type = #tpu.core_type<tc>, window_params = [{transform_indices = @transform_0, window_bounds = array<i64: 1, 16, 16, 27>}, {pipeline_mode = #tpu.pipeline_mode<synchronous>, transform_indices = @transform_1, window_bounds = array<i64: 27, 64>}, {pipeline_mode = #tpu.pipeline_mode<synchronous>, transform_indices = @transform_2, window_bounds = array<i64: 1, 64>}, {pipeline_mode = #tpu.pipeline_mode<synchronous>, transform_indices = @transform_3, window_bounds = array<i64: 576, 64>}, {pipeline_mode = #tpu.pipeline_mode<synchronous>, transform_indices = @transform_4, window_bounds = array<i64: 1, 64>}, {pipeline_mode = #tpu.pipeline_mode<synchronous>, transform_indices = @transform_5, window_bounds = array<i64: 576, 64>}, {pipeline_mode = #tpu.pipeline_mode<synchronous>, transform_indices = @transform_6, window_bounds = array<i64: 1, 64>}, {pipeline_mode = #tpu.pipeline_mode<synchronous>, transform_indices = @transform_7, window_bounds = array<i64: 576, 64>}, {pipeline_mode = #tpu.pipeline_mode<synchronous>, transform_indices = @transform_8, window_bounds = array<i64: 1, 64>}, {transform_indices = @transform_9, window_bounds = array<i64: 1, 1, 64>}]} {
    %c0 = arith.constant 0 : index
    %c0_0 = arith.constant 0 : index
    %c0_1 = arith.constant 0 : index
    %c0_2 = arith.constant 0 : index
    %0 = vector.load %arg1[%c0, %c0_0, %c0_1, %c0_2] : memref<1x16x16x27xbf16, #tpu.memory_space<vmem>>, vector<1x16x16x27xbf16>
    %1 = vector.shape_cast %0 : vector<1x16x16x27xbf16> to vector<256x27xbf16>
    %c0_3 = arith.constant 0 : index
    %c0_4 = arith.constant 0 : index
    %2 = vector.load %arg2[%c0_3, %c0_4] : memref<27x64xbf16, #tpu.memory_space<vmem>>, vector<27x64xbf16>
    %cst = arith.constant dense<0.000000e+00> : vector<256x64xf32>
    %3 = tpu.matmul %1, %2, %cst {dimension_numbers = #tpu.dot_dimension_numbers<[1], [0], [0], [1], [0, 0, 1, 1], [], []>} : vector<256x27xbf16>, vector<27x64xbf16>, vector<256x64xf32> -> vector<256x64xf32>
    %c0_5 = arith.constant 0 : index
    %c0_6 = arith.constant 0 : index
    %4 = vector.load %arg3[%c0_5, %c0_6] : memref<1x64xf32, #tpu.memory_space<vmem>>, vector<1x64xf32>
    %5 = vector.broadcast %4 : vector<1x64xf32> to vector<256x64xf32>
    %6 = arith.addf %3, %5 : vector<256x64xf32>
    %cst_7 = arith.constant 0.000000e+00 : f32
    %7 = vector.broadcast %cst_7 : f32 to vector<256x64xf32>
    %8 = arith.maximumf %6, %7 : vector<256x64xf32>
    %9 = vector.shape_cast %8 : vector<256x64xf32> to vector<1x16x16x64xf32>
    %10 = vector.shape_cast %9 : vector<1x16x16x64xf32> to vector<1x8x2x16x64xf32>
    %cst_8 = arith.constant dense<0xFF800000> : vector<1x8x16x64xf32>
    %11 = vector.multi_reduction <maximumf>, %10, %cst_8 [2] : vector<1x8x2x16x64xf32> to vector<1x8x16x64xf32>
    %12 = vector.shape_cast %11 : vector<1x8x16x64xf32> to vector<1x8x8x2x64xf32>
    %cst_9 = arith.constant dense<0xFF800000> : vector<1x8x8x64xf32>
    %13 = vector.multi_reduction <maximumf>, %12, %cst_9 [3] : vector<1x8x8x2x64xf32> to vector<1x8x8x64xf32>
    %cst_10 = arith.constant 0.000000e+00 : bf16
    %14 = vector.broadcast %cst_10 : bf16 to vector<1x1x10x64xbf16>
    %cst_11 = arith.constant 0.000000e+00 : bf16
    %15 = vector.broadcast %cst_11 : bf16 to vector<1x10x1x64xbf16>
    %c0_12 = arith.constant 0 : index
    %c0_13 = arith.constant 0 : index
    %c0_14 = arith.constant 0 : index
    %c0_15 = arith.constant 0 : index
    %16 = vector.load %arg11[%c0_12, %c0_13, %c0_14, %c0_15] : memref<1x10x10x64xbf16, #tpu.memory_space<vmem>>, vector<1x1x10x64xbf16>
    tpu.vector_store %arg11[%c0_12, %c0_13, %c0_14, %c0_15], %14 {strides = array<i32>} : memref<1x10x10x64xbf16, #tpu.memory_space<vmem>>, vector<1x1x10x64xbf16>,
    %c0_16 = arith.constant 0 : index
    %c9 = arith.constant 9 : index
    %c0_17 = arith.constant 0 : index
    %c0_18 = arith.constant 0 : index
    %17 = vector.load %arg11[%c0_16, %c9, %c0_17, %c0_18] : memref<1x10x10x64xbf16, #tpu.memory_space<vmem>>, vector<1x1x10x64xbf16>
    tpu.vector_store %arg11[%c0_16, %c9, %c0_17, %c0_18], %14 {strides = array<i32>} : memref<1x10x10x64xbf16, #tpu.memory_space<vmem>>, vector<1x1x10x64xbf16>,
    %c0_19 = arith.constant 0 : index
    %c0_20 = arith.constant 0 : index
    %c0_21 = arith.constant 0 : index
    %c0_22 = arith.constant 0 : index
    %18 = vector.load %arg11[%c0_19, %c0_20, %c0_21, %c0_22] : memref<1x10x10x64xbf16, #tpu.memory_space<vmem>>, vector<1x10x1x64xbf16>
    tpu.vector_store %arg11[%c0_19, %c0_20, %c0_21, %c0_22], %15 {strides = array<i32>} : memref<1x10x10x64xbf16, #tpu.memory_space<vmem>>, vector<1x10x1x64xbf16>,
    %c0_23 = arith.constant 0 : index
    %c0_24 = arith.constant 0 : index
    %c9_25 = arith.constant 9 : index
    %c0_26 = arith.constant 0 : index
    %19 = vector.load %arg11[%c0_23, %c0_24, %c9_25, %c0_26] : memref<1x10x10x64xbf16, #tpu.memory_space<vmem>>, vector<1x10x1x64xbf16>
    tpu.vector_store %arg11[%c0_23, %c0_24, %c9_25, %c0_26], %15 {strides = array<i32>} : memref<1x10x10x64xbf16, #tpu.memory_space<vmem>>, vector<1x10x1x64xbf16>,
    %20 = arith.truncf %13 : vector<1x8x8x64xf32> to vector<1x8x8x64xbf16>
    %c0_27 = arith.constant 0 : index
    %c1 = arith.constant 1 : index
    %c1_28 = arith.constant 1 : index
    %c0_29 = arith.constant 0 : index
    %21 = vector.load %arg11[%c0_27, %c1, %c1_28, %c0_29] : memref<1x10x10x64xbf16, #tpu.memory_space<vmem>>, vector<1x8x8x64xbf16>
    tpu.vector_store %arg11[%c0_27, %c1, %c1_28, %c0_29], %20 {strides = array<i32>} : memref<1x10x10x64xbf16, #tpu.memory_space<vmem>>, vector<1x8x8x64xbf16>,
    %c0_30 = arith.constant 0 : index
    %c0_31 = arith.constant 0 : index
    %c0_32 = arith.constant 0 : index
    %c0_33 = arith.constant 0 : index
    %22 = vector.load %arg11[%c0_30, %c0_31, %c0_32, %c0_33] : memref<1x10x10x64xbf16, #tpu.memory_space<vmem>>, vector<1x8x8x64xbf16>
    %c0_34 = arith.constant 0 : index
    %c0_35 = arith.constant 0 : index
    %c1_36 = arith.constant 1 : index
    %c0_37 = arith.constant 0 : index
    %23 = vector.load %arg11[%c0_34, %c0_35, %c1_36, %c0_37] : memref<1x10x10x64xbf16, #tpu.memory_space<vmem>>, vector<1x8x8x64xbf16>
    %c0_38 = arith.constant 0 : index
    %c0_39 = arith.constant 0 : index
    %c2 = arith.constant 2 : index
    %c0_40 = arith.constant 0 : index
    %24 = vector.load %arg11[%c0_38, %c0_39, %c2, %c0_40] : memref<1x10x10x64xbf16, #tpu.memory_space<vmem>>, vector<1x8x8x64xbf16>
    %c0_41 = arith.constant 0 : index
    %c1_42 = arith.constant 1 : index
    %c0_43 = arith.constant 0 : index
    %c0_44 = arith.constant 0 : index
    %25 = vector.load %arg11[%c0_41, %c1_42, %c0_43, %c0_44] : memref<1x10x10x64xbf16, #tpu.memory_space<vmem>>, vector<1x8x8x64xbf16>
    %c0_45 = arith.constant 0 : index
    %c1_46 = arith.constant 1 : index
    %c1_47 = arith.constant 1 : index
    %c0_48 = arith.constant 0 : index
    %26 = vector.load %arg11[%c0_45, %c1_46, %c1_47, %c0_48] : memref<1x10x10x64xbf16, #tpu.memory_space<vmem>>, vector<1x8x8x64xbf16>
    %c0_49 = arith.constant 0 : index
    %c1_50 = arith.constant 1 : index
    %c2_51 = arith.constant 2 : index
    %c0_52 = arith.constant 0 : index
    %27 = vector.load %arg11[%c0_49, %c1_50, %c2_51, %c0_52] : memref<1x10x10x64xbf16, #tpu.memory_space<vmem>>, vector<1x8x8x64xbf16>
    %c0_53 = arith.constant 0 : index
    %c2_54 = arith.constant 2 : index
    %c0_55 = arith.constant 0 : index
    %c0_56 = arith.constant 0 : index
    %28 = vector.load %arg11[%c0_53, %c2_54, %c0_55, %c0_56] : memref<1x10x10x64xbf16, #tpu.memory_space<vmem>>, vector<1x8x8x64xbf16>
    %c0_57 = arith.constant 0 : index
    %c2_58 = arith.constant 2 : index
    %c1_59 = arith.constant 1 : index
    %c0_60 = arith.constant 0 : index
    %29 = vector.load %arg11[%c0_57, %c2_58, %c1_59, %c0_60] : memref<1x10x10x64xbf16, #tpu.memory_space<vmem>>, vector<1x8x8x64xbf16>
    %c0_61 = arith.constant 0 : index
    %c2_62 = arith.constant 2 : index
    %c2_63 = arith.constant 2 : index
    %c0_64 = arith.constant 0 : index
    %30 = vector.load %arg11[%c0_61, %c2_62, %c2_63, %c0_64] : memref<1x10x10x64xbf16, #tpu.memory_space<vmem>>, vector<1x8x8x64xbf16>
    %31 = tpu.concatenate %22, %23, %24, %25, %26, %27, %28, %29, %30 in 3 : vector<1x8x8x64xbf16>, vector<1x8x8x64xbf16>, vector<1x8x8x64xbf16>, vector<1x8x8x64xbf16>, vector<1x8x8x64xbf16>, vector<1x8x8x64xbf16>, vector<1x8x8x64xbf16>, vector<1x8x8x64xbf16>, vector<1x8x8x64xbf16> -> vector<1x8x8x576xbf16>
    %32 = vector.shape_cast %31 : vector<1x8x8x576xbf16> to vector<64x576xbf16>
    %c0_65 = arith.constant 0 : index
    %c0_66 = arith.constant 0 : index
    %33 = vector.load %arg4[%c0_65, %c0_66] : memref<576x64xbf16, #tpu.memory_space<vmem>>, vector<576x64xbf16>
    %cst_67 = arith.constant dense<0.000000e+00> : vector<64x64xf32>
    %34 = tpu.matmul %32, %33, %cst_67 {dimension_numbers = #tpu.dot_dimension_numbers<[1], [0], [0], [1], [0, 0, 1, 1], [], []>} : vector<64x576xbf16>, vector<576x64xbf16>, vector<64x64xf32> -> vector<64x64xf32>
    %c0_68 = arith.constant 0 : index
    %c0_69 = arith.constant 0 : index
    %35 = vector.load %arg5[%c0_68, %c0_69] : memref<1x64xf32, #tpu.memory_space<vmem>>, vector<1x64xf32>
    %36 = vector.broadcast %35 : vector<1x64xf32> to vector<64x64xf32>
    %37 = arith.addf %34, %36 : vector<64x64xf32>
    %cst_70 = arith.constant 0.000000e+00 : f32
    %38 = vector.broadcast %cst_70 : f32 to vector<64x64xf32>
    %39 = arith.maximumf %37, %38 : vector<64x64xf32>
    %40 = vector.shape_cast %39 : vector<64x64xf32> to vector<1x8x8x64xf32>
    %41 = vector.shape_cast %40 : vector<1x8x8x64xf32> to vector<1x4x2x8x64xf32>
    %cst_71 = arith.constant dense<0xFF800000> : vector<1x4x8x64xf32>
    %42 = vector.multi_reduction <maximumf>, %41, %cst_71 [2] : vector<1x4x2x8x64xf32> to vector<1x4x8x64xf32>
    %43 = vector.shape_cast %42 : vector<1x4x8x64xf32> to vector<1x4x4x2x64xf32>
    %cst_72 = arith.constant dense<0xFF800000> : vector<1x4x4x64xf32>
    %44 = vector.multi_reduction <maximumf>, %43, %cst_72 [3] : vector<1x4x4x2x64xf32> to vector<1x4x4x64xf32>
    %cst_73 = arith.constant 0.000000e+00 : bf16
    %45 = vector.broadcast %cst_73 : bf16 to vector<1x1x6x64xbf16>
    %cst_74 = arith.constant 0.000000e+00 : bf16
    %46 = vector.broadcast %cst_74 : bf16 to vector<1x6x1x64xbf16>
    %c0_75 = arith.constant 0 : index
    %c0_76 = arith.constant 0 : index
    %c0_77 = arith.constant 0 : index
    %c0_78 = arith.constant 0 : index
    %47 = vector.load %arg12[%c0_75, %c0_76, %c0_77, %c0_78] : memref<1x6x6x64xbf16, #tpu.memory_space<vmem>>, vector<1x1x6x64xbf16>
    tpu.vector_store %arg12[%c0_75, %c0_76, %c0_77, %c0_78], %45 {strides = array<i32>} : memref<1x6x6x64xbf16, #tpu.memory_space<vmem>>, vector<1x1x6x64xbf16>,
    %c0_79 = arith.constant 0 : index
    %c5 = arith.constant 5 : index
    %c0_80 = arith.constant 0 : index
    %c0_81 = arith.constant 0 : index
    %48 = vector.load %arg12[%c0_79, %c5, %c0_80, %c0_81] : memref<1x6x6x64xbf16, #tpu.memory_space<vmem>>, vector<1x1x6x64xbf16>
    tpu.vector_store %arg12[%c0_79, %c5, %c0_80, %c0_81], %45 {strides = array<i32>} : memref<1x6x6x64xbf16, #tpu.memory_space<vmem>>, vector<1x1x6x64xbf16>,
    %c0_82 = arith.constant 0 : index
    %c0_83 = arith.constant 0 : index
    %c0_84 = arith.constant 0 : index
    %c0_85 = arith.constant 0 : index
    %49 = vector.load %arg12[%c0_82, %c0_83, %c0_84, %c0_85] : memref<1x6x6x64xbf16, #tpu.memory_space<vmem>>, vector<1x6x1x64xbf16>
    tpu.vector_store %arg12[%c0_82, %c0_83, %c0_84, %c0_85], %46 {strides = array<i32>} : memref<1x6x6x64xbf16, #tpu.memory_space<vmem>>, vector<1x6x1x64xbf16>,
    %c0_86 = arith.constant 0 : index
    %c0_87 = arith.constant 0 : index
    %c5_88 = arith.constant 5 : index
    %c0_89 = arith.constant 0 : index
    %50 = vector.load %arg12[%c0_86, %c0_87, %c5_88, %c0_89] : memref<1x6x6x64xbf16, #tpu.memory_space<vmem>>, vector<1x6x1x64xbf16>
    tpu.vector_store %arg12[%c0_86, %c0_87, %c5_88, %c0_89], %46 {strides = array<i32>} : memref<1x6x6x64xbf16, #tpu.memory_space<vmem>>, vector<1x6x1x64xbf16>,
    %51 = arith.truncf %44 : vector<1x4x4x64xf32> to vector<1x4x4x64xbf16>
    %c0_90 = arith.constant 0 : index
    %c1_91 = arith.constant 1 : index
    %c1_92 = arith.constant 1 : index
    %c0_93 = arith.constant 0 : index
    %52 = vector.load %arg12[%c0_90, %c1_91, %c1_92, %c0_93] : memref<1x6x6x64xbf16, #tpu.memory_space<vmem>>, vector<1x4x4x64xbf16>
    tpu.vector_store %arg12[%c0_90, %c1_91, %c1_92, %c0_93], %51 {strides = array<i32>} : memref<1x6x6x64xbf16, #tpu.memory_space<vmem>>, vector<1x4x4x64xbf16>,
    %c0_94 = arith.constant 0 : index
    %c0_95 = arith.constant 0 : index
    %c0_96 = arith.constant 0 : index
    %c0_97 = arith.constant 0 : index
    %53 = vector.load %arg12[%c0_94, %c0_95, %c0_96, %c0_97] : memref<1x6x6x64xbf16, #tpu.memory_space<vmem>>, vector<1x4x4x64xbf16>
    %c0_98 = arith.constant 0 : index
    %c0_99 = arith.constant 0 : index
    %c1_100 = arith.constant 1 : index
    %c0_101 = arith.constant 0 : index
    %54 = vector.load %arg12[%c0_98, %c0_99, %c1_100, %c0_101] : memref<1x6x6x64xbf16, #tpu.memory_space<vmem>>, vector<1x4x4x64xbf16>
    %c0_102 = arith.constant 0 : index
    %c0_103 = arith.constant 0 : index
    %c2_104 = arith.constant 2 : index
    %c0_105 = arith.constant 0 : index
    %55 = vector.load %arg12[%c0_102, %c0_103, %c2_104, %c0_105] : memref<1x6x6x64xbf16, #tpu.memory_space<vmem>>, vector<1x4x4x64xbf16>
    %c0_106 = arith.constant 0 : index
    %c1_107 = arith.constant 1 : index
    %c0_108 = arith.constant 0 : index
    %c0_109 = arith.constant 0 : index
    %56 = vector.load %arg12[%c0_106, %c1_107, %c0_108, %c0_109] : memref<1x6x6x64xbf16, #tpu.memory_space<vmem>>, vector<1x4x4x64xbf16>
    %c0_110 = arith.constant 0 : index
    %c1_111 = arith.constant 1 : index
    %c1_112 = arith.constant 1 : index
    %c0_113 = arith.constant 0 : index
    %57 = vector.load %arg12[%c0_110, %c1_111, %c1_112, %c0_113] : memref<1x6x6x64xbf16, #tpu.memory_space<vmem>>, vector<1x4x4x64xbf16>
    %c0_114 = arith.constant 0 : index
    %c1_115 = arith.constant 1 : index
    %c2_116 = arith.constant 2 : index
    %c0_117 = arith.constant 0 : index
    %58 = vector.load %arg12[%c0_114, %c1_115, %c2_116, %c0_117] : memref<1x6x6x64xbf16, #tpu.memory_space<vmem>>, vector<1x4x4x64xbf16>
    %c0_118 = arith.constant 0 : index
    %c2_119 = arith.constant 2 : index
    %c0_120 = arith.constant 0 : index
    %c0_121 = arith.constant 0 : index
    %59 = vector.load %arg12[%c0_118, %c2_119, %c0_120, %c0_121] : memref<1x6x6x64xbf16, #tpu.memory_space<vmem>>, vector<1x4x4x64xbf16>
    %c0_122 = arith.constant 0 : index
    %c2_123 = arith.constant 2 : index
    %c1_124 = arith.constant 1 : index
    %c0_125 = arith.constant 0 : index
    %60 = vector.load %arg12[%c0_122, %c2_123, %c1_124, %c0_125] : memref<1x6x6x64xbf16, #tpu.memory_space<vmem>>, vector<1x4x4x64xbf16>
    %c0_126 = arith.constant 0 : index
    %c2_127 = arith.constant 2 : index
    %c2_128 = arith.constant 2 : index
    %c0_129 = arith.constant 0 : index
    %61 = vector.load %arg12[%c0_126, %c2_127, %c2_128, %c0_129] : memref<1x6x6x64xbf16, #tpu.memory_space<vmem>>, vector<1x4x4x64xbf16>
    %62 = tpu.concatenate %53, %54, %55, %56, %57, %58, %59, %60, %61 in 3 : vector<1x4x4x64xbf16>, vector<1x4x4x64xbf16>, vector<1x4x4x64xbf16>, vector<1x4x4x64xbf16>, vector<1x4x4x64xbf16>, vector<1x4x4x64xbf16>, vector<1x4x4x64xbf16>, vector<1x4x4x64xbf16>, vector<1x4x4x64xbf16> -> vector<1x4x4x576xbf16>
    %63 = vector.shape_cast %62 : vector<1x4x4x576xbf16> to vector<16x576xbf16>
    %c0_130 = arith.constant 0 : index
    %c0_131 = arith.constant 0 : index
    %64 = vector.load %arg6[%c0_130, %c0_131] : memref<576x64xbf16, #tpu.memory_space<vmem>>, vector<576x64xbf16>
    %cst_132 = arith.constant dense<0.000000e+00> : vector<16x64xf32>
    %65 = tpu.matmul %63, %64, %cst_132 {dimension_numbers = #tpu.dot_dimension_numbers<[1], [0], [0], [1], [0, 0, 1, 1], [], []>} : vector<16x576xbf16>, vector<576x64xbf16>, vector<16x64xf32> -> vector<16x64xf32>
    %c0_133 = arith.constant 0 : index
    %c0_134 = arith.constant 0 : index
    %66 = vector.load %arg7[%c0_133, %c0_134] : memref<1x64xf32, #tpu.memory_space<vmem>>, vector<1x64xf32>
    %67 = vector.broadcast %66 : vector<1x64xf32> to vector<16x64xf32>
    %68 = arith.addf %65, %67 : vector<16x64xf32>
    %cst_135 = arith.constant 0.000000e+00 : f32
    %69 = vector.broadcast %cst_135 : f32 to vector<16x64xf32>
    %70 = arith.maximumf %68, %69 : vector<16x64xf32>
    %71 = vector.shape_cast %70 : vector<16x64xf32> to vector<1x4x4x64xf32>
    %72 = vector.shape_cast %71 : vector<1x4x4x64xf32> to vector<1x2x2x4x64xf32>
    %cst_136 = arith.constant dense<0xFF800000> : vector<1x2x4x64xf32>
    %73 = vector.multi_reduction <maximumf>, %72, %cst_136 [2] : vector<1x2x2x4x64xf32> to vector<1x2x4x64xf32>
    %74 = vector.shape_cast %73 : vector<1x2x4x64xf32> to vector<1x2x2x2x64xf32>
    %cst_137 = arith.constant dense<0xFF800000> : vector<1x2x2x64xf32>
    %75 = vector.multi_reduction <maximumf>, %74, %cst_137 [3] : vector<1x2x2x2x64xf32> to vector<1x2x2x64xf32>
    %cst_138 = arith.constant 0.000000e+00 : bf16
    %76 = vector.broadcast %cst_138 : bf16 to vector<1x1x4x64xbf16>
    %cst_139 = arith.constant 0.000000e+00 : bf16
    %77 = vector.broadcast %cst_139 : bf16 to vector<1x4x1x64xbf16>
    %c0_140 = arith.constant 0 : index
    %c0_141 = arith.constant 0 : index
    %c0_142 = arith.constant 0 : index
    %c0_143 = arith.constant 0 : index
    %78 = vector.load %arg13[%c0_140, %c0_141, %c0_142, %c0_143] : memref<1x4x4x64xbf16, #tpu.memory_space<vmem>>, vector<1x1x4x64xbf16>
    tpu.vector_store %arg13[%c0_140, %c0_141, %c0_142, %c0_143], %76 {strides = array<i32>} : memref<1x4x4x64xbf16, #tpu.memory_space<vmem>>, vector<1x1x4x64xbf16>,
    %c0_144 = arith.constant 0 : index
    %c3 = arith.constant 3 : index
    %c0_145 = arith.constant 0 : index
    %c0_146 = arith.constant 0 : index
    %79 = vector.load %arg13[%c0_144, %c3, %c0_145, %c0_146] : memref<1x4x4x64xbf16, #tpu.memory_space<vmem>>, vector<1x1x4x64xbf16>
    tpu.vector_store %arg13[%c0_144, %c3, %c0_145, %c0_146], %76 {strides = array<i32>} : memref<1x4x4x64xbf16, #tpu.memory_space<vmem>>, vector<1x1x4x64xbf16>,
    %c0_147 = arith.constant 0 : index
    %c0_148 = arith.constant 0 : index
    %c0_149 = arith.constant 0 : index
    %c0_150 = arith.constant 0 : index
    %80 = vector.load %arg13[%c0_147, %c0_148, %c0_149, %c0_150] : memref<1x4x4x64xbf16, #tpu.memory_space<vmem>>, vector<1x4x1x64xbf16>
    tpu.vector_store %arg13[%c0_147, %c0_148, %c0_149, %c0_150], %77 {strides = array<i32>} : memref<1x4x4x64xbf16, #tpu.memory_space<vmem>>, vector<1x4x1x64xbf16>,
    %c0_151 = arith.constant 0 : index
    %c0_152 = arith.constant 0 : index
    %c3_153 = arith.constant 3 : index
    %c0_154 = arith.constant 0 : index
    %81 = vector.load %arg13[%c0_151, %c0_152, %c3_153, %c0_154] : memref<1x4x4x64xbf16, #tpu.memory_space<vmem>>, vector<1x4x1x64xbf16>
    tpu.vector_store %arg13[%c0_151, %c0_152, %c3_153, %c0_154], %77 {strides = array<i32>} : memref<1x4x4x64xbf16, #tpu.memory_space<vmem>>, vector<1x4x1x64xbf16>,
    %82 = arith.truncf %75 : vector<1x2x2x64xf32> to vector<1x2x2x64xbf16>
    %c0_155 = arith.constant 0 : index
    %c1_156 = arith.constant 1 : index
    %c1_157 = arith.constant 1 : index
    %c0_158 = arith.constant 0 : index
    %83 = vector.load %arg13[%c0_155, %c1_156, %c1_157, %c0_158] : memref<1x4x4x64xbf16, #tpu.memory_space<vmem>>, vector<1x2x2x64xbf16>
    tpu.vector_store %arg13[%c0_155, %c1_156, %c1_157, %c0_158], %82 {strides = array<i32>} : memref<1x4x4x64xbf16, #tpu.memory_space<vmem>>, vector<1x2x2x64xbf16>,
    %c0_159 = arith.constant 0 : index
    %c0_160 = arith.constant 0 : index
    %c0_161 = arith.constant 0 : index
    %c0_162 = arith.constant 0 : index
    %84 = vector.load %arg13[%c0_159, %c0_160, %c0_161, %c0_162] : memref<1x4x4x64xbf16, #tpu.memory_space<vmem>>, vector<1x2x2x64xbf16>
    %c0_163 = arith.constant 0 : index
    %c0_164 = arith.constant 0 : index
    %c1_165 = arith.constant 1 : index
    %c0_166 = arith.constant 0 : index
    %85 = vector.load %arg13[%c0_163, %c0_164, %c1_165, %c0_166] : memref<1x4x4x64xbf16, #tpu.memory_space<vmem>>, vector<1x2x2x64xbf16>
    %c0_167 = arith.constant 0 : index
    %c0_168 = arith.constant 0 : index
    %c2_169 = arith.constant 2 : index
    %c0_170 = arith.constant 0 : index
    %86 = vector.load %arg13[%c0_167, %c0_168, %c2_169, %c0_170] : memref<1x4x4x64xbf16, #tpu.memory_space<vmem>>, vector<1x2x2x64xbf16>
    %c0_171 = arith.constant 0 : index
    %c1_172 = arith.constant 1 : index
    %c0_173 = arith.constant 0 : index
    %c0_174 = arith.constant 0 : index
    %87 = vector.load %arg13[%c0_171, %c1_172, %c0_173, %c0_174] : memref<1x4x4x64xbf16, #tpu.memory_space<vmem>>, vector<1x2x2x64xbf16>
    %c0_175 = arith.constant 0 : index
    %c1_176 = arith.constant 1 : index
    %c1_177 = arith.constant 1 : index
    %c0_178 = arith.constant 0 : index
    %88 = vector.load %arg13[%c0_175, %c1_176, %c1_177, %c0_178] : memref<1x4x4x64xbf16, #tpu.memory_space<vmem>>, vector<1x2x2x64xbf16>
    %c0_179 = arith.constant 0 : index
    %c1_180 = arith.constant 1 : index
    %c2_181 = arith.constant 2 : index
    %c0_182 = arith.constant 0 : index
    %89 = vector.load %arg13[%c0_179, %c1_180, %c2_181, %c0_182] : memref<1x4x4x64xbf16, #tpu.memory_space<vmem>>, vector<1x2x2x64xbf16>
    %c0_183 = arith.constant 0 : index
    %c2_184 = arith.constant 2 : index
    %c0_185 = arith.constant 0 : index
    %c0_186 = arith.constant 0 : index
    %90 = vector.load %arg13[%c0_183, %c2_184, %c0_185, %c0_186] : memref<1x4x4x64xbf16, #tpu.memory_space<vmem>>, vector<1x2x2x64xbf16>
    %c0_187 = arith.constant 0 : index
    %c2_188 = arith.constant 2 : index
    %c1_189 = arith.constant 1 : index
    %c0_190 = arith.constant 0 : index
    %91 = vector.load %arg13[%c0_187, %c2_188, %c1_189, %c0_190] : memref<1x4x4x64xbf16, #tpu.memory_space<vmem>>, vector<1x2x2x64xbf16>
    %c0_191 = arith.constant 0 : index
    %c2_192 = arith.constant 2 : index
    %c2_193 = arith.constant 2 : index
    %c0_194 = arith.constant 0 : index
    %92 = vector.load %arg13[%c0_191, %c2_192, %c2_193, %c0_194] : memref<1x4x4x64xbf16, #tpu.memory_space<vmem>>, vector<1x2x2x64xbf16>
    %93 = tpu.concatenate %84, %85, %86, %87, %88, %89, %90, %91, %92 in 3 : vector<1x2x2x64xbf16>, vector<1x2x2x64xbf16>, vector<1x2x2x64xbf16>, vector<1x2x2x64xbf16>, vector<1x2x2x64xbf16>, vector<1x2x2x64xbf16>, vector<1x2x2x64xbf16>, vector<1x2x2x64xbf16>, vector<1x2x2x64xbf16> -> vector<1x2x2x576xbf16>
    %94 = vector.shape_cast %93 : vector<1x2x2x576xbf16> to vector<4x576xbf16>
    %c0_195 = arith.constant 0 : index
    %c0_196 = arith.constant 0 : index
    %95 = vector.load %arg8[%c0_195, %c0_196] : memref<576x64xbf16, #tpu.memory_space<vmem>>, vector<576x64xbf16>
    %cst_197 = arith.constant dense<0.000000e+00> : vector<4x64xf32>
    %96 = tpu.matmul %94, %95, %cst_197 {dimension_numbers = #tpu.dot_dimension_numbers<[1], [0], [0], [1], [0, 0, 1, 1], [], []>} : vector<4x576xbf16>, vector<576x64xbf16>, vector<4x64xf32> -> vector<4x64xf32>
    %c0_198 = arith.constant 0 : index
    %c0_199 = arith.constant 0 : index
    %97 = vector.load %arg9[%c0_198, %c0_199] : memref<1x64xf32, #tpu.memory_space<vmem>>, vector<1x64xf32>
    %98 = vector.broadcast %97 : vector<1x64xf32> to vector<4x64xf32>
    %99 = arith.addf %96, %98 : vector<4x64xf32>
    %cst_200 = arith.constant 0.000000e+00 : f32
    %100 = vector.broadcast %cst_200 : f32 to vector<4x64xf32>
    %101 = arith.maximumf %99, %100 : vector<4x64xf32>
    %102 = vector.shape_cast %101 : vector<4x64xf32> to vector<1x2x2x64xf32>
    %103 = vector.shape_cast %102 : vector<1x2x2x64xf32> to vector<1x1x2x2x64xf32>
    %cst_201 = arith.constant dense<0xFF800000> : vector<1x1x2x64xf32>
    %104 = vector.multi_reduction <maximumf>, %103, %cst_201 [2] : vector<1x1x2x2x64xf32> to vector<1x1x2x64xf32>
    %105 = vector.shape_cast %104 : vector<1x1x2x64xf32> to vector<1x1x1x2x64xf32>
    %cst_202 = arith.constant dense<0xFF800000> : vector<1x1x1x64xf32>
    %106 = vector.multi_reduction <maximumf>, %105, %cst_202 [3] : vector<1x1x1x2x64xf32> to vector<1x1x1x64xf32>
    %107 = vector.shape_cast %106 : vector<1x1x1x64xf32> to vector<1x1x64xf32>
    %c0_203 = arith.constant 0 : index
    %c0_204 = arith.constant 0 : index
    %c0_205 = arith.constant 0 : index
    %108 = vector.load %arg10[%c0_203, %c0_204, %c0_205] : memref<1x1x64xf32, #tpu.memory_space<vmem>>, vector<1x1x64xf32>
    tpu.vector_store %arg10[%c0_203, %c0_204, %c0_205], %107 {strides = array<i32>} : memref<1x1x64xf32, #tpu.memory_space<vmem>>, vector<1x1x64xf32>,
    return
  }
  func.func @transform_0(%arg0: i32) -> (i32, i32, i32, i32) {
    %c0_i32 = arith.constant 0 : i32
    %c0_i32_0 = arith.constant 0 : i32
    %c0_i32_1 = arith.constant 0 : i32
    %c0_i32_2 = arith.constant 0 : i32
    return %arg0, %c0_i32, %c0_i32_0, %c0_i32_1 : i32, i32, i32, i32
  }
  func.func @transform_1(%arg0: i32) -> (i32, i32) {
    %c0_i32 = arith.constant 0 : i32
    %c0_i32_0 = arith.constant 0 : i32
    %c0_i32_1 = arith.constant 0 : i32
    return %c0_i32, %c0_i32_0 : i32, i32
  }
  func.func @transform_2(%arg0: i32) -> (i32, i32) {
    %c0_i32 = arith.constant 0 : i32
    %c0_i32_0 = arith.constant 0 : i32
    %c0_i32_1 = arith.constant 0 : i32
    return %c0_i32, %c0_i32_0 : i32, i32
  }
  func.func @transform_3(%arg0: i32) -> (i32, i32) {
    %c0_i32 = arith.constant 0 : i32
    %c0_i32_0 = arith.constant 0 : i32
    %c0_i32_1 = arith.constant 0 : i32
    return %c0_i32, %c0_i32_0 : i32, i32
  }
  func.func @transform_4(%arg0: i32) -> (i32, i32) {
    %c0_i32 = arith.constant 0 : i32
    %c0_i32_0 = arith.constant 0 : i32
    %c0_i32_1 = arith.constant 0 : i32
    return %c0_i32, %c0_i32_0 : i32, i32
  }
  func.func @transform_5(%arg0: i32) -> (i32, i32) {
    %c0_i32 = arith.constant 0 : i32
    %c0_i32_0 = arith.constant 0 : i32
    %c0_i32_1 = arith.constant 0 : i32
    return %c0_i32, %c0_i32_0 : i32, i32
  }
  func.func @transform_6(%arg0: i32) -> (i32, i32) {
    %c0_i32 = arith.constant 0 : i32
    %c0_i32_0 = arith.constant 0 : i32
    %c0_i32_1 = arith.constant 0 : i32
    return %c0_i32, %c0_i32_0 : i32, i32
  }
  func.func @transform_7(%arg0: i32) -> (i32, i32) {
    %c0_i32 = arith.constant 0 : i32
    %c0_i32_0 = arith.constant 0 : i32
    %c0_i32_1 = arith.constant 0 : i32
    return %c0_i32, %c0_i32_0 : i32, i32
  }
  func.func @transform_8(%arg0: i32) -> (i32, i32) {
    %c0_i32 = arith.constant 0 : i32
    %c0_i32_0 = arith.constant 0 : i32
    %c0_i32_1 = arith.constant 0 : i32
    return %c0_i32, %c0_i32_0 : i32, i32
  }
  func.func @transform_9(%arg0: i32) -> (i32, i32, i32) {
    %c0_i32 = arith.constant 0 : i32
    %c0_i32_0 = arith.constant 0 : i32
    %c0_i32_1 = arith.constant 0 : i32
    return %arg0, %c0_i32, %c0_i32_0 : i32, i32, i32
  }
}

</mosaic_0001>

<bundles_post_ra>
// kernel: _convnet_forward_impl.1
= control target key start
LH: loop header
LB: loop body
LE: loop exit
PB: predicated region body
PF: predicated region fallthrough
CT: control target
= control target key end

     0   :  { %14 = vsyncpa [#allocation6], 0  ;;  %s6948_s0 = inlined_call_operand.vmem [shape: bf16[2,16,16,27], index: 0, kind: input, shape index: {}]   ;;  %s6949_s1 = inlined_call_operand.vmem [shape: bf16[27,64], index: 1, kind: input, shape index: {}]   ;;  %s6950_s2 = inlined_call_operand.vmem [shape: f32[1,64], index: 2, kind: input, shape index: {}]   ;;  %s6951_s3 = inlined_call_operand.vmem [shape: bf16[576,64], index: 3, kind: input, shape index: {}]   ;;  %s6952_s4 = inlined_call_operand.vmem [shape: f32[1,64], index: 4, kind: input, shape index: {}]   ;;  %s6953_s5 = inlined_call_operand.vmem [shape: bf16[576,64], index: 5, kind: input, shape index: {}]   ;;  %s6954_s6 = inlined_call_operand.vmem [shape: f32[1,64], index: 6, kind: input, shape index: {}]   ;;  %s6955_s7 = inlined_call_operand.vmem [shape: bf16[576,64], index: 7, kind: input, shape index: {}]   ;;  %s6956_s8 = inlined_call_operand.vmem [shape: f32[1,64], index: 8, kind: input, shape index: {}]   ;;  %s6957_s9 = inlined_call_operand.hbm [shape: f32[2,1,64], index: 9, kind: output, shape index: {}]  }
   0x1   :  { %16 = vsyncpa [#allocation6 + $0x1], 0  ;;  %s5497_s30 = smov 0   ;;  %s5499_s10 = smov 0  }
   0x2   :  { %s5501_s11 = smov 0   ;;  %s5503_s12 = smov 0  }
   0x3 LB: > { %s5518_s13 = sadd.s32 4294967295, %s5442_s12   ;;  %s4661_s14 = sadd.s32 4294967294, %s5442_s12   ;;  %s5442_s12 = sphi %s5503_s12, %s6992_s12   ;;  %s5438_s11 = sphi %s5501_s11, %s6991_s11   ;;  %s5434_s10 = sphi %s5499_s10, %s6990_s10   ;;  %s5430_s30 = sphi %s5497_s30, %s6989_s30  }
   0x4   : > { %s5522_s15 = sadd.s32 1, %s5442_s12   ;;  %s223_s16 = sadd.s32 1, %s5438_s11 }
   0x5   : > { %s220_s17 = ssub.s32 %s5442_s12, %s5522_s15  ;;  %p233_p0 = scmp.ne.s32.totalorder %s5438_s11, %s5434_s10 }
   0x6   : > { %p221_p1 = scmp.eq.s32.totalorder %s220_s17, 0  ;;  %p234_p2 = scmp.eq.s32.totalorder %s5518_s13, 1 }
   0x7   : > { %p239_p3 = scmp.ne.s32.totalorder %s5434_s10, %s5430_s30  ;;  %p240_p4 = scmp.eq.s32.totalorder %s4661_s14, 1 }
   0x8   : > { %s5533_s18 = scalar_select %p221_p1, %s5438_s11, %s223_s16  }
   0x9   : > { %p5535_p5 = por %p234_p2, %p233_p0  ;;  %p5539_p6 = por %p240_p4, %p239_p3 }
   0xa   : > { %p4664_p7 = scmp.ge.s32.totalorder %s5442_s12, 1  ;;  %p290_p8 = scmp.lt.s32.totalorder %s5442_s12, 3 }
   0xc   : > { %p291_p9 = pnand %p4664_p7, %p290_p8 }
   0xd   : > { %p325_p10 = scmp.lt.s32.totalorder (!%p291_p9), %s5518_s13, 1  ;;  %s5446_s22 = smov (!%p291_p9), 64  }
   0xe   : > { %294 = sbr.rel (%p291_p9) target bundleno = 1531 (0x5fb), region = 56  ;;  %s323_s17 = sand.u32 (!%p291_p9), 1, %s5434_s10  }
   0xf   : > { %s4602_s24 = scalar_lea.hbm (!%p291_p9), %s6957_s9, %s5518_s13  ;;  %s4594_s27 = scalar_lea.sflag (!%p291_p9), [#allocation6], %s323_s17 }
  0x13   : > { %v4737_v0 = vld [vmem:[%s6949_s1 + $0x8] sm:$0xf]  ;;  %v5215_v1 = vld [vmem:[%s6949_s1 + $0x8] sm:$0x30]  ;;  %vm511_vm0 = vcmask 1044480   ;;  %vm512_vm1 = vcmask 1045504  }
  0x14   : > { %v4738_v2 = vor.u32 %v5215_v1, %v4737_v0  ;;  %v5444_v3 = vmov 65535   ;;  %s326_s25 = scalar_select %p325_p10, %s5518_s13, 1  ;;  %v5214_v7 = vld [vmem:[%s6949_s1] sm:$0xff]  ;;  %vm462_vm2 = vcmask 220160   ;;  %vm1249_vm3 = vcmask 519168  }
  0x15   : > { %v513_v4 = vsel %vm511_vm0, 4294967295, %v5444_v3  ;;  %v5586_v21 = vld [vmem:[%s6950_s2] ss:$0 sm:$0xff]  ;;  %vm6958_vm4 = vcmask 516096   ;;  %vm1289_vm5 = vsmask.f32 7938 }
  0x16   : > { %v514_v5 = vsel %vm512_vm1, %v513_v4, 0  ;;  %s5197_s26 = sshll.u32 %s326_s25, 7  ;;  %vm5592_vm6 = vmand %vm6958_vm4, %vm1289_vm5  ;;  %v1294_v25 = vld [vmem:[#allocation2 + $0xc] sm:$0x1]  ;;  %vm1257_vm7 = vsmask.f32 256 }
  0x17   : > { %v516_v6 = vand.u32 %v4738_v2, %v514_v5  ;;  %s5559_s16 = scalar_lea.vmem %s6948_s0, %s5197_s26  ;;  %v1295_v27 = vsel %vm5592_vm6, 0, %v1294_v25  ;;  %v6959_v28 = vmov 0   ;;  %vm5602_vm8 = vmand %vm6958_vm4, %vm1257_vm7  ;;  %v1262_v32 = vld [vmem:[#allocation2 + $0x8] sm:$0x1]  ;;  %vm639_vm9 = vcmask 523264   ;;  %s324_s25 = scalar_lea.vmem [#allocation5], %s323_s17 }
  0x18   : > { %v5198_v8 = vld [vmem:[%s5559_s16] sm:$0xff]  ;;  %v5199_v9 = vld [vmem:[%s5559_s16 + $0x8] sm:$0xff]  ;;  %v5200_v10 = vld [vmem:[%s5559_s16 + $0x10] sm:$0xff]  ;;  %1250 = vst.msk [vmem:[#allocation2] sm:$0xf] %vm1249_vm3, %v6959_v28  ;;  %v1263_v33 = vsel %vm5602_vm8, 0, %v1262_v32 }
  0x19   : > { %524 = vmatpush.bf16.msra.mxu0 %v516_v6  ;;  %5324 = vmatpush.bf16.msra.mxu2 %v516_v6  ;;  %v5201_v11 = vld [vmem:[%s5559_s16 + $0x18] sm:$0xff]  ;;  %v5202_v12 = vld [vmem:[%s5559_s16 + $0x20] sm:$0xff]  ;;  %v5212_v13 = vld [vmem:[%s5559_s16 + $0x70] sm:$0xff]  ;;  %1296 = vst [vmem:[#allocation2 + $0xc] sm:$0x1] %v1295_v27  ;;  %vm800_vm10 = vcmask 517120  }
  0x1a   : > { %v5203_v14 = vld [vmem:[%s5559_s16 + $0x28] sm:$0xff]  ;;  %v5213_v15 = vld [vmem:[%s5559_s16 + $0x78] sm:$0xff]  ;;  %v5204_v16 = vld [vmem:[%s5559_s16 + $0x30] sm:$0xff]  ;;  %1252 = vst.msk [vmem:[#allocation2 + $0x4] sm:$0x1] %vm6958_vm4, %v6959_v28  ;;  %vm1513_vm11 = vcmask 1042434  }
  0x1b   : > { %v5205_v17 = vld [vmem:[%s5559_s16 + $0x38] sm:$0xff]  ;;  %v5206_v18 = vld [vmem:[%s5559_s16 + $0x40] sm:$0xff]  ;;  %v5207_v23 = vld [vmem:[%s5559_s16 + $0x48] sm:$0xff]  ;;  %1264 = vst [vmem:[#allocation2 + $0x8] sm:$0x1] %v1263_v33  ;;  %vm1515_vm12 = vcmask 1043459  }
  0x1c   : > { %3916 = vst.msk [vmem:[#allocation4] sm:$0x3] %vm800_vm10, %v6959_v28  ;;  %v5208_v5 = vld [vmem:[%s5559_s16 + $0x50] sm:$0xff]  ;;  %vm1517_vm13 = vcmask 1044484   ;;  %vm1519_vm14 = vcmask 1045509   ;;  %vm1521_vm15 = vcmask 1046534   ;;  %vm5663_vm1 = vmand %vm1249_vm3, %vm1289_vm5 }
  0x1d   : > { %525 = vmatpush.bf16.msra.mxu0 %v5214_v7  ;;  %5325 = vmatpush.bf16.msra.mxu2 %v5214_v7  ;;  %3918 = vst.msk [vmem:[#allocation4 + $0x6] sm:$0x3] %vm800_vm10, %v6959_v28  ;;  %vm1523_vm0 = vcmask 1047559   ;;  %vm3931_vm5 = vcmask 517121   ;;  %vm3932_vm7 = vsmask.f32 7942 }
  0x1e   : > { %1254 = vst.msk [vmem:[#allocation2 + $0x48] sm:$0xf] %vm1249_vm3, %v6959_v28  ;;  %s4604_s26 = sshll.u32 %s324_s25, 4  ;;  %s4605_s26 = int_to_ptr.vmem [resolvable:$true] %s4604_s26 }
  0x1f   : > { %v1259_v39 = vld [vmem:[#allocation2] sm:$0x1]  ;;  %1255 = vst.msk [vmem:[#allocation2 + $0x4c] sm:$0x1] %vm6958_vm4, %v6959_v28  ;;  %vm5680_vm4 = vmand %vm3931_vm5, %vm3932_vm7  ;;  %vm3447_vm5 = vcmask 1043456   ;;  %vm3443_vm7 = vcmask 1045508  }
  0x20   : > { %4739 = vmatmul.msk.bf16.vlgmr.msra.gmra.mxu0 %vm462_vm2, %v5198_v8  ;;  %4753 = vmatmul.msk.bf16.vlgmr.msra.gmra.mxu2 %vm462_vm2, %v5212_v13  ;;  %v1260_v48 = vsel %vm5602_vm8, 0, %v1259_v39 }
  0x21   : > { %v1291_v49 = vld [vmem:[#allocation2 + $0x4] sm:$0x1]  ;;  %1261 = vst [vmem:[#allocation2] sm:$0x1] %v1260_v48 }
  0x22   : > { %v1292_v53 = vsel %vm5592_vm6, 0, %v1291_v49 }
  0x23   : > { %1293 = vst [vmem:[#allocation2 + $0x4] sm:$0x1] %v1292_v53 }
  0x2a   : > { %v5640_v53 = vld [vmem:[#allocation2 + $0x4] sm:$0x1] }
  0x30   : > { %4740 = vmatmul.msk.bf16.gmra.mxu0 %vm462_vm2, %v5199_v9  ;;  %4754 = vmatmul.msk.bf16.gmra.mxu2 %vm462_vm2, %v5213_v15 }
  0x40   : > { %4741 = vmatmul.msk.bf16.gmra.mxu0 %vm462_vm2, %v5200_v10 }
  0x50   : > { %4742 = vmatmul.msk.bf16.gmra.mxu0 %vm462_vm2, %v5201_v11 }
  0x60   : > { %4743 = vmatmul.msk.bf16.gmra.mxu0 %vm462_vm2, %v5202_v12 }
  0x70   : > { %4744 = vmatmul.msk.bf16.gmra.mxu0 %vm462_vm2, %v5203_v14 }
  0x80   : > { %4745 = vmatmul.msk.bf16.gmra.mxu0 %vm462_vm2, %v5204_v16 }
  0x90   : > { %4746 = vmatmul.msk.bf16.gmra.mxu0 %vm462_vm2, %v5205_v17 }
  0x9d   : > { %v527_v19 = vpop.f32.mrf.mxu0 }
  0x9e   : > { %v528_v22 = vadd.f32 %v5586_v21, %v527_v19 }
  0xa0   : > { %4747 = vmatmul.msk.bf16.gmra.mxu0 %vm462_vm2, %v5206_v18  ;;  %v607_v29 = vmax.f32 %v528_v22, 0.0 }
  0xa2   : > { %v640_v35 = vsel %vm639_vm9, %v607_v29, -inf }
  0xa5   : > { %v529_v20 = vpop.f32.mrf.mxu0 }
  0xa6   : > { %v530_v36 = vadd.f32 %v5586_v21, %v529_v20 }
  0xa8   : > { %v608_v45 = vmax.f32 %v530_v36, 0.0 }
  0xaa   : > { %v643_v63 = vsel %vm639_vm9, %v608_v45, -inf  ;;  %v1650_v45 = vld [vmem:[#allocation2] sm:$0xf] }
  0xad   : > { %v532_v26 = vpop.f32.mrf.mxu0 }
  0xae   : > { %v533_v30 = vadd.f32 %v5586_v21, %v532_v26 }
  0xb0   : > { %v609_v34 = vmax.f32 %v533_v30, 0.0  ;;  %4748 = vmatmul.msk.bf16.gmra.mxu0 %vm462_vm2, %v5207_v23 }
  0xb2   : > { %v641_v37 = vsel %vm639_vm9, %v609_v34, -inf }
  0xb3   : > { %v642_v38 = vmax.f32 %v640_v35, %v641_v37 }
  0xb5   : > { %v704_v40 = vrot.slane %v642_v38, 2  ;;  %v705_v41 = vrot.slane %v642_v38, 4  ;;  %v706_v42 = vrot.slane %v642_v38, 6  ;;  %v801_v43 = vsel %vm800_vm10, %v642_v38, -inf  ;;  %v534_v44 = vpop.f32.mrf.mxu0 }
  0xb6   : > { %v802_v46 = vrot.slane %v801_v43, 4  ;;  %v535_v47 = vadd.f32 %v5586_v21, %v534_v44 }
  0xb7   : > { %v808_v50 = vsel %vm800_vm10, %v704_v40, -inf  ;;  %v815_v51 = vsel %vm800_vm10, %v705_v41, -inf  ;;  %v822_v52 = vsel %vm800_vm10, %v706_v42, -inf }
  0xb8   : > { %v803_v54 = vmax.f32 %v801_v43, %v802_v46  ;;  %v809_v55 = vrot.slane %v808_v50, 4  ;;  %v816_v56 = vrot.slane %v815_v51, 4  ;;  %v823_v57 = vrot.slane %v822_v52, 4 }
  0xb9   : > { %v610_v58 = vmax.f32 %v535_v47, 0.0 }
  0xba   : > { %v804_v59 = vrot.slane %v803_v54, 2  ;;  %v810_v60 = vmax.f32 %v808_v50, %v809_v55  ;;  %v817_v61 = vmax.f32 %v815_v51, %v816_v56  ;;  %v824_v62 = vmax.f32 %v822_v52, %v823_v57 }
  0xbb   : > { %v644_v0 = vsel %vm639_vm9, %v610_v58, -inf  ;;  %v1739_v57 = vunpack.c.l.b16 %v1650_v45 }
  0xbc   : > { %v805_v1 = vmax.f32 %v803_v54, %v804_v59  ;;  %v811_v2 = vrot.slane %v810_v60, 2  ;;  %v818_v3 = vrot.slane %v817_v61, 2  ;;  %v825_v4 = vrot.slane %v824_v62, 2 }
  0xbd   : > { %v645_v6 = vmax.f32 %v643_v63, %v644_v0  ;;  %v537_v7 = vpop.f32.mrf.mxu0  ;;  %v1740_v63 = vunpack.c.l.b16 %v5640_v53 }
  0xbe   : > { %v806_v8 = vrot.slane %v805_v1, 1  ;;  %v812_v9 = vmax.f32 %v810_v60, %v811_v2  ;;  %v819_v10 = vmax.f32 %v817_v61, %v818_v3  ;;  %v826_v11 = vmax.f32 %v824_v62, %v825_v4  ;;  %v5209_v3 = vld [vmem:[%s5559_s16 + $0x58] sm:$0xff] }
  0xbf   : > { %v707_v12 = vrot.slane %v645_v6, 2  ;;  %v708_v13 = vrot.slane %v645_v6, 4  ;;  %v709_v14 = vrot.slane %v645_v6, 6  ;;  %v829_v15 = vsel %vm800_vm10, %v645_v6, -inf }
  0xc0   : > { %v807_v16 = vmax.f32 %v805_v1, %v806_v8  ;;  %v813_v17 = vrot.slane %v812_v9, 1  ;;  %v820_v18 = vrot.slane %v819_v10, 1  ;;  %v827_v19 = vrot.slane %v826_v11, 1  ;;  %4749 = vmatmul.msk.bf16.gmra.mxu0 %vm462_vm2, %v5208_v5 }
  0xc1   : > { %v830_v20 = vrot.slane %v829_v15, 4  ;;  %v836_v22 = vsel %vm800_vm10, %v707_v12, -inf  ;;  %v843_v23 = vsel %vm800_vm10, %v708_v13, -inf  ;;  %v850_v25 = vsel %vm800_vm10, %v709_v14, -inf  ;;  %v1265_v13 = vld [vmem:[#allocation2 + $0x10] sm:$0x1] }
  0xc2   : > { %v814_v26 = vmax.f32 %v812_v9, %v813_v17  ;;  %v821_v27 = vmax.f32 %v819_v10, %v820_v18  ;;  %v1321_v29 = vpack.c.bf16 %v807_v16, %v807_v16  ;;  %v837_v32 = vrot.slane %v836_v22, 4  ;;  %v1297_v14 = vld [vmem:[#allocation2 + $0x14] sm:$0x1] }
  0xc3   : > { %v831_v30 = vmax.f32 %v829_v15, %v830_v20  ;;  %v844_v33 = vrot.slane %v843_v23, 4  ;;  %v851_v34 = vrot.slane %v850_v25, 4  ;;  %v828_v35 = vmax.f32 %v826_v11, %v827_v19 }
  0xc4   : > { %v1322_v36 = vpack.c.bf16 %v814_v26, %v814_v26  ;;  %v1323_v37 = vpack.c.bf16 %v821_v27, %v821_v27  ;;  %v838_v39 = vmax.f32 %v836_v22, %v837_v32  ;;  %v1449_v43 = vunpack.c.l.b16 %v1321_v29 }
  0xc5   : > { %v832_v38 = vrot.slane %v831_v30, 2  ;;  %v845_v40 = vmax.f32 %v843_v23, %v844_v33  ;;  %v852_v41 = vmax.f32 %v850_v25, %v851_v34  ;;  %v539_v42 = vpop.f32.mrf.mxu0  ;;  %v1324_v50 = vpack.c.bf16 %v828_v35, %v828_v35 }
  0xc6   : > { %v1450_v44 = vunpack.c.l.b16 %v1322_v36  ;;  %v839_v47 = vrot.slane %v838_v39, 2  ;;  %v1451_v51 = vunpack.c.l.b16 %v1323_v37  ;;  %v538_v59 = vadd.f32 %v5586_v21, %v537_v7  ;;  %v1605_v36 = vld [vmem:[#allocation2 + $0xc] sm:$0x1] }
  0xc7   : > { %v833_v46 = vmax.f32 %v831_v30, %v832_v38  ;;  %v846_v48 = vrot.slane %v845_v40, 2  ;;  %v853_v49 = vrot.slane %v852_v41, 2  ;;  %v1452_v0 = vunpack.c.l.b16 %v1324_v50 }
  0xc8   : > { %v1514_v52 = vsel %vm1513_vm11, %v1450_v44, %v1449_v43  ;;  %v840_v55 = vmax.f32 %v838_v39, %v839_v47  ;;  %v1755_v9 = vpack.c.b16 %v1740_v63, %v1739_v57  ;;  %v611_v7 = vmax.f32 %v538_v59, 0.0 }
  0xc9   : > { %v834_v54 = vrot.slane %v833_v46, 1  ;;  %v847_v56 = vmax.f32 %v845_v40, %v846_v48  ;;  %v854_v58 = vmax.f32 %v852_v41, %v853_v49  ;;  %v1516_v1 = vsel %vm1515_vm12, %v1451_v51, %v1514_v52 }
  0xca   : > { %v841_v61 = vrot.slane %v840_v55, 1  ;;  %v540_v11 = vadd.f32 %v5586_v21, %v539_v42  ;;  %v1266_v18 = vsel %vm5602_vm8, 0, %v1265_v13  ;;  %v1518_v19 = vsel %vm1517_vm13, %v1452_v0, %v1516_v1  ;;  %v1602_v42 = vld [vmem:[#allocation2 + $0x8] sm:$0xf] }
  0xcb   : > { %v835_v60 = vmax.f32 %v833_v46, %v834_v54  ;;  %v848_v62 = vrot.slane %v847_v56, 1  ;;  %v855_v2 = vrot.slane %v854_v58, 1  ;;  %1267 = vst [vmem:[#allocation2 + $0x10] sm:$0x1] %v1266_v18  ;;  %v1298_v23 = vsel %vm5592_vm6, 0, %v1297_v14 }
  0xcc   : > { %v842_v4 = vmax.f32 %v840_v55, %v841_v61  ;;  %1299 = vst [vmem:[#allocation2 + $0x14] sm:$0x1] %v1298_v23  ;;  %v1766_v29 = vshll.u32 %v1755_v9, 16  ;;  %v646_v32 = vsel %vm639_vm9, %v611_v7, -inf  ;;  %v1764_v34 = vshrl.u32 %v1755_v9, 16 }
  0xcd   : > { %v849_v5 = vmax.f32 %v847_v56, %v848_v62  ;;  %v1325_v6 = vpack.c.bf16 %v835_v60, %v835_v60  ;;  %v542_v8 = vpop.f32.mrf.mxu0  ;;  %v856_v10 = vmax.f32 %v854_v58, %v855_v2  ;;  %v612_v43 = vmax.f32 %v540_v11, 0.0  ;;  %v3934_v13 = vld [vmem:[#allocation4] sm:$0x2] }
  0xce   : > { %v543_v12 = vadd.f32 %v5586_v21, %v542_v8  ;;  %v1326_v15 = vpack.c.bf16 %v842_v4, %v842_v4  ;;  %v1768_v38 = vrot.slane %v1766_v29, 1 }
  0xcf   : > { %v1327_v16 = vpack.c.bf16 %v849_v5, %v849_v5  ;;  %v1453_v17 = vunpack.c.l.b16 %v1325_v6  ;;  %v1328_v20 = vpack.c.bf16 %v856_v10, %v856_v10  ;;  %v649_v62 = vsel %vm639_vm9, %v612_v43, -inf  ;;  %v3919_v5 = vld [vmem:[#allocation4] sm:$0x1]  ;;  %v5210_v6 = vld [vmem:[%s5559_s16 + $0x60] sm:$0xff] }
  0xd0   : > { %v613_v22 = vmax.f32 %v543_v12, 0.0  ;;  %4750 = vmatmul.msk.bf16.gmra.mxu0 %vm462_vm2, %v5209_v3  ;;  %v1454_v25 = vunpack.c.l.b16 %v1326_v15  ;;  %v1769_v52 = vor.u32 %v1768_v38, %v1764_v34  ;;  %v3920_v11 = vsel %vm5602_vm8, 0, %v3919_v5  ;;  %v3928_v12 = vld [vmem:[#allocation4 + $0x6] sm:$0x1] }
  0xd1   : > { %v1455_v26 = vunpack.c.l.b16 %v1327_v16  ;;  %v1520_v27 = vsel %vm1519_vm14, %v1453_v17, %v1518_v19  ;;  %v1456_v30 = vunpack.c.l.b16 %v1328_v20  ;;  %3921 = vst [vmem:[#allocation4] sm:$0x1] %v3920_v11  ;;  %v3929_v16 = vsel %vm5602_vm8, 0, %v3928_v12 }
  0xd2   : > { %v647_v33 = vsel %vm639_vm9, %v613_v22, -inf  ;;  %v1522_v35 = vsel %vm1521_vm15, %v1454_v25, %v1520_v27  ;;  %1819 = vrot.lane.b32.xlu1 %v1769_v52, %s5446_s22  ;;  %v3935_v17 = vsel %vm5680_vm4, 0, %v3934_v13  ;;  %3930 = vst [vmem:[#allocation4 + $0x6] sm:$0x1] %v3929_v16 }
  0xd3   : > { %v648_v37 = vmax.f32 %v646_v32, %v647_v33  ;;  %v1524_v39 = vsel %vm1523_vm0, %v1455_v26, %v1522_v35  ;;  %v1568_v40 = vpack.c.b16 %v1456_v30, %v1456_v30  ;;  %3936 = vst [vmem:[#allocation4] sm:$0x2] %v3935_v17 }
  0xd4   : > { %v1567_v44 = vpack.c.b16 %v1524_v39, %v1524_v39 }
  0xd5   : > { %v710_v45 = vrot.slane %v648_v37, 2  ;;  %v711_v46 = vrot.slane %v648_v37, 4  ;;  %v712_v47 = vrot.slane %v648_v37, 6  ;;  %v544_v48 = vpop.f32.mrf.mxu0  ;;  %v1606_v49 = vsel %vm5602_vm8, %v1568_v40, %v1605_v36 }
  0xd6   : > { %v857_v50 = vsel %vm800_vm10, %v648_v37, -inf  ;;  %v545_v51 = vadd.f32 %v5586_v21, %v544_v48  ;;  %v1603_v54 = vsel %vm5663_vm1, %v1567_v44, %v1602_v42  ;;  %1607 = vst [vmem:[#allocation2 + $0xc] sm:$0x1] %v1606_v49 }
  0xd7   : > { %v858_v55 = vrot.slane %v857_v50, 4  ;;  %v864_v56 = vsel %vm800_vm10, %v710_v45, -inf  ;;  %v871_v57 = vsel %vm800_vm10, %v711_v46, -inf  ;;  %1604 = vst [vmem:[#allocation2 + $0x8] sm:$0xf] %v1603_v54  ;;  %v878_v60 = vsel %vm800_vm10, %v712_v47, -inf }
  0xd8   : > { %v865_v58 = vrot.slane %v864_v56, 4  ;;  %v872_v59 = vrot.slane %v871_v57, 4  ;;  %v614_v61 = vmax.f32 %v545_v51, 0.0  ;;  %v879_v1 = vrot.slane %v878_v60, 4 }
  0xd9   : > { %v859_v0 = vmax.f32 %v857_v50, %v858_v55 }
  0xda   : > { %v866_v2 = vmax.f32 %v864_v56, %v865_v58  ;;  %v873_v3 = vmax.f32 %v871_v57, %v872_v59  ;;  %v650_v4 = vsel %vm639_vm9, %v614_v61, -inf  ;;  %v880_v9 = vmax.f32 %v878_v60, %v879_v1  ;;  %v3943_v60 = vld [vmem:[#allocation4 + $0x6] sm:$0x2] }
  0xdb   : > { %v860_v8 = vrot.slane %v859_v0, 2  ;;  %v651_v10 = vmax.f32 %v649_v62, %v650_v4  ;;  %v3944_v11 = vsel %vm5680_vm4, 0, %v3943_v60  ;;  %v1611_v60 = vld [vmem:[#allocation2 + $0x14] sm:$0x1] }
  0xdc   : > { %v867_v14 = vrot.slane %v866_v2, 2  ;;  %v874_v15 = vrot.slane %v873_v3, 2  ;;  %v881_v19 = vrot.slane %v880_v9, 2  ;;  %3945 = vst [vmem:[#allocation4 + $0x6] sm:$0x2] %v3944_v11 }
  0xdd   : > { %v861_v18 = vmax.f32 %v859_v0, %v860_v8  ;;  %v713_v20 = vrot.slane %v651_v10, 2  ;;  %v714_v22 = vrot.slane %v651_v10, 4  ;;  %v5690_v23 = vpop.f32.mrf.mxu0  ;;  %v715_v27 = vrot.slane %v651_v10, 6  ;;  %v5700_v12 = vld [vmem:[#allocation2 + $0xc] sm:$0x1] }
  0xde   : > { %v868_v25 = vmax.f32 %v866_v2, %v867_v14  ;;  %v875_v26 = vmax.f32 %v873_v3, %v874_v15  ;;  %v885_v29 = vsel %vm800_vm10, %v651_v10, -inf  ;;  %v882_v32 = vmax.f32 %v880_v9, %v881_v19  ;;  %v1651_v19 = vld [vmem:[#allocation2 + $0x8] sm:$0xf] }
  0xdf   : > { %v862_v30 = vrot.slane %v861_v18, 1  ;;  %v886_v33 = vrot.slane %v885_v29, 4  ;;  %v892_v34 = vsel %vm800_vm10, %v713_v20, -inf  ;;  %v899_v38 = vsel %vm800_vm10, %v714_v22, -inf }
  0xe0   : > { %v869_v35 = vrot.slane %v868_v25, 1  ;;  %v876_v36 = vrot.slane %v875_v26, 1  ;;  %v893_v37 = vrot.slane %v892_v34, 4  ;;  %4751 = vmatmul.msk.bf16.gmra.mxu0 %vm462_vm2, %v5210_v6  ;;  %v883_v40 = vrot.slane %v882_v32, 1  ;;  %v1674_v6 = vld [vmem:[#allocation2 + $0x8] sm:$0xf] }
  0xe1   : > { %v863_v39 = vmax.f32 %v861_v18, %v862_v30  ;;  %v887_v42 = vmax.f32 %v885_v29, %v886_v33  ;;  %v900_v43 = vrot.slane %v899_v38, 4  ;;  %v906_v47 = vsel %vm800_vm10, %v715_v27, -inf  ;;  %v5704_v27 = vld [vmem:[#allocation2 + $0xc] sm:$0x1] }
  0xe2   : > { %v870_v44 = vmax.f32 %v868_v25, %v869_v35  ;;  %v877_v45 = vmax.f32 %v875_v26, %v876_v36  ;;  %v894_v46 = vmax.f32 %v892_v34, %v893_v37  ;;  %v884_v48 = vmax.f32 %v882_v32, %v883_v40  ;;  %v5211_v34 = vld [vmem:[%s5559_s16 + $0x68] sm:$0xff]  ;;  %s5400_s16 = scalar_lea.hbm %s6957_s9, 2 }
  0xe3   : > { %v1329_v49 = vpack.c.bf16 %v863_v39, %v863_v39  ;;  %v888_v50 = vrot.slane %v887_v42, 2  ;;  %v901_v51 = vmax.f32 %v899_v38, %v900_v43  ;;  %v907_v56 = vrot.slane %v906_v47, 4 }
  0xe4   : > { %v1330_v52 = vpack.c.bf16 %v870_v44, %v870_v44  ;;  %v1331_v54 = vpack.c.bf16 %v877_v45, %v877_v45  ;;  %v895_v55 = vrot.slane %v894_v46, 2  ;;  %v1332_v57 = vpack.c.bf16 %v884_v48, %v884_v48 }
  0xe5   : > { %v889_v58 = vmax.f32 %v887_v42, %v888_v50  ;;  %v902_v59 = vrot.slane %v901_v51, 2  ;;  %v549_v61 = vpop.f32.mrf.mxu0  ;;  %v1457_v62 = vunpack.c.l.b16 %v1329_v49  ;;  %v908_v2 = vmax.f32 %v906_v47, %v907_v56  ;;  %v1300_v50 = vld [vmem:[#allocation2 + $0x1c] sm:$0x1] }
  0xe6   : > { %v1458_v0 = vunpack.c.l.b16 %v1330_v52  ;;  %v896_v1 = vmax.f32 %v894_v46, %v895_v55  ;;  %v1459_v3 = vunpack.c.l.b16 %v1331_v54  ;;  %v1460_v15 = vunpack.c.l.b16 %v1332_v57  ;;  %v1268_v46 = vld [vmem:[#allocation2 + $0x18] sm:$0x1]  ;;  %v1608_v52 = vld [vmem:[#allocation2 + $0x10] sm:$0xf] }
  0xe7   : > { %v890_v4 = vrot.slane %v889_v58, 1  ;;  %v903_v5 = vmax.f32 %v901_v51, %v902_v59  ;;  %v909_v10 = vrot.slane %v908_v2, 2  ;;  %v1875_v18 = vunpack.c.l.b16 %v1674_v6 }
  0xe8   : > { %v1525_v8 = vsel %vm1513_vm11, %v1458_v0, %v1457_v62  ;;  %v897_v9 = vrot.slane %v896_v1, 1  ;;  %v1915_v26 = vunpack.c.l.b16 %v5700_v12  ;;  %v548_v32 = vadd.f32 %v5586_v21, %v5690_v23 }
  0xe9   : > { %v891_v13 = vmax.f32 %v889_v58, %v890_v4  ;;  %v904_v14 = vrot.slane %v903_v5, 1  ;;  %v910_v17 = vmax.f32 %v908_v2, %v909_v10  ;;  %v1526_v20 = vsel %vm1515_vm12, %v1459_v3, %v1525_v8 }
  0xea   : > { %v898_v16 = vmax.f32 %v896_v1, %v897_v9  ;;  %v1883_v33 = vpack.c.b16 %v1875_v18, %v1875_v18  ;;  %v5711_v37 = vpack.c.b16 %v1915_v26, %v1875_v18  ;;  %v1741_v38 = vunpack.c.l.b16 %v1651_v19 }
  0xeb   : > { %v905_v22 = vmax.f32 %v903_v5, %v904_v14  ;;  %v1333_v25 = vpack.c.bf16 %v891_v13, %v891_v13  ;;  %v911_v29 = vrot.slane %v910_v17, 1  ;;  %v1527_v40 = vsel %vm1517_vm13, %v1460_v15, %v1526_v20 }
  0xec   : > { %v1334_v30 = vpack.c.bf16 %v898_v16, %v898_v16  ;;  %1891 = vrot.lane.b32.xlu0 %v1883_v33, %s5446_s22  ;;  %v1742_v44 = vunpack.c.l.b16 %v5704_v27  ;;  %v615_v54 = vmax.f32 %v548_v32, 0.0  ;;  %v1269_v56 = vsel %vm5602_vm8, 0, %v1268_v46 }
  0xed   : > { %v1335_v35 = vpack.c.bf16 %v905_v22, %v905_v22  ;;  %v1461_v36 = vunpack.c.l.b16 %v1333_v25  ;;  %v552_v39 = vpop.f32.mrf.mxu0  ;;  %v912_v42 = vmax.f32 %v910_v17, %v911_v29  ;;  %1270 = vst [vmem:[#allocation2 + $0x18] sm:$0x1] %v1269_v56  ;;  %v550_v62 = vadd.f32 %v5586_v21, %v549_v61 }
  0xee   : > { %v1462_v43 = vunpack.c.l.b16 %v1334_v30  ;;  %v1756_v49 = vpack.c.b16 %v1742_v44, %v1741_v38  ;;  %v553_v55 = vadd.f32 %v5586_v21, %v552_v39  ;;  %v1301_v1 = vsel %vm5592_vm6, 0, %v1300_v50 }
  0xef   : > { %v1463_v45 = vunpack.c.l.b16 %v1335_v35  ;;  %v1528_v23 = vsel %vm1519_vm14, %v1461_v36, %v1527_v40  ;;  %v1336_v47 = vpack.c.bf16 %v912_v42, %v912_v42  ;;  %1302 = vst [vmem:[#allocation2 + $0x1c] sm:$0x1] %v1301_v1  ;;  %v652_v6 = vsel %vm639_vm9, %v615_v54, -inf }
  0xf0   : > { %v1529_v48 = vsel %vm1521_vm15, %v1462_v43, %v1528_v23  ;;  %4752 = vmatmul.msk.bf16.gmra.mxu0 %vm462_vm2, %v5211_v34  ;;  %v1773_v59 = vshll.u32 %v1756_v49, 16  ;;  %v617_v0 = vmax.f32 %v553_v55, 0.0  ;;  %v1771_v4 = vshrl.u32 %v1756_v49, 16 }
  0xf1   : > { %v1530_v51 = vsel %vm1523_vm0, %v1463_v45, %v1529_v48  ;;  %v1464_v57 = vunpack.c.l.b16 %v1336_v47  ;;  %v616_v14 = vmax.f32 %v550_v62, 0.0  ;;  %v597_v45 = vpop.f32.mrf.mxu2  ;;  %vm2992_vm2 = vcmask 518144  }
  0xf2   : > { %v1569_v58 = vpack.c.b16 %v1530_v51, %v1530_v51  ;;  %v1775_v5 = vrot.slane %v1773_v59, 1  ;;  %v653_v8 = vsel %vm639_vm9, %v617_v0, -inf  ;;  %v5743_v46 = vadd.f32 %v5586_v21, %v597_v45 }
  0xf3   : > { %v1570_v2 = vpack.c.b16 %v1464_v57, %v1464_v57  ;;  %v654_v11 = vmax.f32 %v652_v6, %v653_v8  ;;  %v655_v35 = vsel %vm639_vm9, %v616_v14, -inf }
  0xf4   : > { %v1609_v3 = vsel %vm5663_vm1, %v1569_v58, %v1608_v52  ;;  %v1776_v10 = vor.u32 %v1775_v5, %v1771_v4 }
  0xf5   : > { %1610 = vst [vmem:[#allocation2 + $0x10] sm:$0xf] %v1609_v3  ;;  %v554_v9 = vpop.f32.mrf.mxu0  ;;  %v1612_v61 = vsel %vm5602_vm8, %v1570_v2, %v1611_v60  ;;  %v716_v15 = vrot.slane %v654_v11, 2  ;;  %v717_v16 = vrot.slane %v654_v11, 4  ;;  %v718_v17 = vrot.slane %v654_v11, 6 }
  0xf6   : > { %v555_v13 = vadd.f32 %v5586_v21, %v554_v9  ;;  %1613 = vst [vmem:[#allocation2 + $0x14] sm:$0x1] %v1612_v61  ;;  %1821 = vrot.lane.b32.xlu1 %v1776_v10, %s5446_s22  ;;  %v913_v18 = vsel %vm800_vm10, %v654_v11, -inf }
  0xf7   : > { %v914_v19 = vrot.slane %v913_v18, 4  ;;  %v920_v22 = vsel %vm800_vm10, %v716_v15, -inf  ;;  %v927_v25 = vsel %vm800_vm10, %v717_v16, -inf  ;;  %v934_v29 = vsel %vm800_vm10, %v718_v17, -inf }
  0xf8   : > { %v618_v20 = vmax.f32 %v555_v13, 0.0  ;;  %v921_v32 = vrot.slane %v920_v22, 4  ;;  %v928_v33 = vrot.slane %v927_v25, 4  ;;  %v935_v34 = vrot.slane %v934_v29, 4 }
  0xf9   : > { %v915_v30 = vmax.f32 %v913_v18, %v914_v19 }
  0xfa   : > { %v656_v36 = vsel %vm639_vm9, %v618_v20, -inf  ;;  %v922_v39 = vmax.f32 %v920_v22, %v921_v32  ;;  %v929_v40 = vmax.f32 %v927_v25, %v928_v33  ;;  %v936_v42 = vmax.f32 %v934_v29, %v935_v34 }
  0xfb   : > { %v916_v38 = vrot.slane %v915_v30, 2  ;;  %v657_v23 = vmax.f32 %v655_v35, %v656_v36 }
  0xfc   : > { %v923_v48 = vrot.slane %v922_v39, 2  ;;  %v930_v49 = vrot.slane %v929_v40, 2  ;;  %v937_v50 = vrot.slane %v936_v42, 2  ;;  %v1675_v10 = vld [vmem:[#allocation2 + $0x10] sm:$0xf] }
  0xfd   : > { %v557_v43 = vpop.f32.mrf.mxu0  ;;  %v917_v47 = vmax.f32 %v915_v30, %v916_v38  ;;  %v719_v51 = vrot.slane %v657_v23, 2  ;;  %v720_v52 = vrot.slane %v657_v23, 4  ;;  %v721_v54 = vrot.slane %v657_v23, 6  ;;  %v1652_v36 = vld [vmem:[#allocation2 + $0x10] sm:$0xf] }
  0xfe   : > { %v941_v55 = vsel %vm800_vm10, %v657_v23, -inf  ;;  %v924_v57 = vmax.f32 %v922_v39, %v923_v48  ;;  %v931_v58 = vmax.f32 %v929_v40, %v930_v49  ;;  %v938_v59 = vmax.f32 %v936_v42, %v937_v50  ;;  %v5752_v49 = vld [vmem:[#allocation2 + $0x14] sm:$0x1]  ;;  %v5754_v50 = vpop.f32.mrf.mxu2 }
  0xff   : > { %v918_v56 = vrot.slane %v917_v47, 1  ;;  %v942_v60 = vrot.slane %v941_v55, 4  ;;  %v948_v62 = vsel %vm800_vm10, %v719_v51, -inf  ;;  %v955_v0 = vsel %vm800_vm10, %v720_v52, -inf }
 0x100   : > { %v962_v1 = vsel %vm800_vm10, %v721_v54, -inf  ;;  %v925_v3 = vrot.slane %v924_v57, 1  ;;  %v932_v4 = vrot.slane %v931_v58, 1  ;;  %v939_v5 = vrot.slane %v938_v59, 1 }
 0x101   : > { %v919_v2 = vmax.f32 %v917_v47, %v918_v56  ;;  %v943_v6 = vmax.f32 %v941_v55, %v942_v60  ;;  %v949_v8 = vrot.slane %v948_v62, 4  ;;  %v956_v9 = vrot.slane %v955_v0, 4 }
 0x102   : > { %v963_v61 = vrot.slane %v962_v1, 4  ;;  %v926_v11 = vmax.f32 %v924_v57, %v925_v3  ;;  %v933_v13 = vmax.f32 %v931_v58, %v932_v4  ;;  %v940_v14 = vmax.f32 %v938_v59, %v939_v5 }
 0x103   : > { %v1337_v15 = vpack.c.bf16 %v919_v2, %v919_v2  ;;  %v944_v17 = vrot.slane %v943_v6, 2  ;;  %v950_v18 = vmax.f32 %v948_v62, %v949_v8  ;;  %v957_v19 = vmax.f32 %v955_v0, %v956_v9 }
 0x104   : > { %v964_v20 = vmax.f32 %v962_v1, %v963_v61  ;;  %v1338_v22 = vpack.c.bf16 %v926_v11, %v926_v11  ;;  %v1339_v25 = vpack.c.bf16 %v933_v13, %v933_v13  ;;  %v558_v29 = vadd.f32 %v5586_v21, %v557_v43 }
 0x105   : > { %v559_v16 = vpop.f32.mrf.mxu0  ;;  %v5750_v30 = vunpack.c.l.b16 %v1675_v10  ;;  %v945_v32 = vmax.f32 %v943_v6, %v944_v17  ;;  %v951_v33 = vrot.slane %v950_v18, 2  ;;  %v958_v34 = vrot.slane %v957_v19, 2 }
 0x106   : > { %v965_v35 = vrot.slane %v964_v20, 2  ;;  %v1340_v38 = vpack.c.bf16 %v940_v14, %v940_v14  ;;  %v1465_v39 = vunpack.c.l.b16 %v1337_v15  ;;  %v1466_v40 = vunpack.c.l.b16 %v1338_v22  ;;  %v1271_v14 = vld [vmem:[#allocation2 + $0x20] sm:$0x1] }
 0x107   : > { %v1467_v42 = vunpack.c.l.b16 %v1339_v25  ;;  %v946_v45 = vrot.slane %v945_v32, 1  ;;  %v952_v23 = vmax.f32 %v950_v18, %v951_v33  ;;  %v959_v47 = vmax.f32 %v957_v19, %v958_v34  ;;  %v1303_v19 = vld [vmem:[#allocation2 + $0x24] sm:$0x1] }
 0x108   : > { %v966_v48 = vmax.f32 %v964_v20, %v965_v35  ;;  %v1531_v43 = vsel %vm1513_vm11, %v1466_v40, %v1465_v39  ;;  %v619_v51 = vmax.f32 %v558_v29, 0.0  ;;  %v1884_v52 = vpack.c.b16 %v5750_v30, %v5750_v30 }
 0x109   : > { %v1743_v54 = vunpack.c.l.b16 %v1652_v36  ;;  %v947_v55 = vmax.f32 %v945_v32, %v946_v45  ;;  %v953_v56 = vrot.slane %v952_v23, 1  ;;  %v960_v57 = vrot.slane %v959_v47, 1  ;;  %v602_v45 = vpop.f32.mrf.mxu2 }
 0x10a   : > { %v635_v58 = vmax.f32 %v5743_v46, 0.0  ;;  %v1532_v59 = vsel %vm1515_vm12, %v1467_v42, %v1531_v43  ;;  %v967_v60 = vrot.slane %v966_v48, 1  ;;  %1893 = vrot.lane.b32.xlu0 %v1884_v52, %s5446_s22  ;;  %v5763_v62 = vadd.f32 %v5586_v21, %v559_v16 }
 0x10b   : > { %v1744_v0 = vunpack.c.l.b16 %v5752_v49  ;;  %v1468_v2 = vunpack.c.l.b16 %v1340_v38  ;;  %v954_v3 = vmax.f32 %v952_v23, %v953_v56  ;;  %v961_v4 = vmax.f32 %v959_v47, %v960_v57  ;;  %v1617_v38 = vld [vmem:[#allocation2 + $0x1c] sm:$0x1] }
 0x10c   : > { %v1341_v5 = vpack.c.bf16 %v947_v55, %v947_v55  ;;  %v968_v6 = vmax.f32 %v966_v48, %v967_v60  ;;  %v658_v8 = vsel %vm639_vm9, %v619_v51, -inf  ;;  %v620_v16 = vmax.f32 %v5763_v62, 0.0  ;;  %v1614_v48 = vld [vmem:[#allocation2 + $0x18] sm:$0xf] }
 0x10d   : > { %v562_v1 = vpop.f32.mrf.mxu0  ;;  %v1757_v46 = vpack.c.b16 %v1744_v0, %v1743_v54  ;;  %v1533_v61 = vsel %vm1517_vm13, %v1468_v2, %v1532_v59  ;;  %v1342_v10 = vpack.c.bf16 %v954_v3, %v954_v3  ;;  %v1343_v11 = vpack.c.bf16 %v961_v4, %v961_v4 }
 0x10e   : > { %v563_v9 = vadd.f32 %v5586_v21, %v562_v1  ;;  %v1469_v13 = vunpack.c.l.b16 %v1341_v5  ;;  %v1344_v15 = vpack.c.bf16 %v968_v6, %v968_v6  ;;  %v1272_v35 = vsel %vm5602_vm8, 0, %v1271_v14 }
 0x10f   : > { %v1780_v17 = vshll.u32 %v1757_v46, 16  ;;  %v1470_v20 = vunpack.c.l.b16 %v1342_v10  ;;  %v1471_v22 = vunpack.c.l.b16 %v1343_v11  ;;  %v1778_v29 = vshrl.u32 %v1757_v46, 16  ;;  %1273 = vst [vmem:[#allocation2 + $0x20] sm:$0x1] %v1272_v35 }
 0x110   : > { %v621_v18 = vmax.f32 %v563_v9, 0.0  ;;  %v1534_v25 = vsel %vm1519_vm14, %v1469_v13, %v1533_v61  ;;  %v1472_v32 = vunpack.c.l.b16 %v1344_v15  ;;  %v682_v39 = vsel %vm639_vm9, %v635_v58, -inf }
 0x111   : > { %v1782_v33 = vrot.slane %v1780_v17, 1  ;;  %v1535_v36 = vsel %vm1521_vm15, %v1470_v20, %v1534_v25  ;;  %v1304_v42 = vsel %vm5592_vm6, 0, %v1303_v19  ;;  %v603_v52 = vadd.f32 %v5586_v21, %v602_v45 }
 0x112   : > { %v659_v34 = vsel %vm639_vm9, %v621_v18, -inf  ;;  %v1536_v23 = vsel %vm1523_vm0, %v1471_v22, %v1535_v36  ;;  %v1572_v47 = vpack.c.b16 %v1472_v32, %v1472_v32  ;;  %1305 = vst [vmem:[#allocation2 + $0x24] sm:$0x1] %v1304_v42  ;;  %v661_v9 = vsel %vm639_vm9, %v620_v16, -inf }
 0x113   : > { %v660_v40 = vmax.f32 %v658_v8, %v659_v34  ;;  %v1783_v43 = vor.u32 %v1782_v33, %v1778_v29  ;;  %v1571_v54 = vpack.c.b16 %v1536_v23, %v1536_v23  ;;  %v637_v62 = vmax.f32 %v603_v52, 0.0 }
 0x114   : > { %v1618_v58 = vsel %vm5602_vm8, %v1572_v47, %v1617_v38  ;;  %v5799_v20 = vadd.f32 %v5586_v21, %v5754_v50 }
 0x115   : > { %v564_v51 = vpop.f32.mrf.mxu0  ;;  %v722_v55 = vrot.slane %v660_v40, 2  ;;  %v723_v56 = vrot.slane %v660_v40, 4  ;;  %v724_v57 = vrot.slane %v660_v40, 6  ;;  %1823 = vrot.lane.b32.xlu0 %v1783_v43, %s5446_s22  ;;  %v969_v59 = vsel %vm800_vm10, %v660_v40, -inf  ;;  %1619 = vst [vmem:[#allocation2 + $0x1c] sm:$0x1] %v1618_v58 }
 0x116   : > { %v565_v60 = vadd.f32 %v5586_v21, %v564_v51  ;;  %v1615_v1 = vsel %vm5663_vm1, %v1571_v54, %v1614_v48  ;;  %v970_v2 = vrot.slane %v969_v59, 4  ;;  %v683_v11 = vsel %vm639_vm9, %v637_v62, -inf }
 0x117   : > { %v976_v3 = vsel %vm800_vm10, %v722_v55, -inf  ;;  %v983_v4 = vsel %vm800_vm10, %v723_v56, -inf  ;;  %1616 = vst [vmem:[#allocation2 + $0x18] sm:$0xf] %v1615_v1  ;;  %v990_v8 = vsel %vm800_vm10, %v724_v57, -inf  ;;  %v5795_v17 = vmax.f32 %v682_v39, %v683_v11 }
 0x118   : > { %v977_v5 = vrot.slane %v976_v3, 4  ;;  %v984_v6 = vrot.slane %v983_v4, 4  ;;  %v622_v46 = vmax.f32 %v565_v60, 0.0  ;;  %v971_v61 = vmax.f32 %v969_v59, %v970_v2 }
 0x119   : > { %v991_v10 = vrot.slane %v990_v8, 4  ;;  %v746_v16 = vrot.slane %v5795_v17, 2  ;;  %v747_v32 = vrot.slane %v5795_v17, 4 }
 0x11a   : > { %v978_v13 = vmax.f32 %v976_v3, %v977_v5  ;;  %v985_v14 = vmax.f32 %v983_v4, %v984_v6  ;;  %v662_v15 = vsel %vm639_vm9, %v622_v46, -inf  ;;  %v972_v18 = vrot.slane %v971_v61, 2 }
 0x11b   : > { %v992_v19 = vmax.f32 %v990_v8, %v991_v10  ;;  %v663_v22 = vmax.f32 %v661_v9, %v662_v15 }
 0x11c   : > { %v979_v25 = vrot.slane %v978_v13, 2  ;;  %v986_v29 = vrot.slane %v985_v14, 2  ;;  %v973_v34 = vmax.f32 %v971_v61, %v972_v18 }
 0x11d   : > { %v5803_v33 = vpop.f32.mrf.mxu0  ;;  %v993_v35 = vrot.slane %v992_v19, 2  ;;  %v725_v36 = vrot.slane %v663_v22, 2  ;;  %v726_v38 = vrot.slane %v663_v22, 4  ;;  %v727_v42 = vrot.slane %v663_v22, 6 }
 0x11e   : > { %v980_v39 = vmax.f32 %v978_v13, %v979_v25  ;;  %v987_v40 = vmax.f32 %v985_v14, %v986_v29  ;;  %v997_v45 = vsel %vm800_vm10, %v663_v22, -inf  ;;  %v974_v21 = vrot.slane %v973_v34, 1 }
 0x11f   : > { %v994_v50 = vmax.f32 %v992_v19, %v993_v35  ;;  %v998_v23 = vrot.slane %v997_v45, 4  ;;  %v1004_v47 = vsel %vm800_vm10, %v725_v36, -inf  ;;  %v1011_v52 = vsel %vm800_vm10, %v726_v38, -inf }
 0x120   : > { %v981_v48 = vrot.slane %v980_v39, 1  ;;  %v988_v43 = vrot.slane %v987_v40, 1  ;;  %v1005_v51 = vrot.slane %v1004_v47, 4  ;;  %v975_v54 = vmax.f32 %v973_v34, %v974_v21 }
 0x121   : > { %v995_v55 = vrot.slane %v994_v50, 1  ;;  %v999_v56 = vmax.f32 %v997_v45, %v998_v23  ;;  %v1012_v57 = vrot.slane %v1011_v52, 4  ;;  %v1018_v62 = vsel %vm800_vm10, %v727_v42, -inf }
 0x122   : > { %v982_v58 = vmax.f32 %v980_v39, %v981_v48  ;;  %v989_v59 = vmax.f32 %v987_v40, %v988_v43  ;;  %v1006_v60 = vmax.f32 %v1004_v47, %v1005_v51  ;;  %v1345_v2 = vpack.c.bf16 %v975_v54, %v975_v54 }
 0x123   : > { %v996_v1 = vmax.f32 %v994_v50, %v995_v55  ;;  %v1000_v3 = vrot.slane %v999_v56, 2  ;;  %v1013_v4 = vmax.f32 %v1011_v52, %v1012_v57  ;;  %v1019_v46 = vrot.slane %v1018_v62, 4 }
 0x124   : > { %v1346_v5 = vpack.c.bf16 %v982_v58, %v982_v58  ;;  %v1347_v6 = vpack.c.bf16 %v989_v59, %v989_v59  ;;  %v1007_v8 = vrot.slane %v1006_v60, 2  ;;  %v1473_v10 = vunpack.c.l.b16 %v1345_v2 }
 0x125   : > { %v5809_v9 = vpop.f32.mrf.mxu0  ;;  %v1348_v61 = vpack.c.bf16 %v996_v1, %v996_v1  ;;  %v1001_v11 = vmax.f32 %v999_v56, %v1000_v3  ;;  %v1014_v13 = vrot.slane %v1013_v4, 2  ;;  %v1020_v19 = vmax.f32 %v1018_v62, %v1019_v46 }
 0x126   : > { %v1474_v14 = vunpack.c.l.b16 %v1346_v5  ;;  %v1475_v15 = vunpack.c.l.b16 %v1347_v6  ;;  %v1008_v18 = vmax.f32 %v1006_v60, %v1007_v8  ;;  %v748_v34 = vrot.slane %v5795_v17, 6 }
 0x127   : > { %v1476_v22 = vunpack.c.l.b16 %v1348_v61  ;;  %v1002_v25 = vrot.slane %v1001_v11, 1  ;;  %v1015_v29 = vmax.f32 %v1013_v4, %v1014_v13  ;;  %v1021_v38 = vrot.slane %v1020_v19, 2  ;;  %v1676_v13 = vld [vmem:[#allocation2 + $0x18] sm:$0xf] }
 0x128   : > { %v1537_v35 = vsel %vm1513_vm11, %v1474_v14, %v1473_v10  ;;  %v1009_v36 = vrot.slane %v1008_v18, 1  ;;  %v1193_v39 = vsel %vm800_vm10, %v5795_v17, -inf  ;;  %v1200_v48 = vsel %vm800_vm10, %v746_v16, -inf }
 0x129   : > { %v1538_v40 = vsel %vm1515_vm12, %v1475_v15, %v1537_v35  ;;  %v1003_v42 = vmax.f32 %v1001_v11, %v1002_v25  ;;  %v1016_v45 = vrot.slane %v1015_v29, 1  ;;  %v1194_v21 = vrot.slane %v1193_v39, 4 }
 0x12a   : > { %v1539_v50 = vsel %vm1517_vm13, %v1476_v22, %v1538_v40  ;;  %v1010_v23 = vmax.f32 %v1008_v18, %v1009_v36  ;;  %v1022_v47 = vmax.f32 %v1020_v19, %v1021_v38  ;;  %v1201_v54 = vrot.slane %v1200_v48, 4  ;;  %v1620_v18 = vld [vmem:[#allocation2 + $0x20] sm:$0xf]  ;;  %v1623_v36 = vld [vmem:[#allocation2 + $0x24] sm:$0x1] }
 0x12b   : > { %v1017_v43 = vmax.f32 %v1015_v29, %v1016_v45  ;;  %v1349_v51 = vpack.c.bf16 %v1003_v42, %v1003_v42  ;;  %v1195_v52 = vmax.f32 %v1193_v39, %v1194_v21  ;;  %v1207_v57 = vsel %vm800_vm10, %v747_v32, -inf  ;;  %v5831_v40 = vld [vmem:[%s6950_s2] ss:$0 sm:$0xff] }
 0x12c   : > { %v1023_v55 = vrot.slane %v1022_v47, 1  ;;  %v1350_v56 = vpack.c.bf16 %v1010_v23, %v1010_v23  ;;  %v1214_v58 = vsel %vm800_vm10, %v748_v34, -inf  ;;  %v1202_v1 = vmax.f32 %v1200_v48, %v1201_v54  ;;  %v1283_v48 = vld [vmem:[#allocation2 + $0x40] sm:$0x1]  ;;  %v1315_v54 = vld [vmem:[#allocation2 + $0x44] sm:$0x1] }
 0x12d   : > { %v1351_v59 = vpack.c.bf16 %v1017_v43, %v1017_v43  ;;  %v1477_v60 = vunpack.c.l.b16 %v1349_v51  ;;  %v1196_v62 = vrot.slane %v1195_v52, 2  ;;  %v5822_v2 = vpop.f32.mrf.mxu0  ;;  %v1208_v4 = vrot.slane %v1207_v57, 4 }
 0x12e   : > { %v1024_v3 = vmax.f32 %v1022_v47, %v1023_v55  ;;  %v1478_v16 = vunpack.c.l.b16 %v1350_v56  ;;  %v1215_v5 = vrot.slane %v1214_v58, 4  ;;  %v1203_v61 = vrot.slane %v1202_v1, 2  ;;  %v604_v47 = vpop.f32.mrf.mxu2 }
 0x12f   : > { %v1479_v6 = vunpack.c.l.b16 %v1351_v59  ;;  %v1540_v8 = vsel %vm1519_vm14, %v1477_v60, %v1539_v50  ;;  %v1197_v46 = vmax.f32 %v1195_v52, %v1196_v62  ;;  %v1209_v10 = vmax.f32 %v1207_v57, %v1208_v4  ;;  %v1653_v59 = vld [vmem:[#allocation2 + $0x18] sm:$0xf] }
 0x130   : > { %v1352_v17 = vpack.c.bf16 %v1024_v3, %v1024_v3  ;;  %v1541_v32 = vsel %vm1521_vm15, %v1478_v16, %v1540_v8  ;;  %v1216_v11 = vmax.f32 %v1214_v58, %v1215_v5  ;;  %v636_v14 = vmax.f32 %v5799_v20, 0.0  ;;  %v5850_v8 = vld [vmem:[#allocation2 + $0x1c] sm:$0x1] }
 0x131   : > { %v1542_v15 = vsel %vm1523_vm0, %v1479_v6, %v1541_v32  ;;  %v1198_v19 = vrot.slane %v1197_v46, 1  ;;  %v1204_v22 = vmax.f32 %v1202_v1, %v1203_v61  ;;  %v1210_v34 = vrot.slane %v1209_v10, 2 }
 0x132   : > { %v1480_v25 = vunpack.c.l.b16 %v1352_v17  ;;  %v1573_v29 = vpack.c.b16 %v1542_v15, %v1542_v15  ;;  %v1217_v35 = vrot.slane %v1216_v11, 2  ;;  %v568_v20 = vadd.f32 %v5831_v40, %v5803_v33 }
 0x133   : > { %v1199_v38 = vmax.f32 %v1197_v46, %v1198_v19  ;;  %v1205_v39 = vrot.slane %v1204_v22, 1  ;;  %v5835_v42 = vunpack.c.l.b16 %v1676_v13  ;;  %v1211_v50 = vmax.f32 %v1209_v10, %v1210_v34 }
 0x134   : > { %v1574_v45 = vpack.c.b16 %v1480_v25, %v1480_v25  ;;  %v1621_v21 = vsel %vm5663_vm1, %v1573_v29, %v1620_v18  ;;  %v1218_v23 = vmax.f32 %v1216_v11, %v1217_v35  ;;  %v685_v33 = vsel %vm639_vm9, %v636_v14, -inf }
 0x135   : > { %1622 = vst [vmem:[#allocation2 + $0x20] sm:$0xf] %v1621_v21  ;;  %v1206_v43 = vmax.f32 %v1204_v22, %v1205_v39  ;;  %v1377_v51 = vpack.c.bf16 %v1199_v38, %v1199_v38  ;;  %v1885_v52 = vpack.c.b16 %v5835_v42, %v5835_v42  ;;  %v574_v55 = vpop.f32.mrf.mxu0  ;;  %v1212_v57 = vrot.slane %v1211_v50, 1 }
 0x136   : > { %v1624_v56 = vsel %vm5602_vm8, %v1574_v45, %v1623_v36  ;;  %v1219_v58 = vrot.slane %v1218_v23, 1  ;;  %v623_v62 = vmax.f32 %v568_v20, 0.0  ;;  %v605_v1 = vadd.f32 %v5831_v40, %v604_v47  ;;  %v5223_v20 = vld [vmem:[%s6951_s3 + $0x38] sm:$0xff] }
 0x137   : > { %1625 = vst [vmem:[#allocation2 + $0x24] sm:$0x1] %v1624_v56  ;;  %v1378_v60 = vpack.c.bf16 %v1206_v43, %v1206_v43  ;;  %1895 = vrot.lane.b32.xlu2 %v1885_v52, %s5446_s22  ;;  %v1284_v3 = vsel %vm5602_vm8, 0, %v1283_v48  ;;  %v1213_v16 = vmax.f32 %v1211_v50, %v1212_v57  ;;  %v1505_v5 = vunpack.c.l.b16 %v1377_v51  ;;  %2687 = vmatpush.bf16.msra.mxu1 %v5223_v20 }
 0x138   : > { %v1220_v4 = vmax.f32 %v1218_v23, %v1219_v58  ;;  %1285 = vst [vmem:[#allocation2 + $0x40] sm:$0x1] %v1284_v3  ;;  %v1316_v6 = vsel %vm5592_vm6, 0, %v1315_v54  ;;  %v638_v61 = vmax.f32 %v605_v1, 0.0  ;;  %v570_v17 = vadd.f32 %v5831_v40, %v5809_v9 }
 0x139   : > { %v1506_v46 = vunpack.c.l.b16 %v1378_v60  ;;  %1317 = vst [vmem:[#allocation2 + $0x44] sm:$0x1] %v1316_v6  ;;  %v1745_v32 = vunpack.c.l.b16 %v1653_v59  ;;  %v1379_v10 = vpack.c.bf16 %v1213_v16, %v1213_v16  ;;  %v1746_v15 = vunpack.c.l.b16 %v5850_v8  ;;  %v5222_v60 = vld [vmem:[%s6951_s3 + $0x30] sm:$0xff] }
 0x13a   : > { %v1380_v11 = vpack.c.bf16 %v1220_v4, %v1220_v4  ;;  %v686_v13 = vsel %vm639_vm9, %v638_v61, -inf  ;;  %v624_v14 = vmax.f32 %v570_v17, 0.0  ;;  %v664_v19 = vsel %vm639_vm9, %v623_v62, -inf  ;;  %v1274_v4 = vld [vmem:[#allocation2 + $0x28] sm:$0x1] }
 0x13b   : > { %v1561_v18 = vsel %vm1513_vm11, %v1506_v46, %v1505_v5  ;;  %v687_v22 = vmax.f32 %v685_v33, %v686_v13  ;;  %v1507_v25 = vunpack.c.l.b16 %v1379_v10  ;;  %v1758_v34 = vpack.c.b16 %v1746_v15, %v1745_v32  ;;  %v1306_v5 = vld [vmem:[#allocation2 + $0x2c] sm:$0x1]  ;;  %2688 = vmatpush.bf16.msra.mxu1 %v5222_v60 }
 0x13c   : > { %v1508_v29 = vunpack.c.l.b16 %v1380_v11  ;;  %v573_v9 = vadd.f32 %v5831_v40, %v5822_v2  ;;  %v575_v39 = vadd.f32 %v5831_v40, %v574_v55  ;;  %v667_v21 = vsel %vm639_vm9, %v624_v14, -inf }
 0x13d   : > { %v749_v35 = vrot.slane %v687_v22, 2  ;;  %v750_v36 = vrot.slane %v687_v22, 4  ;;  %v751_v38 = vrot.slane %v687_v22, 6  ;;  %v1221_v45 = vsel %vm800_vm10, %v687_v22, -inf  ;;  %v5868_v47 = vpop.f32.mrf.mxu0 }
 0x13e   : > { %v1785_v50 = vshrl.u32 %v1758_v34, 16  ;;  %v1787_v23 = vshll.u32 %v1758_v34, 16  ;;  %v1222_v48 = vrot.slane %v1221_v45, 4  ;;  %v1562_v56 = vsel %vm1515_vm12, %v1507_v25, %v1561_v18 }
 0x13f   : > { %v1228_v2 = vsel %vm800_vm10, %v749_v35, -inf  ;;  %v1235_v43 = vsel %vm800_vm10, %v750_v36, -inf  ;;  %v1242_v51 = vsel %vm800_vm10, %v751_v38, -inf  ;;  %v625_v58 = vmax.f32 %v573_v9, 0.0 }
 0x140   : > { %v1229_v52 = vrot.slane %v1228_v2, 4  ;;  %v1236_v54 = vrot.slane %v1235_v43, 4  ;;  %v1243_v55 = vrot.slane %v1242_v51, 4  ;;  %v1789_v33 = vrot.slane %v1787_v23, 1 }
 0x141   : > { %v1223_v57 = vmax.f32 %v1221_v45, %v1222_v48  ;;  %v626_v59 = vmax.f32 %v575_v39, 0.0  ;;  %v665_v46 = vsel %vm639_vm9, %v625_v58, -inf  ;;  %v1275_v17 = vsel %vm5602_vm8, 0, %v1274_v4  ;;  %v5220_v4 = vld [vmem:[%s6951_s3 + $0x20] sm:$0xff] }
 0x142   : > { %v1230_v62 = vmax.f32 %v1228_v2, %v1229_v52  ;;  %v1237_v1 = vmax.f32 %v1235_v43, %v1236_v54  ;;  %v1244_v3 = vmax.f32 %v1242_v51, %v1243_v55  ;;  %v1790_v16 = vor.u32 %v1789_v33, %v1785_v50  ;;  %1276 = vst [vmem:[#allocation2 + $0x28] sm:$0x1] %v1275_v17  ;;  %v5221_v52 = vld [vmem:[%s6951_s3 + $0x28] sm:$0xff] }
 0x143   : > { %v1224_v6 = vrot.slane %v1223_v57, 2  ;;  %v668_v61 = vsel %vm639_vm9, %v626_v59, -inf  ;;  %v666_v13 = vmax.f32 %v664_v19, %v665_v46  ;;  %v1563_v14 = vsel %vm1517_vm13, %v1508_v29, %v1562_v56  ;;  %2689 = vmatpush.bf16.msra.mxu1 %v5221_v52  ;;  %v5911_v52 = vld [vmem:[#allocation2 + $0x8] sm:$0xe] }
 0x144   : > { %v1231_v32 = vrot.slane %v1230_v62, 2  ;;  %v1238_v10 = vrot.slane %v1237_v1, 2  ;;  %v1245_v11 = vrot.slane %v1244_v3, 2  ;;  %1825 = vrot.lane.b32.xlu1 %v1790_v16, %s5446_s22  ;;  %v5883_v22 = vmax.f32 %v667_v21, %v668_v61 }
 0x145   : > { %v1225_v18 = vmax.f32 %v1223_v57, %v1224_v6  ;;  %v1307_v25 = vsel %vm5592_vm6, 0, %v1306_v5  ;;  %v728_v36 = vrot.slane %v666_v13, 2  ;;  %v729_v39 = vrot.slane %v666_v13, 4  ;;  %v5888_v48 = vpop.f32.mrf.mxu0 }
 0x146   : > { %v1232_v34 = vmax.f32 %v1230_v62, %v1231_v32  ;;  %v1239_v9 = vmax.f32 %v1237_v1, %v1238_v10  ;;  %v1246_v35 = vmax.f32 %v1244_v3, %v1245_v11  ;;  %1308 = vst [vmem:[#allocation2 + $0x2c] sm:$0x1] %v1307_v25  ;;  %v730_v20 = vrot.slane %v666_v13, 6 }
 0x147   : > { %v1226_v38 = vrot.slane %v1225_v18, 1  ;;  %v1025_v45 = vsel %vm800_vm10, %v666_v13, -inf  ;;  %v1032_v2 = vsel %vm800_vm10, %v728_v36, -inf  ;;  %v1039_v43 = vsel %vm800_vm10, %v729_v39, -inf  ;;  %2690 = vmatpush.bf16.msra.mxu1 %v5220_v4  ;;  %v5218_v4 = vld [vmem:[%s6951_s3 + $0x10] sm:$0xff] }
 0x148   : > { %v1233_v19 = vrot.slane %v1232_v34, 1  ;;  %v1240_v50 = vrot.slane %v1239_v9, 1  ;;  %v1247_v23 = vrot.slane %v1246_v35, 1  ;;  %v1026_v29 = vrot.slane %v1025_v45, 4 }
 0x149   : > { %v1227_v21 = vmax.f32 %v1225_v18, %v1226_v38  ;;  %v1046_v51 = vsel %vm800_vm10, %v730_v20, -inf  ;;  %v1033_v58 = vrot.slane %v1032_v2, 4  ;;  %v1040_v59 = vrot.slane %v1039_v43, 4  ;;  %v1647_v18 = vld [vmem:[#allocation2 + $0x44] sm:$0x1] }
 0x14a   : > { %v1234_v54 = vmax.f32 %v1232_v34, %v1233_v19  ;;  %v1241_v55 = vmax.f32 %v1239_v9, %v1240_v50  ;;  %v1248_v33 = vmax.f32 %v1246_v35, %v1247_v23  ;;  %v1027_v56 = vmax.f32 %v1025_v45, %v1026_v29  ;;  %v1644_v45 = vld [vmem:[#allocation2 + $0x40] sm:$0xf] }
 0x14b   : > { %v1381_v57 = vpack.c.bf16 %v1227_v21, %v1227_v21  ;;  %v1047_v60 = vrot.slane %v1046_v51, 4  ;;  %v1034_v6 = vmax.f32 %v1032_v2, %v1033_v58  ;;  %v1041_v46 = vmax.f32 %v1039_v43, %v1040_v59 }
 0x14c   : > { %v1382_v62 = vpack.c.bf16 %v1234_v54, %v1234_v54  ;;  %v1383_v1 = vpack.c.bf16 %v1241_v55, %v1241_v55  ;;  %v1384_v3 = vpack.c.bf16 %v1248_v33, %v1248_v33  ;;  %v1028_v16 = vrot.slane %v1027_v56, 2 }
 0x14d   : > { %v1509_v5 = vunpack.c.l.b16 %v1381_v57  ;;  %v1048_v61 = vmax.f32 %v1046_v51, %v1047_v60  ;;  %v1035_v25 = vrot.slane %v1034_v6, 2  ;;  %v1042_v34 = vrot.slane %v1041_v46, 2  ;;  %v5909_v51 = vpop.f32.mrf.mxu0 }
 0x14e   : > { %v1510_v17 = vunpack.c.l.b16 %v1382_v62  ;;  %v1511_v32 = vunpack.c.l.b16 %v1383_v1  ;;  %v1512_v10 = vunpack.c.l.b16 %v1384_v3  ;;  %v1029_v11 = vmax.f32 %v1027_v56, %v1028_v16 }
 0x14f   : > { %v1564_v13 = vsel %vm1519_vm14, %v1509_v5, %v1563_v14  ;;  %v1049_v9 = vrot.slane %v1048_v61, 2  ;;  %v731_v39 = vrot.slane %v5883_v22, 2  ;;  %v1036_v19 = vmax.f32 %v1034_v6, %v1035_v25  ;;  %v5219_v14 = vld [vmem:[%s6951_s3 + $0x18] sm:$0xff] }
 0x150   : > { %v1565_v35 = vsel %vm1521_vm15, %v1510_v17, %v1564_v13  ;;  %v1582_v36 = vpack.c.b16 %v1512_v10, %v1512_v10  ;;  %v1030_v38 = vrot.slane %v1029_v11, 1  ;;  %v1043_v50 = vmax.f32 %v1041_v46, %v1042_v34  ;;  %2691 = vmatpush.bf16.msra.mxu1 %v5219_v14  ;;  %v1677_v10 = vld [vmem:[#allocation2 + $0x20] sm:$0xf] }
 0x151   : > { %v1566_v20 = vsel %vm1523_vm0, %v1511_v32, %v1565_v35  ;;  %v1050_v23 = vmax.f32 %v1048_v61, %v1049_v9  ;;  %v732_v43 = vrot.slane %v5883_v22, 4  ;;  %v1037_v54 = vrot.slane %v1036_v19, 1 }
 0x152   : > { %v1581_v29 = vpack.c.b16 %v1566_v20, %v1566_v20  ;;  %v1648_v21 = vsel %vm5602_vm8, %v1582_v36, %v1647_v18  ;;  %v1031_v2 = vmax.f32 %v1029_v11, %v1030_v38  ;;  %v1044_v55 = vrot.slane %v1043_v50, 1  ;;  %v1654_v38 = vld [vmem:[#allocation2 + $0x20] sm:$0xf] }
 0x153   : > { %1649 = vst [vmem:[#allocation2 + $0x44] sm:$0x1] %v1648_v21  ;;  %v1051_v33 = vrot.slane %v1050_v23, 1  ;;  %v733_v56 = vrot.slane %v5883_v22, 6  ;;  %v1053_v58 = vsel %vm800_vm10, %v5883_v22, -inf  ;;  %v1060_v59 = vsel %vm800_vm10, %v731_v39, -inf }
 0x154   : > { %v1645_v57 = vsel %vm5663_vm1, %v1581_v29, %v1644_v45  ;;  %v5921_v60 = vadd.f32 %v5831_v40, %v5868_v47  ;;  %v1038_v62 = vmax.f32 %v1036_v19, %v1037_v54  ;;  %v1045_v1 = vmax.f32 %v1043_v50, %v1044_v55  ;;  %2692 = vmatpush.bf16.msra.mxu1 %v5218_v4  ;;  %v5217_v39 = vld [vmem:[%s6951_s3 + $0x8] sm:$0xff] }
 0x155   : > { %1646 = vst [vmem:[#allocation2 + $0x40] sm:$0xf] %v1645_v57  ;;  %v1353_v3 = vpack.c.bf16 %v1031_v2, %v1031_v2  ;;  %v1054_v16 = vrot.slane %v1053_v58, 4  ;;  %v1061_v5 = vrot.slane %v1060_v59, 4  ;;  %v1067_v6 = vsel %vm800_vm10, %v732_v43, -inf  ;;  %v5231_v43 = vld [vmem:[%s6951_s3 + $0x78] sm:$0xff] }
 0x156   : > { %v1074_v22 = vsel %vm800_vm10, %v733_v56, -inf  ;;  %v1995_v46 = vunpack.c.l.b16 %v5911_v52  ;;  %v1052_v61 = vmax.f32 %v1050_v23, %v1051_v33  ;;  %v1354_v17 = vpack.c.bf16 %v1038_v62, %v1038_v62  ;;  %v5938_v2 = vld [vmem:[#allocation2 + $0x24] sm:$0x1]  ;;  %v584_v56 = vpop.f32.mrf.mxu0  ;;  %2716 = vmatpush.bf16.msrb.mxu2 %v5231_v43 }
 0x157   : > { %v1355_v47 = vpack.c.bf16 %v1045_v1, %v1045_v1  ;;  %v1055_v32 = vmax.f32 %v1053_v58, %v1054_v16  ;;  %v1062_v11 = vmax.f32 %v1060_v59, %v1061_v5  ;;  %v1068_v13 = vrot.slane %v1067_v6, 4 }
 0x158   : > { %v1075_v18 = vrot.slane %v1074_v22, 4  ;;  %v627_v25 = vmax.f32 %v5921_v60, 0.0  ;;  %v1481_v34 = vunpack.c.l.b16 %v1353_v3  ;;  %v1482_v9 = vunpack.c.l.b16 %v1354_v17  ;;  %2693 = vmatpush.bf16.msra.mxu1 %v5217_v39 }
 0x159   : > { %v1483_v35 = vunpack.c.l.b16 %v1355_v47  ;;  %v1056_v36 = vrot.slane %v1055_v32, 2  ;;  %v1063_v20 = vrot.slane %v1062_v11, 2  ;;  %v1069_v45 = vmax.f32 %v1067_v6, %v1068_v13 }
 0x15a   : > { %v1076_v19 = vmax.f32 %v1074_v22, %v1075_v18  ;;  %v5933_v50 = vunpack.c.l.b16 %v1677_v10  ;;  %v1356_v23 = vpack.c.bf16 %v1052_v61, %v1052_v61  ;;  %v1543_v14 = vsel %vm1513_vm11, %v1482_v9, %v1481_v34  ;;  %v5230_v61 = vld [vmem:[%s6951_s3 + $0x70] sm:$0xff] }
 0x15b   : > { %v1057_v29 = vmax.f32 %v1055_v32, %v1056_v36  ;;  %v580_v21 = vadd.f32 %v5831_v40, %v5888_v48  ;;  %v1064_v52 = vmax.f32 %v1062_v11, %v1063_v20  ;;  %v1070_v54 = vrot.slane %v1069_v45, 2  ;;  %v5216_v48 = vld [vmem:[%s6951_s3] sm:$0xff]  ;;  %2717 = vmatpush.bf16.msrb.mxu2 %v5230_v61  ;;  %v1820_v20 = vpop.permute.xlu1 %1819 }
 0x15c   : > { %v1077_v55 = vrot.slane %v1076_v19, 2  ;;  %v1747_v33 = vunpack.c.l.b16 %v1654_v38  ;;  %v1544_v57 = vsel %vm1515_vm12, %v1483_v35, %v1543_v14  ;;  %v1886_v59 = vpack.c.b16 %v5933_v50, %v5933_v50  ;;  %2694 = vmatpush.bf16.msra.mxu1 %v5216_v48  ;;  %v1681_v11 = vld [vmem:[#allocation2 + $0x40] sm:$0xf] }
 0x15d   : > { %v1058_v58 = vrot.slane %v1057_v29, 1  ;;  %v628_v60 = vmax.f32 %v580_v21, 0.0  ;;  %v1065_v62 = vrot.slane %v1064_v52, 1  ;;  %v1071_v1 = vmax.f32 %v1069_v45, %v1070_v54 }
 0x15e   : > { %v1078_v3 = vmax.f32 %v1076_v19, %v1077_v55  ;;  %v1748_v16 = vunpack.c.l.b16 %v5938_v2  ;;  %v1484_v4 = vunpack.c.l.b16 %v1356_v23  ;;  %1897 = vrot.lane.b32.xlu2 %v1886_v59, %s5446_s22  ;;  %v583_v6 = vadd.f32 %v5831_v40, %v5909_v51  ;;  %v5242_v2 = vld [vmem:[%s6951_s3 + $0xd0] sm:$0xff] }
 0x15f   : > { %v1059_v5 = vmax.f32 %v1057_v29, %v1058_v58  ;;  %v5955_v22 = vpack.c.b16 %v1915_v26, %v1995_v46  ;;  %v1066_v17 = vmax.f32 %v1064_v52, %v1065_v62  ;;  %v1072_v47 = vrot.slane %v1071_v1, 1  ;;  %v1629_v58 = vld [vmem:[#allocation2 + $0x2c] sm:$0x1] }
 0x160   : > { %v1079_v32 = vrot.slane %v1078_v3, 1  ;;  %v1759_v10 = vpack.c.b16 %v1748_v16, %v1747_v33  ;;  %v1545_v13 = vsel %vm1517_vm13, %v1484_v4, %v1544_v57  ;;  %v670_v51 = vsel %vm639_vm9, %v627_v25, -inf  ;;  %v5973_v57 = vpop.f32.mrf.mxu0  ;;  %v1626_v4 = vld [vmem:[#allocation2 + $0x28] sm:$0xf] }
 0x161   : > { %v1357_v18 = vpack.c.bf16 %v1059_v5, %v1059_v5  ;;  %v629_v12 = vmax.f32 %v583_v6, 0.0  ;;  %v1073_v26 = vmax.f32 %v1071_v1, %v1072_v47  ;;  %v1358_v34 = vpack.c.bf16 %v1066_v17, %v1066_v17 }
 0x162   : > { %v1080_v46 = vmax.f32 %v1078_v3, %v1079_v32  ;;  %v5965_v9 = vsel %vm639_vm9, %v628_v60, -inf  ;;  %v1794_v36 = vshll.u32 %v1759_v10, 16  ;;  %v5968_v39 = vunpack.c.l.b16 %v1681_v11  ;;  %v1277_v32 = vld [vmem:[#allocation2 + $0x30] sm:$0x1] }
 0x163   : > { %v1485_v35 = vunpack.c.l.b16 %v1357_v18  ;;  %v671_v38 = vsel %vm639_vm9, %v629_v12, -inf  ;;  %v1359_v45 = vpack.c.bf16 %v1073_v26, %v1073_v26  ;;  %v1486_v23 = vunpack.c.l.b16 %v1358_v34  ;;  %v5229_v12 = vld [vmem:[%s6951_s3 + $0x68] sm:$0xff] }
 0x164   : > { %v1360_v19 = vpack.c.bf16 %v1080_v46, %v1080_v46  ;;  %v672_v14 = vmax.f32 %v670_v51, %v671_v38  ;;  %v1792_v29 = vshrl.u32 %v1759_v10, 16  ;;  %v1796_v21 = vrot.slane %v1794_v36, 1  ;;  %v1309_v51 = vld [vmem:[#allocation2 + $0x34] sm:$0x1]  ;;  %v5373_v34 = vld [vmem:[#allocation2] sm:$0xf]  ;;  %2718 = vmatpush.bf16.msrb.mxu2 %v5229_v12 }
 0x165   : > { %v1546_v25 = vsel %vm1519_vm14, %v1485_v35, %v1545_v13  ;;  %v585_v43 = vadd.f32 %v5831_v40, %v584_v56  ;;  %v1487_v52 = vunpack.c.l.b16 %v1359_v45  ;;  %v5989_v35 = vsel %vm639_vm9, %v5373_v34, %v1820_v20 }
 0x166   : > { %v1488_v54 = vunpack.c.l.b16 %v1360_v19  ;;  %v1547_v55 = vsel %vm1521_vm15, %v1486_v23, %v1546_v25  ;;  %v734_v33 = vrot.slane %v672_v14, 2  ;;  %v1797_v59 = vor.u32 %v1796_v21, %v1792_v29 }
 0x167   : > { %v735_v60 = vrot.slane %v672_v14, 4  ;;  %v736_v48 = vrot.slane %v672_v14, 6  ;;  %v1081_v62 = vsel %vm800_vm10, %v672_v14, -inf  ;;  %v1548_v1 = vsel %vm1523_vm0, %v1487_v52, %v1547_v55  ;;  %v5228_v14 = vld [vmem:[%s6951_s3 + $0x60] sm:$0xff] }
 0x168   : > { %v1576_v3 = vpack.c.b16 %v1488_v54, %v1488_v54  ;;  %v1082_v5 = vrot.slane %v1081_v62, 4  ;;  %v1088_v56 = vsel %vm800_vm10, %v734_v33, -inf  ;;  %v1575_v6 = vpack.c.b16 %v1548_v1, %v1548_v1  ;;  %1827 = vrot.lane.b32.xlu1 %v1797_v59, %s5446_s22  ;;  %2719 = vmatpush.bf16.msrb.mxu2 %v5228_v14 }
 0x169   : > { %v1089_v61 = vrot.slane %v1088_v56, 4  ;;  %v1095_v17 = vsel %vm800_vm10, %v735_v60, -inf  ;;  %v1102_v47 = vsel %vm800_vm10, %v736_v48, -inf  ;;  %v630_v36 = vmax.f32 %v585_v43, 0.0  ;;  %v1822_v43 = vpop.permute.xlu1 %1821 }
 0x16a   : > { %v1630_v10 = vsel %vm5602_vm8, %v1576_v3, %v1629_v58  ;;  %v1083_v11 = vmax.f32 %v1081_v62, %v1082_v5  ;;  %v1096_v13 = vrot.slane %v1095_v17, 4  ;;  %v1103_v18 = vrot.slane %v1102_v47, 4  ;;  %v5374_v3 = vld [vmem:[#allocation2 + $0x8] sm:$0xf]  ;;  %v6007_v5 = vpop.f32.mrf.mxu0 }
 0x16b   : > { %v1627_v26 = vsel %vm5663_vm1, %v1575_v6, %v1626_v4  ;;  %1631 = vst [vmem:[#allocation2 + $0x2c] sm:$0x1] %v1630_v10  ;;  %v1090_v46 = vmax.f32 %v1088_v56, %v1089_v61  ;;  %v1278_v23 = vsel %vm5602_vm8, 0, %v1277_v32  ;;  %v1890_v29 = vpack.c.b16 %v5968_v39, %v5968_v39 }
 0x16c   : > { %1628 = vst [vmem:[#allocation2 + $0x28] sm:$0xf] %v1627_v26  ;;  %v1084_v38 = vrot.slane %v1083_v11, 2  ;;  %v1097_v45 = vmax.f32 %v1095_v17, %v1096_v13  ;;  %v1104_v19 = vmax.f32 %v1102_v47, %v1103_v18  ;;  %v674_v20 = vsel %vm639_vm9, %v630_v36, -inf  ;;  %v1666_v13 = vld [vmem:[#allocation2] sm:$0xe] }
 0x16d   : > { %v1091_v25 = vrot.slane %v1090_v46, 2  ;;  %1279 = vst [vmem:[#allocation2 + $0x30] sm:$0x1] %v1278_v23  ;;  %v1310_v21 = vsel %vm5592_vm6, 0, %v1309_v51  ;;  %v675_v33 = vmax.f32 %v5965_v9, %v674_v20  ;;  %v2307_v59 = vunpack.c.l.b16 %v5989_v35  ;;  %v5227_v9 = vld [vmem:[%s6951_s3 + $0x58] sm:$0xff] }
 0x16e   : > { %v1085_v52 = vmax.f32 %v1083_v11, %v1084_v38  ;;  %v1098_v54 = vrot.slane %v1097_v45, 2  ;;  %v1105_v55 = vrot.slane %v1104_v19, 2  ;;  %1311 = vst [vmem:[#allocation2 + $0x34] sm:$0x1] %v1310_v21  ;;  %v2011_v60 = vrot.slane %v5955_v22, 1  ;;  %2720 = vmatpush.bf16.msrb.mxu2 %v5227_v9 }
 0x16f   : > { %v1092_v58 = vmax.f32 %v1090_v46, %v1091_v25  ;;  %v6005_v4 = vsel %vm639_vm9, %v5374_v3, %v1822_v43  ;;  %v737_v6 = vrot.slane %v675_v33, 2  ;;  %v738_v61 = vrot.slane %v675_v33, 4 }
 0x170   : > { %v1086_v48 = vrot.slane %v1085_v52, 1  ;;  %v1099_v62 = vmax.f32 %v1097_v45, %v1098_v54  ;;  %v1106_v1 = vmax.f32 %v1104_v19, %v1105_v55  ;;  %1905 = vrot.lane.b32.xlu1 %v1890_v29, %s5446_s22  ;;  %v739_v22 = vrot.slane %v675_v33, 6  ;;  %v1700_v55 = vld [vmem:[#allocation2 + $0x18] sm:$0xf] }
 0x171   : > { %v1093_v56 = vrot.slane %v1092_v58, 1  ;;  %v1109_v10 = vsel %vm800_vm10, %v675_v33, -inf  ;;  %v1116_v51 = vsel %vm800_vm10, %v737_v6, -inf  ;;  %v1123_v12 = vsel %vm800_vm10, %v738_v61, -inf  ;;  %v6020_v6 = vld [vmem:[#allocation2 + $0x1c] sm:$0x1] }
 0x172   : > { %v1087_v17 = vmax.f32 %v1085_v52, %v1086_v48  ;;  %v1100_v47 = vrot.slane %v1099_v62, 1  ;;  %v1107_v32 = vrot.slane %v1106_v1, 1  ;;  %v1110_v18 = vrot.slane %v1109_v10, 4 }
 0x173   : > { %v1094_v11 = vmax.f32 %v1092_v58, %v1093_v56  ;;  %v1117_v36 = vrot.slane %v1116_v51, 4  ;;  %v1124_v19 = vrot.slane %v1123_v12, 4  ;;  %v1130_v23 = vsel %vm800_vm10, %v739_v22, -inf }
 0x174   : > { %v1101_v26 = vmax.f32 %v1099_v62, %v1100_v47  ;;  %v1108_v46 = vmax.f32 %v1106_v1, %v1107_v32  ;;  %v1361_v34 = vpack.c.bf16 %v1087_v17, %v1087_v17  ;;  %v1111_v45 = vmax.f32 %v1109_v10, %v1110_v18  ;;  %v6024_v47 = vpop.f32.mrf.mxu0 }
 0x175   : > { %v1362_v38 = vpack.c.bf16 %v1094_v11, %v1094_v11  ;;  %v1843_v29 = vunpack.c.l.b16 %v1666_v13  ;;  %v1118_v20 = vmax.f32 %v1116_v51, %v1117_v36  ;;  %v1125_v52 = vmax.f32 %v1123_v12, %v1124_v19  ;;  %v1678_v13 = vld [vmem:[#allocation2 + $0x28] sm:$0xf] }
 0x176   : > { %v1363_v14 = vpack.c.bf16 %v1101_v26, %v1101_v26  ;;  %v1489_v25 = vunpack.c.l.b16 %v1361_v34  ;;  %v1112_v43 = vrot.slane %v1111_v45, 2  ;;  %v1131_v54 = vrot.slane %v1130_v23, 4 }
 0x177   : > { %v1490_v21 = vunpack.c.l.b16 %v1362_v38  ;;  %v1364_v33 = vpack.c.bf16 %v1108_v46, %v1108_v46  ;;  %v1119_v48 = vrot.slane %v1118_v20, 2  ;;  %v2312_v62 = vunpack.c.l.b16 %v6005_v4 }
 0x178   : > { %v1491_v58 = vunpack.c.l.b16 %v1363_v14  ;;  %v1113_v3 = vmax.f32 %v1111_v45, %v1112_v43  ;;  %v1126_v9 = vrot.slane %v1125_v52, 2  ;;  %v1132_v56 = vmax.f32 %v1130_v23, %v1131_v54  ;;  %2019 = vrot.lane.b32.xlu1 %v2011_v60, %s5446_s22  ;;  %v6042_v54 = vld [vmem:[#allocation2 + $0x24] sm:$0x1] }
 0x179   : > { %v1549_v1 = vsel %vm1513_vm11, %v1490_v21, %v1489_v25  ;;  %v1120_v61 = vmax.f32 %v1118_v20, %v1119_v48  ;;  %v588_v22 = vadd.f32 %v5831_v40, %v5973_v57  ;;  %v2053_v17 = vunpack.c.l.b16 %v1700_v55  ;;  %v1701_v21 = vld [vmem:[#allocation2 + $0x20] sm:$0xf]  ;;  %v6044_v55 = vld [vmem:[#allocation2 + $0x2c] sm:$0x1] }
 0x17a   : > { %v6028_v32 = vpack.c.b16 %v1740_v63, %v1843_v29  ;;  %v1114_v4 = vrot.slane %v1113_v3, 1  ;;  %v1127_v10 = vmax.f32 %v1125_v52, %v1126_v9  ;;  %v1133_v11 = vrot.slane %v1132_v56, 2  ;;  %v6052_v9 = vpop.permute.xlu0 %1891 }
 0x17b   : > { %v1492_v18 = vunpack.c.l.b16 %v1364_v33  ;;  %v1550_v60 = vsel %vm1515_vm12, %v1491_v58, %v1549_v1  ;;  %v1121_v51 = vrot.slane %v1120_v61, 1  ;;  %v2054_v12 = vunpack.c.l.b16 %v6020_v6  ;;  %v6047_v1 = vld [vmem:[#allocation2 + $0x28] sm:$0xf] }
 0x17c   : > { %v1115_v26 = vmax.f32 %v1113_v3, %v1114_v4  ;;  %v1128_v46 = vrot.slane %v1127_v10, 1  ;;  %v1134_v57 = vmax.f32 %v1132_v56, %v1133_v11  ;;  %v2423_v34 = vpack.c.b16 %v2312_v62, %v2307_v59  ;;  %v5226_v3 = vld [vmem:[%s6951_s3 + $0x50] sm:$0xff] }
 0x17d   : > { %v1122_v36 = vmax.f32 %v1120_v61, %v1121_v51  ;;  %v631_v53 = vmax.f32 %v588_v22, 0.0  ;;  %v2068_v63 = vpack.c.b16 %v2054_v12, %v2053_v17  ;;  %v6036_v38 = vunpack.c.l.b16 %v1678_v13  ;;  %v1667_v4 = vld [vmem:[#allocation2 + $0x8] sm:$0xe]  ;;  %2721 = vmatpush.bf16.msrb.mxu2 %v5226_v3  ;;  %v594_v51 = vpop.f32.mrf.mxu0 }
 0x17e   : > { %v1129_v45 = vmax.f32 %v1127_v10, %v1128_v46  ;;  %v1135_v19 = vrot.slane %v1134_v57, 1  ;;  %v1365_v23 = vpack.c.bf16 %v1115_v26, %v1115_v26  ;;  %2695 = vmatmul.bf16.vlgmr.msra.gmra.mxu1 %v2423_v34  ;;  %v1551_v14 = vsel %vm1517_vm13, %v1492_v18, %v1550_v60  ;;  %v5225_v60 = vld [vmem:[%s6951_s3 + $0x48] sm:$0xff]  ;;  %v1280_v26 = vld [vmem:[#allocation2 + $0x38] sm:$0x1]  ;;  %v1632_v34 = vld [vmem:[#allocation2 + $0x30] sm:$0xf] }
 0x17f   : > { %v1859_v25 = vrot.slane %v6028_v32, 1  ;;  %v1366_v29 = vpack.c.bf16 %v1122_v36, %v1122_v36  ;;  %v2085_v20 = vshll.u32 %v2068_v63, 16  ;;  %v1887_v52 = vpack.c.b16 %v6036_v38, %v6036_v38 }
 0x180   : > { %v1136_v35 = vmax.f32 %v1134_v57, %v1135_v19  ;;  %v1367_v59 = vpack.c.bf16 %v1129_v45, %v1129_v45  ;;  %v1493_v43 = vunpack.c.l.b16 %v1365_v23  ;;  %v676_v58 = vsel %vm639_vm9, %v631_v53, -inf  ;;  %v1635_v45 = vld [vmem:[#allocation2 + $0x34] sm:$0x1] }
 0x181   : > { %v1494_v33 = vunpack.c.l.b16 %v1366_v29  ;;  %v2083_v48 = vshrl.u32 %v2068_v63, 16  ;;  %v2087_v62 = vrot.slane %v2085_v20, 1  ;;  %1899 = vrot.lane.b32.xlu2 %v1887_v52, %s5446_s22  ;;  %v2055_v17 = vunpack.c.l.b16 %v1701_v21  ;;  %2722 = vmatpush.bf16.msrb.mxu2 %v5225_v60 }
 0x182   : > { %v1368_v56 = vpack.c.bf16 %v1136_v35, %v1136_v35  ;;  %v1495_v61 = vunpack.c.l.b16 %v1367_v59  ;;  %v1552_v22 = vsel %vm1519_vm14, %v1493_v43, %v1551_v14  ;;  %v590_v13 = vadd.f32 %v5831_v40, %v6007_v5  ;;  %v1312_v35 = vld [vmem:[#allocation2 + $0x3c] sm:$0x1] }
 0x183   : > { %v1553_v10 = vsel %vm1521_vm15, %v1494_v33, %v1552_v22  ;;  %v2088_v11 = vor.u32 %v2087_v62, %v2083_v48  ;;  %v6965_v18 = vunpack.c.l.b16 %v6042_v54  ;;  %v1749_v36 = vunpack.c.l.b16 %v6047_v1 }
 0x184   : > { %v1496_v46 = vunpack.c.l.b16 %v1368_v56  ;;  %v1554_v57 = vsel %vm1523_vm0, %v1495_v61, %v1553_v10  ;;  %v1750_v53 = vunpack.c.l.b16 %v6044_v55  ;;  %v593_v19 = vadd.f32 %v5831_v40, %v6024_v47 }
 0x185   : > { %v1577_v63 = vpack.c.b16 %v1554_v57, %v1554_v57  ;;  %2133 = vrot.lane.b32.xlu1 %v2088_v11, %s5446_s22  ;;  %v2069_v5 = vpack.c.b16 %v6965_v18, %v2055_v17  ;;  %v1844_v23 = vunpack.c.l.b16 %v1667_v4  ;;  %v595_v20 = vadd.f32 %v5831_v40, %v594_v51  ;;  %v1894_v11 = vpop.permute.xlu0 %1893 }
 0x186   : > { %v1578_v14 = vpack.c.b16 %v1496_v46, %v1496_v46  ;;  %v1760_v29 = vpack.c.b16 %v1750_v53, %v1749_v36  ;;  %v1281_v21 = vsel %vm5602_vm8, 0, %v1280_v26  ;;  %v632_v43 = vmax.f32 %v590_v13, 0.0  ;;  %v5224_v13 = vld [vmem:[%s6951_s3 + $0x40] sm:$0xff] }
 0x187   : > { %v1633_v59 = vsel %vm5663_vm1, %v1577_v63, %v1632_v34  ;;  %v2092_v52 = vshll.u32 %v2069_v5, 16  ;;  %v633_v33 = vmax.f32 %v593_v19, 0.0  ;;  %1282 = vst [vmem:[#allocation2 + $0x38] sm:$0x1] %v1281_v21  ;;  %v2090_v48 = vshrl.u32 %v2069_v5, 16  ;;  %2723 = vmatpush.bf16.msrb.mxu2 %v5224_v13 }
 0x188   : > { %1634 = vst [vmem:[#allocation2 + $0x30] sm:$0xf] %v1633_v59  ;;  %v1636_v47 = vsel %vm5602_vm8, %v1578_v14, %v1635_v45  ;;  %v1801_v62 = vshll.u32 %v1760_v29, 16  ;;  %v1852_v40 = vpack.c.b16 %v1742_v44, %v1844_v23  ;;  %v634_v61 = vmax.f32 %v595_v20, 0.0 }
 0x189   : > { %1637 = vst [vmem:[#allocation2 + $0x34] sm:$0x1] %v1636_v47  ;;  %v2094_v3 = vrot.slane %v2092_v52, 1  ;;  %v677_v56 = vsel %vm639_vm9, %v633_v33, -inf  ;;  %v1313_v22 = vsel %vm5592_vm6, 0, %v1312_v35  ;;  %v1799_v17 = vshrl.u32 %v1760_v29, 16 }
 0x18a   : > { %v1803_v4 = vrot.slane %v1801_v62, 1  ;;  %v678_v10 = vmax.f32 %v676_v58, %v677_v56  ;;  %1314 = vst [vmem:[#allocation2 + $0x3c] sm:$0x1] %v1313_v22  ;;  %v679_v27 = vsel %vm639_vm9, %v632_v43, -inf  ;;  %v1860_v60 = vrot.slane %v1852_v40, 1 }
 0x18b   : > { %v2095_v44 = vor.u32 %v2094_v3, %v2090_v48  ;;  %v680_v51 = vsel %vm639_vm9, %v634_v61, -inf  ;;  %v6094_v58 = vsel %vm639_vm9, %v1859_v25, %v6052_v9 }
 0x18c   : > { %v1804_v26 = vor.u32 %v1803_v4, %v1799_v17  ;;  %v740_v46 = vrot.slane %v678_v10, 2  ;;  %v741_v57 = vrot.slane %v678_v10, 4  ;;  %v742_v34 = vrot.slane %v678_v10, 6 }
 0x18d   : > { %2135 = vrot.lane.b32.xlu1 %v2095_v44, %s5446_s22  ;;  %v1137_v36 = vsel %vm800_vm10, %v678_v10, -inf  ;;  %v6099_v63 = vsel %vm639_vm9, %v1860_v60, %v1894_v11  ;;  %v681_v45 = vmax.f32 %v679_v27, %v680_v51 }
 0x18e   : > { %1829 = vrot.lane.b32.xlu2 %v1804_v26, %s5446_s22  ;;  %v1138_v5 = vrot.slane %v1137_v36, 4  ;;  %v1144_v19 = vsel %vm800_vm10, %v740_v46, -inf  ;;  %v1151_v23 = vsel %vm800_vm10, %v741_v57, -inf  ;;  %v1158_v32 = vsel %vm800_vm10, %v742_v34, -inf }
 0x18f   : > { %v1145_v14 = vrot.slane %v1144_v19, 4  ;;  %v1152_v25 = vrot.slane %v1151_v23, 4  ;;  %v1159_v9 = vrot.slane %v1158_v32, 4  ;;  %v2313_v29 = vunpack.c.l.b16 %v6099_v63 }
 0x190   : > { %v1139_v20 = vmax.f32 %v1137_v36, %v1138_v5  ;;  %v743_v21 = vrot.slane %v681_v45, 2  ;;  %v744_v35 = vrot.slane %v681_v45, 4  ;;  %v745_v59 = vrot.slane %v681_v45, 6 }
 0x191   : > { %v1146_v43 = vmax.f32 %v1144_v19, %v1145_v14  ;;  %v1153_v52 = vmax.f32 %v1151_v23, %v1152_v25  ;;  %v1160_v33 = vmax.f32 %v1158_v32, %v1159_v9  ;;  %v1165_v47 = vsel %vm800_vm10, %v681_v45, -inf }
 0x192   : > { %v1140_v48 = vrot.slane %v1139_v20, 2  ;;  %v1166_v62 = vrot.slane %v1165_v47, 4  ;;  %v1172_v40 = vsel %vm800_vm10, %v743_v21, -inf  ;;  %v1179_v3 = vsel %vm800_vm10, %v744_v35, -inf }
 0x193   : > { %v1147_v56 = vrot.slane %v1146_v43, 2  ;;  %v1154_v61 = vrot.slane %v1153_v52, 2  ;;  %v1161_v22 = vrot.slane %v1160_v33, 2  ;;  %v1173_v17 = vrot.slane %v1172_v40, 4 }
 0x194   : > { %v1141_v4 = vmax.f32 %v1139_v20, %v1140_v48  ;;  %v1167_v10 = vmax.f32 %v1165_v47, %v1166_v62  ;;  %v1180_v11 = vrot.slane %v1179_v3, 4  ;;  %v1186_v13 = vsel %vm800_vm10, %v745_v59, -inf }
 0x195   : > { %v1148_v27 = vmax.f32 %v1146_v43, %v1147_v56  ;;  %v1155_v44 = vmax.f32 %v1153_v52, %v1154_v61  ;;  %v1162_v60 = vmax.f32 %v1160_v33, %v1161_v22  ;;  %v1174_v51 = vmax.f32 %v1172_v40, %v1173_v17 }
 0x196   : > { %v1142_v26 = vrot.slane %v1141_v4, 1  ;;  %v1168_v46 = vrot.slane %v1167_v10, 2  ;;  %v1181_v57 = vmax.f32 %v1179_v3, %v1180_v11  ;;  %v1187_v34 = vrot.slane %v1186_v13, 4 }
 0x197   : > { %v1149_v36 = vrot.slane %v1148_v27, 1  ;;  %v1156_v63 = vrot.slane %v1155_v44, 1  ;;  %v1163_v45 = vrot.slane %v1162_v60, 1  ;;  %v1175_v5 = vrot.slane %v1174_v51, 2 }
 0x198   : > { %v1143_v19 = vmax.f32 %v1141_v4, %v1142_v26  ;;  %v1169_v23 = vmax.f32 %v1167_v10, %v1168_v46  ;;  %v1182_v32 = vrot.slane %v1181_v57, 2  ;;  %v1188_v14 = vmax.f32 %v1186_v13, %v1187_v34 }
 0x199   : > { %v1150_v25 = vmax.f32 %v1148_v27, %v1149_v36  ;;  %v1157_v9 = vmax.f32 %v1155_v44, %v1156_v63  ;;  %v1164_v20 = vmax.f32 %v1162_v60, %v1163_v45  ;;  %v1176_v21 = vmax.f32 %v1174_v51, %v1175_v5  ;;  %v1679_v60 = vld [vmem:[#allocation2 + $0x30] sm:$0xf]  ;;  %v1687_v63 = vld [vmem:[#allocation2 + $0x34] sm:$0x1] }
 0x19a   : > { %v1369_v35 = vpack.c.bf16 %v1143_v19, %v1143_v19  ;;  %v1170_v59 = vrot.slane %v1169_v23, 1  ;;  %v1183_v43 = vmax.f32 %v1181_v57, %v1182_v32  ;;  %v1189_v52 = vrot.slane %v1188_v14, 2  ;;  %v1695_v45 = vld [vmem:[#allocation2 + $0x30] sm:$0xe] }
 0x19b   : > { %v1370_v33 = vpack.c.bf16 %v1150_v25, %v1150_v25  ;;  %v1371_v47 = vpack.c.bf16 %v1157_v9, %v1157_v9  ;;  %v1372_v48 = vpack.c.bf16 %v1164_v20, %v1164_v20  ;;  %v1177_v62 = vrot.slane %v1176_v21, 1  ;;  %v6114_v32 = vld [vmem:[#allocation2 + $0x30] sm:$0xf] }
 0x19c   : > { %v2308_v40 = vunpack.c.l.b16 %v6094_v58  ;;  %v1171_v3 = vmax.f32 %v1169_v23, %v1170_v59  ;;  %v1184_v56 = vrot.slane %v1183_v43, 1  ;;  %v1190_v61 = vmax.f32 %v1188_v14, %v1189_v52 }
 0x19d   : > { %v1497_v22 = vunpack.c.l.b16 %v1369_v35  ;;  %v1498_v17 = vunpack.c.l.b16 %v1370_v33  ;;  %v1499_v4 = vunpack.c.l.b16 %v1371_v47  ;;  %v1178_v10 = vmax.f32 %v1176_v21, %v1177_v62  ;;  %v1638_v33 = vld [vmem:[#allocation2 + $0x38] sm:$0xf] }
 0x19e   : > { %v1185_v11 = vmax.f32 %v1183_v43, %v1184_v56  ;;  %v1191_v13 = vrot.slane %v1190_v61, 1  ;;  %v1373_v27 = vpack.c.bf16 %v1171_v3, %v1171_v3  ;;  %v2424_v44 = vpack.c.b16 %v2313_v29, %v2308_v40  ;;  %v6116_v29 = vld [vmem:[#allocation2 + $0x34] sm:$0x1]  ;;  %v1641_v40 = vld [vmem:[#allocation2 + $0x3c] sm:$0x1] }
 0x19f   : > { %v1500_v51 = vunpack.c.l.b16 %v1372_v48  ;;  %v1555_v26 = vsel %vm1513_vm11, %v1498_v17, %v1497_v22  ;;  %v1374_v46 = vpack.c.bf16 %v1178_v10, %v1178_v10  ;;  %v1880_v23 = vunpack.c.l.b16 %v1679_v60 }
 0x1a0   : > { %v1556_v57 = vsel %vm1515_vm12, %v1499_v4, %v1555_v26  ;;  %v1192_v34 = vmax.f32 %v1190_v61, %v1191_v13  ;;  %v1375_v58 = vpack.c.bf16 %v1185_v11, %v1185_v11  ;;  %v1501_v36 = vunpack.c.l.b16 %v1373_v27  ;;  %2724 = vmatmul.bf16.vlgmr.msrb.gmra.mxu2 %v2424_v44  ;;  %v1691_v13 = vld [vmem:[#allocation2 + $0x10] sm:$0xe] }
 0x1a1   : > { %v1557_v5 = vsel %vm1517_vm13, %v1500_v51, %v1556_v57  ;;  %v1502_v19 = vunpack.c.l.b16 %v1374_v46  ;;  %v1888_v21 = vpack.c.b16 %v1880_v23, %v1880_v23  ;;  %v1920_v35 = vunpack.c.l.b16 %v1687_v63  ;;  %v1668_v27 = vld [vmem:[#allocation2 + $0x10] sm:$0xe]  ;;  %v6133_v51 = vld [vmem:[#allocation2 + $0x14] sm:$0x1]  ;;  %v1669_v57 = vld [vmem:[#allocation2 + $0x18] sm:$0xe] }
 0x1a2   : > { %v1376_v14 = vpack.c.bf16 %v1192_v34, %v1192_v34  ;;  %v1503_v25 = vunpack.c.l.b16 %v1375_v58  ;;  %v1558_v9 = vsel %vm1519_vm14, %v1501_v36, %v1557_v5  ;;  %v2000_v59 = vunpack.c.l.b16 %v1695_v45  ;;  %v1824_v58 = vpop.permute.xlu0 %1823  ;;  %v6137_v5 = vld [vmem:[#allocation2 + $0x10] sm:$0xf] }
 0x1a3   : > { %v1559_v20 = vsel %vm1521_vm15, %v1502_v19, %v1558_v9  ;;  %v1751_v47 = vunpack.c.l.b16 %v6114_v32  ;;  %v1752_v48 = vunpack.c.l.b16 %v6116_v29  ;;  %1901 = vrot.lane.b32.xlu0 %v1888_v21, %s5446_s22  ;;  %v6124_v3 = vpack.c.b16 %v1920_v35, %v1880_v23  ;;  %v1896_v19 = vpop.permute.xlu2 %1895 }
 0x1a4   : > { %v1504_v43 = vunpack.c.l.b16 %v1376_v14  ;;  %v1560_v52 = vsel %vm1523_vm0, %v1503_v25, %v1559_v20  ;;  %v2008_v56 = vpack.c.b16 %v1920_v35, %v2000_v59  ;;  %v1996_v46 = vunpack.c.l.b16 %v1691_v13  ;;  %v1692_v14 = vld [vmem:[#allocation2 + $0x18] sm:$0xe]  ;;  %v6145_v59 = vld [vmem:[#allocation2 + $0x28] sm:$0xf] }
 0x1a5   : > { %v1579_v62 = vpack.c.b16 %v1560_v52, %v1560_v52  ;;  %v1761_v22 = vpack.c.b16 %v1752_v48, %v1751_v47  ;;  %v1845_v41 = vunpack.c.l.b16 %v1668_v27  ;;  %v1916_v34 = vunpack.c.l.b16 %v6133_v51  ;;  %v6150_v47 = vld [vmem:[#allocation2 + $0x14] sm:$0x1] }
 0x1a6   : > { %v1580_v61 = vpack.c.b16 %v1504_v43, %v1504_v43  ;;  %v2016_v4 = vrot.slane %v2008_v56, 1  ;;  %v1846_v36 = vunpack.c.l.b16 %v1669_v57  ;;  %v2051_v49 = vunpack.c.l.b16 %v6137_v5  ;;  %v5376_v57 = vld [vmem:[#allocation2 + $0x18] sm:$0xf] }
 0x1a7   : > { %v1639_v17 = vsel %vm5663_vm1, %v1579_v62, %v1638_v33  ;;  %v1808_v11 = vshll.u32 %v1761_v22, 16  ;;  %v1806_v44 = vshrl.u32 %v1761_v22, 16  ;;  %v2004_v23 = vpack.c.b16 %v1916_v34, %v1996_v46  ;;  %v6152_v62 = vld [vmem:[#allocation2 + $0x1c] sm:$0x1] }
 0x1a8   : > { %1640 = vst [vmem:[#allocation2 + $0x38] sm:$0xf] %v1639_v17  ;;  %v1642_v10 = vsel %vm5602_vm8, %v1580_v61, %v1641_v40  ;;  %2029 = vrot.lane.b32.xlu1 %v2016_v4, %s5446_s22  ;;  %v1853_v35 = vpack.c.b16 %v1744_v0, %v1845_v41  ;;  %v5375_v40 = vld [vmem:[#allocation2 + $0x10] sm:$0xf]  ;;  %v1997_v0 = vunpack.c.l.b16 %v1692_v14  ;;  %v1854_v17 = vpack.c.b16 %v1746_v15, %v1846_v36  ;;  %v6159_v4 = vld [vmem:[#allocation2 + $0x2c] sm:$0x1] }
 0x1a9   : > { %1643 = vst [vmem:[#allocation2 + $0x3c] sm:$0x1] %v1642_v10  ;;  %v1810_v60 = vrot.slane %v1808_v11, 1  ;;  %v2187_v56 = vsel %vm639_vm9, %v5375_v40, %v1824_v58  ;;  %v2012_v13 = vrot.slane %v2004_v23, 1  ;;  %v2057_v27 = vunpack.c.l.b16 %v6145_v59 }
 0x1aa   : > { %v1861_v46 = vrot.slane %v1853_v35, 1  ;;  %v2058_v58 = vunpack.c.l.b16 %v6159_v4  ;;  %v2317_v23 = vunpack.c.l.b16 %v2187_v56  ;;  %v1932_v51 = vshrl.u32 %v5711_v37, 16 }
 0x1ab   : > { %v1811_v26 = vor.u32 %v1810_v60, %v1806_v44  ;;  %v2052_v60 = vunpack.c.l.b16 %v6150_v47  ;;  %vm3015_vm14 = vsmask.f32 7946  ;;  %vm3105_vm0 = vsmask.f32 2306 }
 0x1ac   : > { %vm6490_vm1 = vmand %vm2992_vm2, %vm3105_vm0 }
 0x1ad   : > { %1831 = vrot.lane.b32.xlu2 %v1811_v26, %s5446_s22  ;;  %v1917_v26 = vunpack.c.l.b16 %v6152_v62 }
 0x1af   : > { %v1680_v63 = vld [vmem:[#allocation2 + $0x38] sm:$0xf] }
 0x1b0   : > { %v1696_v45 = vld [vmem:[#allocation2 + $0x38] sm:$0xe]  ;;  %v1881_v25 = vunpack.c.l.b16 %v1680_v63  ;;  %v1688_v9 = vld [vmem:[#allocation2 + $0x3c] sm:$0x1]  ;;  %v2067_v63 = vpack.c.b16 %v2052_v60, %v2051_v49  ;;  %v6179_v49 = vld [vmem:[#allocation2 + $0x30] sm:$0xf] }
 0x1b1   : > { %v2001_v20 = vunpack.c.l.b16 %v1696_v45  ;;  %v6141_v21 = vld [vmem:[#allocation2 + $0x38] sm:$0xf]  ;;  %v1921_v43 = vunpack.c.l.b16 %v1688_v9  ;;  %v6147_v52 = vld [vmem:[#allocation2 + $0x3c] sm:$0x1]  ;;  %v2211_v45 = vsel %vm639_vm9, %v1861_v46, %v1896_v19  ;;  %v6181_v46 = vld [vmem:[#allocation2 + $0x34] sm:$0x1] }
 0x1b2   : > { %v1753_v33 = vunpack.c.l.b16 %v6141_v21  ;;  %v1889_v61 = vpack.c.b16 %v1881_v25, %v1881_v25  ;;  %v1754_v22 = vunpack.c.l.b16 %v6147_v52  ;;  %v1716_v9 = vld [vmem:[#allocation2 + $0x18] sm:$0xe]  ;;  %v2318_v19 = vunpack.c.l.b16 %v2211_v45  ;;  %v1693_v45 = vld [vmem:[#allocation2 + $0x20] sm:$0xe] }
 0x1b3   : > { %v6161_v10 = vpack.c.b16 %v1921_v43, %v1881_v25  ;;  %v2009_v11 = vpack.c.b16 %v1921_v43, %v2001_v20  ;;  %v1862_v25 = vrot.slane %v1854_v17, 1  ;;  %v2005_v20 = vpack.c.b16 %v1917_v26, %v1997_v0  ;;  %v1715_v0 = vld [vmem:[#allocation2 + $0x10] sm:$0xe] }
 0x1b4   : > { %1903 = vrot.lane.b32.xlu0 %v1889_v61, %s5446_s22  ;;  %v1762_v44 = vpack.c.b16 %v1754_v22, %v1753_v33  ;;  %v2070_v43 = vpack.c.b16 %v2058_v58, %v2057_v27  ;;  %v2059_v27 = vunpack.c.l.b16 %v6179_v49 }
 0x1b5   : > { %v2017_v15 = vrot.slane %v2009_v11, 1  ;;  %2021 = vrot.lane.b32.xlu2 %v2012_v13, %s5446_s22  ;;  %v2078_v11 = vshll.u32 %v2067_v63, 16  ;;  %v2156_v13 = vunpack.c.l.b16 %v1716_v9  ;;  %v2076_v9 = vshrl.u32 %v2067_v63, 16  ;;  %v1694_v63 = vld [vmem:[#allocation2 + $0x28] sm:$0xe] }
 0x1b6   : > { %v1826_v8 = vpop.permute.xlu1 %1825  ;;  %v1815_v36 = vshll.u32 %v1762_v44, 16  ;;  %v1813_v33 = vshrl.u32 %v1762_v44, 16  ;;  %v6962_v44 = vunpack.c.l.b16 %v6181_v46 }
 0x1b7   : > { %v2190_v41 = vsel %vm639_vm9, %v5376_v57, %v1826_v8  ;;  %2031 = vrot.lane.b32.xlu1 %v2017_v15, %s5446_s22  ;;  %v2013_v8 = vrot.slane %v2005_v20, 1  ;;  %v2099_v15 = vshll.u32 %v2070_v43, 16  ;;  %v6191_v20 = vld [vmem:[#allocation2 + $0x24] sm:$0x1] }
 0x1b8   : > { %v2322_v14 = vunpack.c.l.b16 %v2190_v41  ;;  %v1898_v35 = vpop.permute.xlu2 %1897  ;;  %v1817_v47 = vrot.slane %v1815_v36, 1  ;;  %v2080_v41 = vrot.slane %v2078_v11, 1  ;;  %v2155_v36 = vunpack.c.l.b16 %v1715_v0 }
 0x1b9   : > { %v2214_v40 = vsel %vm639_vm9, %v1862_v25, %v1898_v35  ;;  %v2071_v25 = vpack.c.b16 %v6962_v44, %v2059_v27  ;;  %v2097_v35 = vshrl.u32 %v2070_v43, 16  ;;  %v6204_v27 = vld [vmem:[#allocation2 + $0x38] sm:$0xf] }
 0x1ba   : > { %v2428_v61 = vpack.c.b16 %v2322_v14, %v2317_v23  ;;  %v2323_v56 = vunpack.c.l.b16 %v2214_v40  ;;  %v1818_v17 = vor.u32 %v1817_v47, %v1813_v33  ;;  %v2164_v23 = vpack.c.b16 %v2054_v12, %v2156_v13  ;;  %v1697_v13 = vld [vmem:[#allocation2 + $0x40] sm:$0xe] }
 0x1bb   : > { %v2101_v14 = vrot.slane %v2099_v15, 1  ;;  %v2081_v33 = vor.u32 %v2080_v41, %v2076_v9  ;;  %v2163_v47 = vpack.c.b16 %v2052_v60, %v2155_v36  ;;  %v1998_v40 = vunpack.c.l.b16 %v1693_v45  ;;  %v6200_v60 = vld [vmem:[#allocation2 + $0x2c] sm:$0x1]  ;;  %v6206_v41 = vld [vmem:[#allocation2 + $0x3c] sm:$0x1] }
 0x1bc   : > { %2700 = vmatmul.bf16.gmra.mxu1 %v2428_v61  ;;  %v2429_v57 = vpack.c.b16 %v2323_v56, %v2318_v19  ;;  %1833 = vrot.lane.b32.xlu0 %v1818_v17, %s5446_s22  ;;  %v2172_v61 = vrot.slane %v2164_v23, 1  ;;  %v2106_v56 = vshll.u32 %v2071_v25, 16  ;;  %v1918_v17 = vunpack.c.l.b16 %v6191_v20  ;;  %v6208_v36 = vld [vmem:[#allocation2 + $0x44] sm:$0x1] }
 0x1bd   : > { %2023 = vrot.lane.b32.xlu2 %v2013_v8, %s5446_s22  ;;  %v2102_v19 = vor.u32 %v2101_v14, %v2097_v35  ;;  %v2171_v6 = vrot.slane %v2163_v47, 1  ;;  %v2104_v0 = vshrl.u32 %v2071_v25, 16  ;;  %v2002_v45 = vunpack.c.l.b16 %v1697_v13 }
 0x1be   : > { %2729 = vmatmul.bf16.gmra.mxu2 %v2429_v57  ;;  %v2006_v12 = vpack.c.b16 %v1918_v17, %v1998_v40  ;;  %v6198_v11 = vunpack.c.l.b16 %v2172_v61  ;;  %v2108_v43 = vrot.slane %v2106_v56, 1  ;;  %v1999_v57 = vunpack.c.l.b16 %v1694_v63  ;;  %v5239_v61 = vld [vmem:[%s6951_s3 + $0xb8] sm:$0xff]  ;;  %v6227_v56 = vld [vmem:[#allocation2 + $0x44] sm:$0x1] }
 0x1bf   : > { %v6202_v8 = vunpack.c.l.b16 %v2171_v6  ;;  %v2061_v23 = vunpack.c.l.b16 %v6204_v27  ;;  %v1919_v9 = vunpack.c.l.b16 %v6200_v60  ;;  %v6963_v25 = vunpack.c.l.b16 %v6206_v41  ;;  %v1286_v6 = vld [vmem:[#allocation2 + $0x48] sm:$0x1]  ;;  %2745 = vmatpush.bf16.msra.mxu3 %v5239_v61 }
 0x1c0   : > { %v2014_v15 = vrot.slane %v2006_v12, 1  ;;  %v2109_v14 = vor.u32 %v2108_v43, %v2104_v0  ;;  %v1318_v12 = vld [vmem:[#allocation2 + $0x4c] sm:$0x1]  ;;  %v1287_v43 = vsel %vm5602_vm8, 0, %v1286_v6 }
 0x1c1   : > { %v2427_v35 = vpack.c.b16 %v6198_v11, %v6202_v8  ;;  %v2007_v47 = vpack.c.b16 %v1919_v9, %v1999_v57  ;;  %v2072_v40 = vpack.c.b16 %v6963_v25, %v2061_v23  ;;  %v1319_v13 = vsel %vm5592_vm6, 0, %v1318_v12  ;;  %1288 = vst [vmem:[#allocation2 + $0x48] sm:$0x1] %v1287_v43  ;;  %v5238_v43 = vld [vmem:[%s6951_s3 + $0xb0] sm:$0xff] }
 0x1c2   : > { %v6961_v23 = vunpack.c.l.b16 %v6227_v56  ;;  %1320 = vst [vmem:[#allocation2 + $0x4c] sm:$0x1] %v1319_v13  ;;  %v1967_v8 = vshrl.u32 %v6124_v3, 16  ;;  %vm3014_vm6 = vcmask 518146  }
 0x1c3   : > { %v2015_v0 = vrot.slane %v2007_v47, 1  ;;  %v2111_v6 = vshrl.u32 %v2072_v40, 16  ;;  %2746 = vmatpush.bf16.msra.mxu3 %v5238_v43  ;;  %vm6441_vm15 = vmand %vm3014_vm6, %vm3015_vm14 }
 0x1c4   : > { %2131 = vrot.lane.b32.xlu0 %v2081_v33, %s5446_s22  ;;  %v1922_v33 = vunpack.c.l.b16 %v6208_v36 }
 0x1c5   : > { %2137 = vrot.lane.b32.xlu2 %v2102_v19, %s5446_s22  ;;  %v6225_v19 = vld [vmem:[#allocation2 + $0x40] sm:$0xf] }
 0x1c6   : > { %v2010_v63 = vpack.c.b16 %v1922_v33, %v2002_v45  ;;  %v2063_v57 = vunpack.c.l.b16 %v6225_v19  ;;  %v1930_v11 = vpack.c.b16 %v1922_v33, %v5968_v39 }
 0x1c8   : > { %v2073_v61 = vpack.c.b16 %v6961_v23, %v2063_v57  ;;  %v6241_v24 = vld [vmem:[#allocation2 + $0x48] sm:$0xf] }
 0x1c9   : > { %v6243_v12 = vld [vmem:[#allocation2 + $0x4c] sm:$0x1]  ;;  %v2065_v47 = vunpack.c.l.b16 %v6241_v24 }
 0x1ca   : > { %v2120_v13 = vshll.u32 %v2073_v61, 16 }
 0x1cc   : > { %2025 = vrot.lane.b32.xlu0 %v2014_v15, %s5446_s22  ;;  %v2113_v15 = vshll.u32 %v2072_v40, 16  ;;  %v2122_v28 = vrot.slane %v2120_v13, 1 }
 0x1cd   : > { %2139 = vrot.lane.b32.xlu2 %v2109_v14, %s5446_s22  ;;  %v2018_v14 = vrot.slane %v2010_v63, 1 }
 0x1ce   : > { %v2115_v45 = vrot.slane %v2113_v15, 1  ;;  %v5237_v15 = vld [vmem:[%s6951_s3 + $0xa8] sm:$0xff] }
 0x1cf   : > { %2747 = vmatpush.bf16.msra.mxu3 %v5237_v15 }
 0x1d0   : > { %v2116_v63 = vor.u32 %v2115_v45, %v2111_v6  ;;  %v5236_v6 = vld [vmem:[%s6951_s3 + $0xa0] sm:$0xff] }
 0x1d3   : > { %2748 = vmatpush.bf16.msra.mxu3 %v5236_v6  ;;  %v5247_v6 = vld [vmem:[%s6951_s3 + $0xf8] sm:$0xff] }
 0x1d4   : > { %2027 = vrot.lane.b32.xlu0 %v2015_v0, %s5446_s22  ;;  %v6964_v0 = vunpack.c.l.b16 %v6243_v12  ;;  %2774 = vmatpush.bf16.msrb.mxu1 %v5247_v6 }
 0x1d5   : > { %2033 = vrot.lane.b32.xlu2 %v2018_v14, %s5446_s22  ;;  %v2118_v14 = vshrl.u32 %v2073_v61, 16  ;;  %v5377_v61 = vld [vmem:[#allocation2 + $0x20] sm:$0xf] }
 0x1d6   : > { %v2074_v40 = vpack.c.b16 %v6964_v0, %v2065_v47 }
 0x1d7   : > { %v2123_v43 = vor.u32 %v2122_v28, %v2118_v14 }
 0x1d8   : > { %v2125_v23 = vshrl.u32 %v2074_v40, 16  ;;  %v2127_v44 = vshll.u32 %v2074_v40, 16  ;;  %v5234_v40 = vld [vmem:[%s6951_s3 + $0x90] sm:$0xff] }
 0x1da   : > { %v2129_v45 = vrot.slane %v2127_v44, 1  ;;  %v1828_v47 = vpop.permute.xlu1 %1827 }
 0x1db   : > { %v6256_v57 = vpop.permute.xlu2 %1899  ;;  %v2193_v13 = vsel %vm639_vm9, %v5377_v61, %v1828_v47  ;;  %v1924_v47 = vpack.c.b16 %v1916_v34, %v5750_v30  ;;  %v5250_v61 = vld [vmem:[%s6951_s3 + $0x110] sm:$0xff] }
 0x1dc   : > { %2141 = vrot.lane.b32.xlu0 %v2116_v63, %s5446_s22  ;;  %v2130_v25 = vor.u32 %v2129_v45, %v2125_v23  ;;  %v5235_v63 = vld [vmem:[%s6951_s3 + $0x98] sm:$0xff]  ;;  %v2327_v28 = vunpack.c.l.b16 %v2193_v13  ;;  %v5232_v45 = vld [vmem:[%s6951_s3 + $0x80] sm:$0xff]  ;;  %v5245_v13 = vld [vmem:[%s6951_s3 + $0xe8] sm:$0xff] }
 0x1dd   : > { %2749 = vmatpush.bf16.msra.mxu3 %v5235_v63  ;;  %v1671_v34 = vld [vmem:[#allocation2 + $0x28] sm:$0xe]  ;;  %v1939_v6 = vshrl.u32 %v1924_v47, 16 }
 0x1de   : > { %2145 = vrot.lane.b32.xlu1 %v2130_v25, %s5446_s22  ;;  %v5233_v25 = vld [vmem:[%s6951_s3 + $0x88] sm:$0xff] }
 0x1e1   : > { %2750 = vmatpush.bf16.msra.mxu3 %v5234_v40  ;;  %v1670_v40 = vld [vmem:[#allocation2 + $0x20] sm:$0xe] }
 0x1e2   : > { %v6287_v63 = vpop.permute.xlu1 %1905 }
 0x1e4   : > { %2143 = vrot.lane.b32.xlu0 %v2123_v43, %s5446_s22  ;;  %v5246_v43 = vld [vmem:[%s6951_s3 + $0xf0] sm:$0xff] }
 0x1e5   : > { %2751 = vmatpush.bf16.msra.mxu3 %v5233_v25  ;;  %2775 = vmatpush.bf16.msrb.mxu1 %v5246_v43  ;;  %v1848_v43 = vunpack.c.l.b16 %v1671_v34 }
 0x1e7   : > { %v1856_v18 = vpack.c.b16 %v1750_v53, %v1848_v43 }
 0x1e8   : > { %v1830_v44 = vpop.permute.xlu2 %1829 }
 0x1e9   : > { %v2196_v15 = vsel %vm639_vm9, %v6047_v1, %v1830_v44  ;;  %v5251_v1 = vld [vmem:[%s6951_s3 + $0x118] sm:$0xff]  ;;  %2752 = vmatpush.bf16.msra.mxu3 %v5232_v45  ;;  %v1934_v44 = vshll.u32 %v5711_v37, 16  ;;  %2776 = vmatpush.bf16.msrb.mxu1 %v5245_v13  ;;  %v5244_v45 = vld [vmem:[%s6951_s3 + $0xe0] sm:$0xff]  ;;  %v1864_v55 = vrot.slane %v1856_v18, 1 }
 0x1ea   : > { %v2332_v23 = vunpack.c.l.b16 %v2196_v15  ;;  %2807 = vmatpush.bf16.msra.mxu2 %v5251_v1  ;;  %v1941_v15 = vshll.u32 %v1924_v47, 16  ;;  %v2020_v25 = vpop.permute.xlu1 %2019  ;;  %v5249_v47 = vld [vmem:[%s6951_s3 + $0x108] sm:$0xff] }
 0x1ec   : > { %v2433_v14 = vpack.c.b16 %v2332_v23, %v2327_v28  ;;  %v1936_v23 = vrot.slane %v1934_v44, 1  ;;  %v1943_v30 = vrot.slane %v1941_v15, 1 }
 0x1ed   : > { %2777 = vmatpush.bf16.msrb.mxu1 %v5244_v45  ;;  %v5248_v45 = vld [vmem:[%s6951_s3 + $0x100] sm:$0xff] }
 0x1ee   : > { %2705 = vmatmul.bf16.gmra.mxu1 %v2433_v14  ;;  %2808 = vmatpush.bf16.msra.mxu2 %v5250_v61  ;;  %v1847_v14 = vunpack.c.l.b16 %v1670_v40  ;;  %v1937_v1 = vor.u32 %v1936_v23, %v1932_v51  ;;  %v1944_v13 = vor.u32 %v1943_v30, %v1939_v6  ;;  %v5243_v23 = vld [vmem:[%s6951_s3 + $0xd8] sm:$0xff] }
 0x1ef   : > { %v1672_v6 = vld [vmem:[#allocation2 + $0x30] sm:$0xe] }
 0x1f0   : > { %v2229_v61 = vsel %vm639_vm9, %v1937_v1, %v2020_v25  ;;  %v1855_v44 = vpack.c.b16 %v1748_v16, %v1847_v14  ;;  %v5241_v1 = vld [vmem:[%s6951_s3 + $0xc8] sm:$0xff]  ;;  %v1849_v18 = vunpack.c.l.b16 %v1672_v6 }
 0x1f1   : > { %v2309_v15 = vunpack.c.l.b16 %v2229_v61  ;;  %2778 = vmatpush.bf16.msrb.mxu1 %v5243_v23  ;;  %v6332_v61 = vld [vmem:[%s6952_s4] ss:$0 sm:$0xff] }
 0x1f2   : > { %v1863_v51 = vrot.slane %v1855_v44, 1  ;;  %2809 = vmatpush.bf16.msra.mxu2 %v5249_v47 }
 0x1f4   : > { %v2217_v16 = vsel %vm639_vm9, %v1863_v51, %v6256_v57 }
 0x1f5   : > { %2779 = vmatpush.bf16.msrb.mxu1 %v5242_v2  ;;  %v2328_v14 = vunpack.c.l.b16 %v2217_v16 }
 0x1f6   : > { %2810 = vmatpush.bf16.msra.mxu2 %v5248_v45 }
 0x1f9   : > { %2780 = vmatpush.bf16.msrb.mxu1 %v5241_v1  ;;  %v1926_v1 = vpack.c.b16 %v1918_v17, %v5933_v50  ;;  %v1717_v50 = vld [vmem:[#allocation2 + $0x20] sm:$0xe] }
 0x1fb   : > { %v2696_v44 = vpop.f32.mrf.mxu1 }
 0x207   : > { %v6299_v28 = vpop.permute.xlu2 %1831 }
 0x20f   : > { %v2022_v0 = vpop.permute.xlu2 %2021 }
 0x210   : > { %v2232_v37 = vsel %vm639_vm9, %v1944_v13, %v2022_v0  ;;  %v1673_v0 = vld [vmem:[#allocation2 + $0x38] sm:$0xe] }
 0x211   : > { %v2314_v40 = vunpack.c.l.b16 %v2232_v37  ;;  %v1850_v43 = vunpack.c.l.b16 %v1673_v0  ;;  %v1857_v37 = vpack.c.b16 %v1752_v48, %v1849_v18  ;;  %v1718_v18 = vld [vmem:[#allocation2 + $0x28] sm:$0xe] }
 0x213   : > { %v2425_v30 = vpack.c.b16 %v2314_v40, %v2309_v15  ;;  %v1858_v13 = vpack.c.b16 %v1754_v22, %v1850_v43  ;;  %v2697_v15 = vadd.f32 %v6332_v61, %v2696_v44  ;;  %v5240_v40 = vld [vmem:[%s6951_s3 + $0xc0] sm:$0xff]  ;;  %v1865_v52 = vrot.slane %v1857_v37, 1 }
 0x214   : > { %2781 = vmatpush.bf16.msrb.mxu1 %v5240_v40  ;;  %v1969_v37 = vshll.u32 %v6124_v3, 16  ;;  %v1953_v40 = vshrl.u32 %v1926_v1, 16  ;;  %v1983_v3 = vshll.u32 %v1930_v11, 16 }
 0x215   : > { %2753 = vmatmul.bf16.vlgmr.msra.gmra.mxu3 %v2425_v30  ;;  %v1902_v53 = vpop.permute.xlu0 %1901  ;;  %v1866_v47 = vrot.slane %v1858_v13, 1 }
 0x216   : > { %v2220_v34 = vsel %vm639_vm9, %v1864_v55, %v1902_v53  ;;  %v2199_v55 = vsel %vm639_vm9, %v6114_v32, %v6299_v28  ;;  %v1925_v53 = vpack.c.b16 %v1917_v26, %v5835_v42  ;;  %v6358_v32 = vpop.f32.mrf.mxu1  ;;  %v1955_v28 = vshll.u32 %v1926_v1, 16 }
 0x217   : > { %v2333_v25 = vunpack.c.l.b16 %v2220_v34  ;;  %v2226_v30 = vsel %vm639_vm9, %v1866_v47, %v6287_v63  ;;  %v2024_v0 = vpop.permute.xlu2 %2023  ;;  %v2158_v47 = vunpack.c.l.b16 %v1718_v18 }
 0x218   : > { %v2343_v29 = vunpack.c.l.b16 %v2226_v30  ;;  %v1948_v6 = vshll.u32 %v1925_v53, 16  ;;  %v1946_v26 = vshrl.u32 %v1925_v53, 16  ;;  %v1957_v20 = vrot.slane %v1955_v28, 1  ;;  %v5378_v30 = vld [vmem:[#allocation2 + $0x18] sm:$0xf] }
 0x219   : > { %v2434_v57 = vpack.c.b16 %v2333_v25, %v2328_v14  ;;  %v2134_v14 = vpop.permute.xlu1 %2133  ;;  %v2337_v25 = vunpack.c.l.b16 %v2199_v55  ;;  %v1976_v28 = vshll.u32 %v6161_v10, 16 }
 0x21a   : > { %v1950_v62 = vrot.slane %v1948_v6, 1 }
 0x21b   : > { %2734 = vmatmul.bf16.gmra.mxu2 %v2434_v57 }
 0x21c   : > { %v1951_v44 = vor.u32 %v1950_v62, %v1946_v26  ;;  %v1978_v26 = vrot.slane %v1976_v28, 1 }
 0x21f   : > { %v6360_v57 = vpop.permute.xlu2 %2137 }
 0x221   : > { %v6367_v17 = vpop.permute.xlu1 %2135 }
 0x223   : > { %v2725_v23 = vpop.f32.mrf.mxu2 }
 0x224   : > { %v6342_v51 = vadd.f32 %v2725_v23, %v2697_v15  ;;  %v2157_v23 = vunpack.c.l.b16 %v1717_v50 }
 0x226   : > { %v1904_v22 = vpop.permute.xlu0 %1903 }
 0x227   : > { %v2223_v2 = vsel %vm639_vm9, %v1865_v52, %v1904_v22  ;;  %v2256_v52 = vsel %vm639_vm9, %v5378_v30, %v2134_v14  ;;  %v6976_v14 = vunpack.c.l.b16 %v6042_v54  ;;  %v2140_v1 = vpop.permute.xlu2 %2139 }
 0x228   : > { %v2338_v48 = vunpack.c.l.b16 %v2223_v2  ;;  %v2315_v55 = vunpack.c.l.b16 %v2256_v52  ;;  %v1719_v52 = vld [vmem:[#allocation2 + $0x30] sm:$0xe] }
 0x22a   : > { %v2439_v16 = vpack.c.b16 %v2343_v29, %v2338_v48  ;;  %v1971_v48 = vrot.slane %v1969_v37, 1  ;;  %v1720_v37 = vld [vmem:[#allocation2 + $0x38] sm:$0xe] }
 0x22b   : > { %v6365_v13 = vpop.f32.mrf.mxu2 }
 0x22c   : > { %2739 = vmatmul.bf16.gmra.mxu2 %v2439_v16  ;;  %v2166_v16 = vpack.c.b16 %v2058_v58, %v2158_v47 }
 0x22e   : > { %v1834_v34 = vpop.permute.xlu0 %1833 }
 0x22f   : > { %v2202_v63 = vsel %vm639_vm9, %v6141_v21, %v1834_v34  ;;  %v1927_v21 = vpack.c.b16 %v1919_v9, %v6036_v38  ;;  %v2235_v38 = vsel %vm639_vm9, %v1951_v44, %v2024_v0  ;;  %v1958_v9 = vor.u32 %v1957_v20, %v1953_v40 }
 0x230   : > { %v2342_v45 = vunpack.c.l.b16 %v2202_v63  ;;  %v2319_v53 = vunpack.c.l.b16 %v2235_v38  ;;  %v1985_v40 = vrot.slane %v1983_v3, 1  ;;  %v2262_v38 = vsel %vm639_vm9, %v6145_v59, %v6360_v57 }
 0x231   : > { %v1962_v22 = vshll.u32 %v1927_v21, 16  ;;  %v1960_v62 = vshrl.u32 %v1927_v21, 16  ;;  %v1974_v21 = vshrl.u32 %v6161_v10, 16  ;;  %v2159_v10 = vunpack.c.l.b16 %v1719_v52 }
 0x232   : > { %v2438_v43 = vpack.c.b16 %v2342_v45, %v2337_v25  ;;  %v2165_v25 = vpack.c.b16 %v6976_v14, %v2157_v23  ;;  %v2030_v45 = vpop.permute.xlu1 %2029 }
 0x233   : > { %v1964_v63 = vrot.slane %v1962_v22, 1  ;;  %v2160_v22 = vunpack.c.l.b16 %v1720_v37 }
 0x234   : > { %2710 = vmatmul.bf16.gmra.mxu1 %v2438_v43  ;;  %v1972_v43 = vor.u32 %v1971_v48, %v1967_v8  ;;  %v2173_v33 = vrot.slane %v2165_v25, 1 }
 0x235   : > { %v1965_v36 = vor.u32 %v1964_v63, %v1960_v62 }
 0x236   : > { %v2132_v42 = vpop.permute.xlu0 %2131  ;;  %v2244_v39 = vsel %vm639_vm9, %v1972_v43, %v2030_v45  ;;  %v2321_v47 = vunpack.c.l.b16 %v2173_v33  ;;  %v1722_v43 = vld [vmem:[#allocation2 + $0x48] sm:$0xe] }
 0x237   : > { %v2253_v15 = vsel %vm639_vm9, %v6137_v5, %v2132_v42  ;;  %v2174_v42 = vrot.slane %v2166_v16, 1  ;;  %v2334_v50 = vunpack.c.l.b16 %v2244_v39  ;;  %v2162_v39 = vunpack.c.l.b16 %v1722_v43 }
 0x238   : > { %v2310_v2 = vunpack.c.l.b16 %v2253_v15  ;;  %v1981_v15 = vshrl.u32 %v1930_v11, 16  ;;  %v6978_v11 = vunpack.c.l.b16 %v6181_v46  ;;  %v2265_v46 = vsel %vm639_vm9, %v6179_v49, %v2140_v1 }
 0x239   : > { %v2701_v60 = vpop.f32.mrf.mxu1  ;;  %v2326_v20 = vunpack.c.l.b16 %v2174_v42 }
 0x23a   : > { %v2702_v0 = vadd.f32 %v6332_v61, %v2701_v60  ;;  %v2426_v6 = vpack.c.b16 %v2315_v55, %v2310_v2  ;;  %v2032_v23 = vpop.permute.xlu1 %2031  ;;  %v1979_v60 = vor.u32 %v1978_v26, %v1974_v21  ;;  %v2034_v2 = vpop.permute.xlu2 %2033  ;;  %v2325_v55 = vunpack.c.l.b16 %v2262_v38 }
 0x23b   : > { %v2167_v8 = vpack.c.b16 %v6978_v11, %v2159_v10 }
 0x23c   : > { %4899 = vmatmul.msk.bf16.vlgmr.msra.gmra.mxu2 %vm639_vm9, %v2427_v35  ;;  %v2247_v16 = vsel %vm639_vm9, %v1979_v60, %v2032_v23 }
 0x23d   : > { %v2175_v25 = vrot.slane %v2167_v8, 1 }
 0x23e   : > { %v2026_v29 = vpop.permute.xlu0 %2025 }
 0x23f   : > { %v2238_v5 = vsel %vm639_vm9, %v1958_v9, %v2026_v29  ;;  %v2432_v9 = vpack.c.b16 %v2326_v20, %v2321_v47  ;;  %v5379_v29 = vld [vmem:[#allocation2 + $0x20] sm:$0xf]  ;;  %v2331_v28 = vunpack.c.l.b16 %v2175_v25 }
 0x240   : > { %v2324_v34 = vunpack.c.l.b16 %v2238_v5  ;;  %v2259_v48 = vsel %vm639_vm9, %v5379_v29, %v6367_v17  ;;  %v1986_v5 = vor.u32 %v1985_v40, %v1981_v15 }
 0x241   : > { %v2730_v35 = vpop.f32.mrf.mxu2  ;;  %v2320_v57 = vunpack.c.l.b16 %v2259_v48  ;;  %v2703_v23 = vpop.f32.mrf.mxu1 }
 0x242   : > { %v6388_v4 = vadd.f32 %v2730_v35, %v2702_v0  ;;  %v2430_v58 = vpack.c.b16 %v2324_v34, %v2319_v53  ;;  %v2250_v53 = vsel %vm639_vm9, %v1986_v5, %v2034_v2  ;;  %v6977_v0 = vunpack.c.l.b16 %v6206_v41 }
 0x243   : > { %v2339_v34 = vunpack.c.l.b16 %v2247_v16  ;;  %v2344_v35 = vunpack.c.l.b16 %v2250_v53  ;;  %v2431_v63 = vpack.c.b16 %v2325_v55, %v2320_v57  ;;  %v2999_v55 = vld [vmem:[#allocation3 + $0x4] sm:$0x1] }
 0x244   : > { %2758 = vmatmul.bf16.gmra.mxu3 %v2430_v58  ;;  %2782 = vmatmul.bf16.vlgmr.msrb.gmra.mxu1 %v2426_v6  ;;  %v2168_v59 = vpack.c.b16 %v6977_v0, %v2160_v22  ;;  %v1721_v6 = vld [vmem:[#allocation2 + $0x40] sm:$0xe]  ;;  %v6981_v0 = vmov 0  }
 0x245   : > { %v2440_v14 = vpack.c.b16 %v2344_v35, %v2339_v34  ;;  %v2161_v42 = vunpack.c.l.b16 %v1721_v6  ;;  %2993 = vst.msk [vmem:[#allocation3] sm:$0x7] %vm2992_vm2, %v6981_v0  ;;  %v3020_v34 = vld [vmem:[#allocation3 + $0x4] sm:$0x4]  ;;  %v2699_v35 = vadd.f32 %v6332_v61, %v6358_v32 }
 0x246   : > { %v2028_v54 = vpop.permute.xlu0 %2027  ;;  %v2176_v17 = vrot.slane %v2168_v59, 1  ;;  %v3000_v59 = vsel %vm5602_vm8, 0, %v2999_v55  ;;  %2995 = vst.msk [vmem:[#allocation3 + $0x14] sm:$0x7] %vm2992_vm2, %v6981_v0  ;;  %v3021_v8 = vsel %vm6441_vm15, 0, %v3020_v34  ;;  %vm3878_vm2 = vcmask 1043458  }
 0x247   : > { %v2241_v18 = vsel %vm639_vm9, %v1965_v36, %v2028_v54  ;;  %v6979_v36 = vunpack.c.l.b16 %v6227_v56  ;;  %v6980_v54 = vunpack.c.l.b16 %v6243_v12  ;;  %3001 = vst [vmem:[#allocation3 + $0x4] sm:$0x1] %v3000_v59 }
 0x248   : > { %v2329_v44 = vunpack.c.l.b16 %v2241_v18  ;;  %v2336_v45 = vunpack.c.l.b16 %v2176_v17  ;;  %v2330_v18 = vunpack.c.l.b16 %v2265_v46  ;;  %3022 = vst [vmem:[#allocation3 + $0x4] sm:$0x4] %v3021_v8  ;;  %v2728_v17 = vadd.f32 %v6365_v13, %v2699_v35 }
 0x249   : > { %v2169_v33 = vpack.c.b16 %v6979_v36, %v2161_v42  ;;  %v2170_v26 = vpack.c.b16 %v6980_v54, %v2162_v39 }
 0x24a   : > { %v2435_v30 = vpack.c.b16 %v2334_v50, %v2329_v44  ;;  %v2437_v62 = vpack.c.b16 %v2336_v45, %v2331_v28 }
 0x24b   : > { %v2177_v50 = vrot.slane %v2169_v33, 1  ;;  %v2178_v44 = vrot.slane %v2170_v26, 1 }
 0x24c   : > { %4900 = vmatmul.msk.bf16.gmra.mxu2 %vm639_vm9, %v2432_v9 }
 0x24d   : > { %v2346_v37 = vunpack.c.l.b16 %v2178_v44 }
 0x24e   : > { %v2142_v58 = vpop.permute.xlu0 %2141 }
 0x24f   : > { %v2268_v41 = vsel %vm639_vm9, %v6204_v27, %v2142_v58  ;;  %v2341_v27 = vunpack.c.l.b16 %v2177_v50 }
 0x250   : > { %v2335_v3 = vunpack.c.l.b16 %v2268_v41  ;;  %v2146_v40 = vpop.permute.xlu1 %2145 }
 0x251   : > { %v2274_v56 = vsel %vm639_vm9, %v6241_v24, %v2146_v40  ;;  %v2442_v1 = vpack.c.b16 %v2346_v37, %v2341_v27  ;;  %v3023_v37 = vld [vmem:[#allocation3 + $0x8] sm:$0x4] }
 0x252   : > { %v2436_v20 = vpack.c.b16 %v2335_v3, %v2330_v18  ;;  %v2345_v21 = vunpack.c.l.b16 %v2274_v56  ;;  %v3002_v18 = vld [vmem:[#allocation3 + $0x8] sm:$0x1] }
 0x253   : > { %v3003_v27 = vsel %vm5602_vm8, 0, %v3002_v18 }
 0x254   : > { %2763 = vmatmul.bf16.gmra.mxu3 %v2435_v30  ;;  %2787 = vmatmul.bf16.gmra.mxu1 %v2431_v63  ;;  %v6420_v30 = vpop.f32.mrf.mxu2  ;;  %3004 = vst [vmem:[#allocation3 + $0x8] sm:$0x1] %v3003_v27 }
 0x256   : > { %v2144_v15 = vpop.permute.xlu0 %2143 }
 0x257   : > { %v2271_v49 = vsel %vm639_vm9, %v6225_v19, %v2144_v15 }
 0x258   : > { %v2340_v12 = vunpack.c.l.b16 %v2271_v49  ;;  %v3024_v49 = vsel %vm6441_vm15, 0, %v3023_v37 }
 0x259   : > { %3025 = vst [vmem:[#allocation3 + $0x8] sm:$0x4] %v3024_v49 }
 0x25a   : > { %v2441_v47 = vpack.c.b16 %v2345_v21, %v2340_v12 }
 0x25c   : > { %4901 = vmatmul.msk.bf16.gmra.mxu2 %vm639_vm9, %v2437_v62 }
 0x264   : > { %2768 = vmatmul.bf16.gmra.mxu3 %v2440_v14  ;;  %2792 = vmatmul.bf16.gmra.mxu1 %v2436_v20  ;;  %v2704_v20 = vadd.f32 %v6332_v61, %v2703_v23 }
 0x26b   : > { %v2706_v52 = vpop.f32.mrf.mxu1 }
 0x26c   : > { %4902 = vmatmul.msk.bf16.gmra.mxu2 %vm639_vm9, %v2442_v1  ;;  %v2707_v38 = vadd.f32 %v6332_v61, %v2706_v52 }
 0x273   : > { %v6427_v22 = vpop.f32.mrf.mxu1 }
 0x274   : > { %2797 = vmatmul.bf16.gmra.mxu1 %v2441_v47  ;;  %v2733_v47 = vadd.f32 %v6420_v30, %v2704_v20  ;;  %v3005_v20 = vld [vmem:[#allocation3 + $0xc] sm:$0x1] }
 0x275   : > { %v3006_v37 = vsel %vm5602_vm8, 0, %v3005_v20 }
 0x276   : > { %3007 = vst [vmem:[#allocation3 + $0xc] sm:$0x1] %v3006_v37 }
 0x298   : > { %v2754_v29 = vpop.f32.mrf.mxu3 }
 0x299   : > { %v2755_v11 = vadd.f32 %v2754_v29, %v6342_v51 }
 0x29e   : > { %v2735_v60 = vpop.f32.mrf.mxu2 }
 0x29f   : > { %v6423_v9 = vadd.f32 %v2735_v60, %v2707_v38 }
 0x2a0   : > { %v2756_v16 = vpop.f32.mrf.mxu3 }
 0x2a1   : > { %v2757_v25 = vadd.f32 %v2756_v16, %v2728_v17 }
 0x2a6   : > { %v6425_v19 = vpop.f32.mrf.mxu2 }
 0x2af   : > { %v6429_v24 = vpop.f32.mrf.mxu2 }
 0x2b1   : > { %v6431_v2 = vpop.f32.mrf.mxu1 }
 0x2b2   : > { %v2712_v8 = vadd.f32 %v6332_v61, %v6431_v2 }
 0x2b7   : > { %v6433_v48 = vpop.f32.mrf.mxu2 }
 0x2b9   : > { %v6435_v5 = vpop.f32.mrf.mxu1 }
 0x2bf   : > { %v2812_v10 = vpop.f32.mrf.mxu2 }
 0x2c1   : > { %v2783_v53 = vpop.f32.mrf.mxu1 }
 0x2c2   : > { %v2784_v63 = vadd.f32 %v2783_v53, %v2755_v11 }
 0x2c4   : > { %v2813_v45 = vadd.f32 %v2812_v10, %v2784_v63 }
 0x2c6   : > { %v2832_v43 = vmax.f32 %v2813_v45, 0.0 }
 0x2c7   : > { %v2759_v14 = vpop.f32.mrf.mxu3  ;;  %v2814_v58 = vpop.f32.mrf.mxu2 }
 0x2c8   : > { %v2840_v42 = vsel %vm639_vm9, %v2832_v43, -inf  ;;  %v2760_v36 = vadd.f32 %v2759_v14, %v6388_v4 }
 0x2c9   : > { %v2785_v6 = vpop.f32.mrf.mxu1 }
 0x2ca   : > { %v2786_v51 = vadd.f32 %v2785_v6, %v2757_v25 }
 0x2cc   : > { %v2815_v28 = vadd.f32 %v2814_v58, %v2786_v51 }
 0x2ce   : > { %v2833_v41 = vmax.f32 %v2815_v28, 0.0  ;;  %v2709_v28 = vadd.f32 %v6332_v61, %v6427_v22 }
 0x2cf   : > { %v2761_v62 = vpop.f32.mrf.mxu3  ;;  %v2817_v46 = vpop.f32.mrf.mxu2 }
 0x2d0   : > { %v2841_v39 = vsel %vm639_vm9, %v2833_v41, -inf  ;;  %v2762_v10 = vadd.f32 %v2761_v62, %v2733_v47  ;;  %v6471_v62 = vadd.f32 %v6429_v24, %v2712_v8 }
 0x2d1   : > { %v2842_v32 = vmax.f32 %v2840_v42, %v2841_v39  ;;  %v2788_v3 = vpop.f32.mrf.mxu1 }
 0x2d2   : > { %v2789_v44 = vadd.f32 %v2788_v3, %v2760_v36  ;;  %v2738_v3 = vadd.f32 %v6425_v19, %v2709_v28 }
 0x2d3   : > { %v2856_v13 = vrot.slane %v2842_v32, 2  ;;  %v2857_v33 = vrot.slane %v2842_v32, 4  ;;  %v2858_v54 = vrot.slane %v2842_v32, 6  ;;  %v2880_v26 = vsel %vm800_vm10, %v2842_v32, -inf }
 0x2d4   : > { %v2881_v50 = vrot.slane %v2880_v26, 4  ;;  %v2818_v55 = vadd.f32 %v2817_v46, %v2789_v44 }
 0x2d5   : > { %v2887_v15 = vsel %vm800_vm10, %v2856_v13, -inf  ;;  %v2894_v40 = vsel %vm800_vm10, %v2857_v33, -inf  ;;  %v2901_v4 = vsel %vm800_vm10, %v2858_v54, -inf }
 0x2d6   : > { %v2882_v56 = vmax.f32 %v2880_v26, %v2881_v50  ;;  %v2888_v1 = vrot.slane %v2887_v15, 4  ;;  %v2895_v12 = vrot.slane %v2894_v40, 4  ;;  %v2902_v21 = vrot.slane %v2901_v4, 4  ;;  %v3026_v50 = vld [vmem:[#allocation3 + $0xc] sm:$0x4] }
 0x2d7   : > { %v2764_v23 = vpop.f32.mrf.mxu3  ;;  %v2819_v16 = vpop.f32.mrf.mxu2  ;;  %v2834_v25 = vmax.f32 %v2818_v55, 0.0  ;;  %v3027_v19 = vsel %vm6441_vm15, 0, %v3026_v50 }
 0x2d8   : > { %v2883_v52 = vrot.slane %v2882_v56, 2  ;;  %v2889_v38 = vmax.f32 %v2887_v15, %v2888_v1  ;;  %v2896_v60 = vmax.f32 %v2894_v40, %v2895_v12  ;;  %v2903_v29 = vmax.f32 %v2901_v4, %v2902_v21  ;;  %3028 = vst [vmem:[#allocation3 + $0xc] sm:$0x4] %v3027_v19 }
 0x2d9   : > { %v2790_v53 = vpop.f32.mrf.mxu1  ;;  %v2765_v36 = vadd.f32 %v2764_v23, %v6423_v9  ;;  %v2843_v24 = vsel %vm639_vm9, %v2834_v25, -inf }
 0x2da   : > { %v2884_v0 = vmax.f32 %v2882_v56, %v2883_v52  ;;  %v2890_v59 = vrot.slane %v2889_v38, 2  ;;  %v2897_v34 = vrot.slane %v2896_v60, 2  ;;  %v2904_v11 = vrot.slane %v2903_v29, 2 }
 0x2db   : > { %v2791_v35 = vadd.f32 %v2790_v53, %v2762_v10  ;;  %v3107_v53 = vld [vmem:[#allocation3 + $0x4] sm:$0x7] }
 0x2dc   : > { %v2885_v63 = vrot.slane %v2884_v0, 1  ;;  %v2891_v17 = vmax.f32 %v2889_v38, %v2890_v59  ;;  %v2898_v30 = vmax.f32 %v2896_v60, %v2897_v34  ;;  %v2905_v14 = vmax.f32 %v2903_v29, %v2904_v11 }
 0x2dd   : > { %v2820_v45 = vadd.f32 %v2819_v16, %v2791_v35 }
 0x2de   : > { %v2886_v58 = vmax.f32 %v2884_v0, %v2885_v63  ;;  %v2892_v6 = vrot.slane %v2891_v17, 1  ;;  %v2899_v51 = vrot.slane %v2898_v30, 1  ;;  %v2906_v43 = vrot.slane %v2905_v14, 1 }
 0x2df   : > { %v2835_v41 = vmax.f32 %v2820_v45, 0.0  ;;  %v2766_v32 = vpop.f32.mrf.mxu3  ;;  %v2822_v33 = vpop.f32.mrf.mxu2 }
 0x2e0   : > { %v2893_v42 = vmax.f32 %v2891_v17, %v2892_v6  ;;  %v2900_v2 = vmax.f32 %v2898_v30, %v2899_v51  ;;  %v2907_v39 = vmax.f32 %v2905_v14, %v2906_v43  ;;  %v3035_v46 = vpack.c.bf16 %v2886_v58, %v2886_v58 }
 0x2e1   : > { %v2844_v13 = vsel %vm639_vm9, %v2835_v41, -inf  ;;  %v2793_v54 = vpop.f32.mrf.mxu1  ;;  %v2767_v4 = vadd.f32 %v2766_v32, %v2738_v3  ;;  %v3017_v32 = vld [vmem:[#allocation3] sm:$0x4] }
 0x2e2   : > { %v3036_v26 = vpack.c.bf16 %v2893_v42, %v2893_v42  ;;  %v3037_v22 = vpack.c.bf16 %v2900_v2, %v2900_v2  ;;  %v3038_v18 = vpack.c.bf16 %v2907_v39, %v2907_v39  ;;  %v2845_v44 = vmax.f32 %v2843_v24, %v2844_v13 }
 0x2e3   : > { %v2794_v27 = vadd.f32 %v2793_v54, %v2765_v36  ;;  %v3067_v9 = vunpack.c.l.b16 %v3035_v46  ;;  %v2996_v46 = vld [vmem:[#allocation3] sm:$0x1] }
 0x2e4   : > { %v3068_v15 = vunpack.c.l.b16 %v3036_v26  ;;  %v3069_v40 = vunpack.c.l.b16 %v3037_v22  ;;  %v2859_v49 = vrot.slane %v2845_v44, 2  ;;  %v2860_v56 = vrot.slane %v2845_v44, 4 }
 0x2e5   : > { %v2861_v1 = vrot.slane %v2845_v44, 6  ;;  %v2908_v12 = vsel %vm800_vm10, %v2845_v44, -inf  ;;  %v3070_v21 = vunpack.c.l.b16 %v3038_v18  ;;  %v2823_v52 = vadd.f32 %v2822_v33, %v2794_v27 }
 0x2e6   : > { %v3083_v47 = vsel %vm1513_vm11, %v3068_v15, %v3067_v9  ;;  %v2909_v23 = vrot.slane %v2908_v12, 4  ;;  %v2915_v60 = vsel %vm800_vm10, %v2859_v49, -inf  ;;  %v2922_v29 = vsel %vm800_vm10, %v2860_v56, -inf }
 0x2e7   : > { %v3084_v38 = vsel %vm1515_vm12, %v3069_v40, %v3083_v47  ;;  %v2929_v16 = vsel %vm800_vm10, %v2861_v1, -inf  ;;  %v2916_v59 = vrot.slane %v2915_v60, 4  ;;  %v2923_v34 = vrot.slane %v2922_v29, 4  ;;  %v2769_v14 = vpop.f32.mrf.mxu3  ;;  %v2824_v51 = vpop.f32.mrf.mxu2 }
 0x2e8   : > { %v3085_v10 = vsel %vm1517_vm13, %v3070_v21, %v3084_v38  ;;  %v2910_v0 = vmax.f32 %v2908_v12, %v2909_v23  ;;  %v2930_v8 = vrot.slane %v2929_v16, 4  ;;  %v2836_v6 = vmax.f32 %v2823_v52, 0.0 }
 0x2e9   : > { %v3095_v11 = vpack.c.b16 %v3085_v10, %v3085_v10  ;;  %v2795_v35 = vpop.f32.mrf.mxu1  ;;  %v2917_v17 = vmax.f32 %v2915_v60, %v2916_v59  ;;  %v2924_v30 = vmax.f32 %v2922_v29, %v2923_v34  ;;  %v2770_v39 = vadd.f32 %v2769_v14, %v6471_v62 }
 0x2ea   : > { %v2911_v63 = vrot.slane %v2910_v0, 2  ;;  %v2796_v25 = vadd.f32 %v2795_v35, %v2767_v4  ;;  %v2931_v58 = vmax.f32 %v2929_v16, %v2930_v8  ;;  %v2846_v26 = vsel %vm639_vm9, %v2836_v6, -inf }
 0x2eb   : > { %v3108_v45 = vsel %vm6490_vm1, %v3095_v11, %v3107_v53  ;;  %v2918_v28 = vrot.slane %v2917_v17, 2  ;;  %v2925_v41 = vrot.slane %v2924_v30, 2  ;;  %v2997_v22 = vsel %vm5602_vm8, 0, %v2996_v46 }
 0x2ec   : > { %3109 = vst [vmem:[#allocation3 + $0x4] sm:$0x7] %v3108_v45  ;;  %v2912_v43 = vmax.f32 %v2910_v0, %v2911_v63  ;;  %v2825_v42 = vadd.f32 %v2824_v51, %v2796_v25  ;;  %v2932_v2 = vrot.slane %v2931_v58, 2  ;;  %v3018_v18 = vsel %vm6441_vm15, 0, %v3017_v32 }
 0x2ed   : > { %v2919_v36 = vmax.f32 %v2917_v17, %v2918_v28  ;;  %v2926_v13 = vmax.f32 %v2924_v30, %v2925_v41  ;;  %2998 = vst [vmem:[#allocation3] sm:$0x1] %v2997_v22  ;;  %v2714_v44 = vadd.f32 %v6332_v61, %v6435_v5  ;;  %v3110_v28 = vld [vmem:[#allocation3 + $0x8] sm:$0x7] }
 0x2ee   : > { %v2913_v3 = vrot.slane %v2912_v43, 1  ;;  %v2837_v33 = vmax.f32 %v2825_v42, 0.0  ;;  %v2933_v54 = vmax.f32 %v2931_v58, %v2932_v2  ;;  %3019 = vst [vmem:[#allocation3] sm:$0x4] %v3018_v18 }
 0x2ef   : > { %v2920_v20 = vrot.slane %v2919_v36, 1  ;;  %v2927_v50 = vrot.slane %v2926_v13, 1  ;;  %v2827_v0 = vpop.f32.mrf.mxu2  ;;  %v2743_v8 = vadd.f32 %v6433_v48, %v2714_v44  ;;  %v2771_v58 = vpop.f32.mrf.mxu3 }
 0x2f0   : > { %v2914_v24 = vmax.f32 %v2912_v43, %v2913_v3  ;;  %v2847_v62 = vsel %vm639_vm9, %v2837_v33, -inf  ;;  %v2934_v27 = vrot.slane %v2933_v54, 1 }
 0x2f1   : > { %v2848_v37 = vmax.f32 %v2846_v26, %v2847_v62  ;;  %v2798_v19 = vpop.f32.mrf.mxu1  ;;  %v2921_v9 = vmax.f32 %v2919_v36, %v2920_v20  ;;  %v2928_v15 = vmax.f32 %v2926_v13, %v2927_v50  ;;  %v2772_v13 = vadd.f32 %v2771_v58, %v2743_v8  ;;  %v3008_v26 = vld [vmem:[#allocation3 + $0x10] sm:$0x1]  ;;  %v3029_v50 = vld [vmem:[#allocation3 + $0x10] sm:$0x4] }
 0x2f2   : > { %v3039_v40 = vpack.c.bf16 %v2914_v24, %v2914_v24  ;;  %v2799_v4 = vadd.f32 %v2798_v19, %v2770_v39  ;;  %v2935_v49 = vmax.f32 %v2933_v54, %v2934_v27 }
 0x2f3   : > { %v2862_v56 = vrot.slane %v2848_v37, 2  ;;  %v2863_v1 = vrot.slane %v2848_v37, 4  ;;  %v2864_v12 = vrot.slane %v2848_v37, 6  ;;  %v3040_v21 = vpack.c.bf16 %v2921_v9, %v2921_v9  ;;  %v3131_v33 = vld [vmem:[#allocation3 + $0x4] sm:$0x3] }
 0x2f4   : > { %v3041_v47 = vpack.c.bf16 %v2928_v15, %v2928_v15  ;;  %v3071_v23 = vunpack.c.l.b16 %v3039_v40  ;;  %v2936_v52 = vsel %vm800_vm10, %v2848_v37, -inf  ;;  %v3042_v38 = vpack.c.bf16 %v2935_v49, %v2935_v49 }
 0x2f5   : > { %v2937_v60 = vrot.slane %v2936_v52, 4  ;;  %v2943_v61 = vsel %vm800_vm10, %v2862_v56, -inf  ;;  %v2950_v5 = vsel %vm800_vm10, %v2863_v1, -inf  ;;  %v3072_v29 = vunpack.c.l.b16 %v3040_v21  ;;  %v3123_v14 = vld [vmem:[#allocation3] sm:$0x7] }
 0x2f6   : > { %v3073_v16 = vunpack.c.l.b16 %v3041_v47  ;;  %v2944_v10 = vrot.slane %v2943_v61, 4  ;;  %v2951_v53 = vrot.slane %v2950_v5, 4  ;;  %v3074_v59 = vunpack.c.l.b16 %v3042_v38  ;;  %v3139_v38 = vld [vmem:[#allocation3 + $0x4] sm:$0x6] }
 0x2f7   : > { %v2938_v34 = vmax.f32 %v2936_v52, %v2937_v60  ;;  %v2957_v11 = vsel %vm800_vm10, %v2864_v12, -inf  ;;  %v3086_v35 = vsel %vm1513_vm11, %v3072_v29, %v3071_v23  ;;  %v3160_v6 = vunpack.c.l.b16 %v3123_v14  ;;  %v2829_v1 = vpop.f32.mrf.mxu2  ;;  %v3011_v60 = vld [vmem:[#allocation3 + $0x14] sm:$0x1] }
 0x2f8   : > { %v2945_v63 = vmax.f32 %v2943_v61, %v2944_v10  ;;  %v2952_v17 = vmax.f32 %v2950_v5, %v2951_v53  ;;  %v2958_v30 = vrot.slane %v2957_v11, 4  ;;  %v3087_v25 = vsel %vm1515_vm12, %v3073_v16, %v3086_v35  ;;  %v3032_v10 = vld [vmem:[#allocation3 + $0x14] sm:$0x4] }
 0x2f9   : > { %v2939_v45 = vrot.slane %v2938_v34, 2  ;;  %v2828_v51 = vadd.f32 %v2827_v0, %v2799_v4  ;;  %v3088_v43 = vsel %vm1517_vm13, %v3074_v59, %v3087_v25  ;;  %v3164_v46 = vpack.c.b16 %v3160_v6, %v3160_v6  ;;  %v2800_v54 = vpop.f32.mrf.mxu1 }
 0x2fa   : > { %v2946_v41 = vrot.slane %v2945_v63, 2  ;;  %v2953_v42 = vrot.slane %v2952_v17, 2  ;;  %v2959_v2 = vmax.f32 %v2957_v11, %v2958_v30  ;;  %v3096_v39 = vpack.c.b16 %v3088_v43, %v3088_v43 }
 0x2fb   : > { %v2940_v48 = vmax.f32 %v2938_v34, %v2939_v45  ;;  %v3169_v24 = vshrl.u32 %v3164_v46, 16  ;;  %v3171_v20 = vshll.u32 %v3164_v46, 16  ;;  %v2838_v37 = vmax.f32 %v2828_v51, 0.0 }
 0x2fc   : > { %v2947_v32 = vmax.f32 %v2945_v63, %v2946_v41  ;;  %v2954_v3 = vmax.f32 %v2952_v17, %v2953_v42  ;;  %v2960_v36 = vrot.slane %v2959_v2, 2  ;;  %v3111_v22 = vsel %vm6490_vm1, %v3096_v39, %v3110_v28  ;;  %v3113_v41 = vld [vmem:[#allocation3 + $0xc] sm:$0x7] }
 0x2fd   : > { %v2941_v18 = vrot.slane %v2940_v48, 1  ;;  %3112 = vst [vmem:[#allocation3 + $0x8] sm:$0x7] %v3111_v22  ;;  %v3173_v9 = vrot.slane %v3171_v20, 1  ;;  %v2801_v15 = vadd.f32 %v2800_v54, %v2772_v13  ;;  %v3009_v40 = vsel %vm5602_vm8, 0, %v3008_v26 }
 0x2fe   : > { %v2948_v62 = vrot.slane %v2947_v32, 1  ;;  %v2955_v44 = vrot.slane %v2954_v3, 1  ;;  %v2961_v27 = vmax.f32 %v2959_v2, %v2960_v36  ;;  %3010 = vst [vmem:[#allocation3 + $0x10] sm:$0x1] %v3009_v40  ;;  %v3030_v12 = vsel %vm6441_vm15, 0, %v3029_v50 }
 0x2ff   : > { %v2942_v19 = vmax.f32 %v2940_v48, %v2941_v18  ;;  %v3174_v47 = vor.u32 %v3173_v9, %v3169_v24  ;;  %v3224_v23 = vunpack.c.l.b16 %v3131_v33  ;;  %v2830_v52 = vadd.f32 %v2829_v1, %v2801_v15  ;;  %3031 = vst [vmem:[#allocation3 + $0x10] sm:$0x4] %v3030_v12 }
 0x300   : > { %v2949_v4 = vmax.f32 %v2947_v32, %v2948_v62  ;;  %v2956_v49 = vmax.f32 %v2954_v3, %v2955_v44  ;;  %v2962_v56 = vrot.slane %v2961_v27, 1  ;;  %v3284_v16 = vunpack.c.l.b16 %v3139_v38 }
 0x301   : > { %v3043_v21 = vpack.c.bf16 %v2942_v19, %v2942_v19  ;;  %3196 = vrot.lane.b32.xlu2 %v3174_v47, %s5446_s22  ;;  %v2839_v0 = vmax.f32 %v2830_v52, 0.0  ;;  %v3012_v59 = vsel %vm5602_vm8, 0, %v3011_v60  ;;  %v3033_v34 = vsel %vm6441_vm15, 0, %v3032_v10 }
 0x302   : > { %v2963_v61 = vmax.f32 %v2961_v27, %v2962_v56  ;;  %v3044_v5 = vpack.c.bf16 %v2949_v4, %v2949_v4  ;;  %v3045_v29 = vpack.c.bf16 %v2956_v49, %v2956_v49  ;;  %v3288_v63 = vpack.c.b16 %v3284_v16, %v3284_v16  ;;  %3013 = vst [vmem:[#allocation3 + $0x14] sm:$0x1] %v3012_v59 }
 0x303   : > { %v3075_v53 = vunpack.c.l.b16 %v3043_v21  ;;  %v2849_v17 = vsel %vm639_vm9, %v2838_v37, -inf  ;;  %v2850_v30 = vsel %vm639_vm9, %v2839_v0, -inf  ;;  %3034 = vst [vmem:[#allocation3 + $0x14] sm:$0x4] %v3033_v34  ;;  %v3228_v57 = vpack.c.b16 %v3224_v23, %v3224_v23 }
 0x304   : > { %v3046_v11 = vpack.c.bf16 %v2963_v61, %v2963_v61  ;;  %v3076_v8 = vunpack.c.l.b16 %v3044_v5  ;;  %v3077_v35 = vunpack.c.l.b16 %v3045_v29  ;;  %v3132_v14 = vld [vmem:[#allocation3 + $0x8] sm:$0x3]  ;;  %v2851_v58 = vmax.f32 %v2849_v17, %v2850_v30 }
 0x305   : > { %v3292_v6 = vrot.slane %v3288_v63, 1  ;;  %v3225_v43 = vunpack.c.l.b16 %v3132_v14  ;;  %v3140_v12 = vld [vmem:[#allocation3 + $0x8] sm:$0x6] }
 0x306   : > { %v3078_v25 = vunpack.c.l.b16 %v3046_v11  ;;  %v3089_v45 = vsel %vm1513_vm11, %v3076_v8, %v3075_v53  ;;  %v2865_v42 = vrot.slane %v2851_v58, 2  ;;  %v2866_v2 = vrot.slane %v2851_v58, 4  ;;  %v3148_v52 = vld [vmem:[#allocation3 + $0x8] sm:$0x7] }
 0x307   : > { %v3090_v51 = vsel %vm1515_vm12, %v3077_v35, %v3089_v45  ;;  %v2867_v39 = vrot.slane %v2851_v58, 6  ;;  %3296 = vrot.lane.b32.xlu0 %v3292_v6, %s5446_s22  ;;  %v2964_v46 = vsel %vm800_vm10, %v2851_v58, -inf  ;;  %v3229_v20 = vpack.c.b16 %v3225_v43, %v3225_v43 }
 0x308   : > { %v3091_v28 = vsel %vm1517_vm13, %v3078_v25, %v3090_v51  ;;  %v2965_v32 = vrot.slane %v2964_v46, 4  ;;  %v2971_v3 = vsel %vm800_vm10, %v2865_v42, -inf  ;;  %v2978_v36 = vsel %vm800_vm10, %v2866_v2, -inf }
 0x309   : > { %v3097_v48 = vpack.c.b16 %v3091_v28, %v3091_v28  ;;  %v2985_v13 = vsel %vm800_vm10, %v2867_v39, -inf  ;;  %3232 = vrot.lane.b32.xlu2 %v3228_v57, %s5446_s22  ;;  %v2972_v54 = vrot.slane %v2971_v3, 4  ;;  %v2979_v26 = vrot.slane %v2978_v36, 4 }
 0x30a   : > { %v2986_v22 = vrot.slane %v2985_v13, 4  ;;  %v2966_v18 = vmax.f32 %v2964_v46, %v2965_v32  ;;  %v3151_v24 = vld [vmem:[#allocation3 + $0x14] sm:$0x7]  ;;  %v3285_v10 = vunpack.c.l.b16 %v3140_v12  ;;  %v3308_v8 = vunpack.c.l.b16 %v3148_v52  ;;  %v3124_v12 = vld [vmem:[#allocation3 + $0x4] sm:$0x7] }
 0x30b   : > { %v3114_v33 = vsel %vm6490_vm1, %v3097_v48, %v3113_v41  ;;  %v2973_v50 = vmax.f32 %v2971_v3, %v2972_v54  ;;  %v2980_v62 = vmax.f32 %v2978_v36, %v2979_v26  ;;  %v3311_v27 = vunpack.c.l.b16 %v3151_v24  ;;  %v3116_v36 = vld [vmem:[#allocation3 + $0x10] sm:$0x7] }
 0x30c   : > { %3115 = vst [vmem:[#allocation3 + $0xc] sm:$0x7] %v3114_v33  ;;  %v2987_v44 = vmax.f32 %v2985_v13, %v2986_v22  ;;  %v2967_v37 = vrot.slane %v2966_v18, 2  ;;  %v3289_v58 = vpack.c.b16 %v3285_v10, %v3285_v10  ;;  %v3312_v41 = vpack.c.b16 %v3308_v8, %v3308_v8 }
 0x30d   : > { %v2974_v19 = vrot.slane %v2973_v50, 2  ;;  %v2981_v9 = vrot.slane %v2980_v62, 2  ;;  %v3315_v40 = vpack.c.b16 %v3311_v27, %v3311_v27 }
 0x30e   : > { %v2988_v15 = vrot.slane %v2987_v44, 2  ;;  %v2968_v4 = vmax.f32 %v2966_v18, %v2967_v37  ;;  %v3293_v46 = vrot.slane %v3289_v58, 1  ;;  %v3319_v33 = vshll.u32 %v3312_v41, 16 }
 0x30f   : > { %3234 = vrot.lane.b32.xlu0 %v3229_v20, %s5446_s22  ;;  %v2975_v49 = vmax.f32 %v2973_v50, %v2974_v19  ;;  %v2982_v56 = vmax.f32 %v2980_v62, %v2981_v9  ;;  %v3338_v47 = vshrl.u32 %v3315_v40, 16  ;;  %v3340_v23 = vshll.u32 %v3315_v40, 16  ;;  %v3125_v20 = vld [vmem:[#allocation3 + $0x8] sm:$0x7] }
 0x310   : > { %v2989_v1 = vmax.f32 %v2987_v44, %v2988_v15  ;;  %v2969_v21 = vrot.slane %v2968_v4, 1  ;;  %v3321_v24 = vrot.slane %v3319_v33, 1  ;;  %v3317_v62 = vshrl.u32 %v3312_v41, 16  ;;  %v5256_v41 = vld [vmem:[%s6953_s5 + $0x20] sm:$0xff] }
 0x311   : > { %v2976_v38 = vrot.slane %v2975_v49, 1  ;;  %v2983_v60 = vrot.slane %v2982_v56, 1  ;;  %v3342_v16 = vrot.slane %v3340_v23, 1  ;;  %v3162_v27 = vunpack.c.l.b16 %v3125_v20 }
 0x312   : > { %v2990_v61 = vrot.slane %v2989_v1, 1  ;;  %v2970_v29 = vmax.f32 %v2968_v4, %v2969_v21  ;;  %v3322_v44 = vor.u32 %v3321_v24, %v3317_v62  ;;  %v5274_v24 = vld [vmem:[%s6953_s5 + $0xb0] sm:$0xff] }
 0x313   : > { %v3141_v5 = vld [vmem:[#allocation3 + $0xc] sm:$0x6]  ;;  %v2977_v59 = vmax.f32 %v2975_v49, %v2976_v38  ;;  %v2984_v34 = vmax.f32 %v2982_v56, %v2983_v60  ;;  %v3343_v63 = vor.u32 %v3342_v16, %v3338_v47 }
 0x314   : > { %v3286_v53 = vunpack.c.l.b16 %v3141_v5  ;;  %v3149_v0 = vld [vmem:[#allocation3 + $0xc] sm:$0x7]  ;;  %v2991_v11 = vmax.f32 %v2989_v1, %v2990_v61  ;;  %v3047_v35 = vpack.c.bf16 %v2970_v29, %v2970_v29  ;;  %v3166_v1 = vpack.c.b16 %v3162_v27, %v3162_v27 }
 0x315   : > { %v3309_v30 = vunpack.c.l.b16 %v3149_v0  ;;  %v3048_v14 = vpack.c.bf16 %v2977_v59, %v2977_v59  ;;  %v3049_v25 = vpack.c.bf16 %v2984_v34, %v2984_v34  ;;  %3350 = vrot.lane.b32.xlu1 %v3343_v63, %s5446_s22  ;;  %v3126_v18 = vld [vmem:[#allocation3 + $0xc] sm:$0x7]  ;;  %v3161_v61 = vunpack.c.l.b16 %v3124_v12  ;;  %v3136_v12 = vld [vmem:[#allocation3 + $0x8] sm:$0x7] }
 0x316   : > { %v3290_v17 = vpack.c.b16 %v3286_v53, %v3286_v53  ;;  %v3050_v45 = vpack.c.bf16 %v2991_v11, %v2991_v11  ;;  %v3079_v57 = vunpack.c.l.b16 %v3047_v35  ;;  %v3163_v50 = vunpack.c.l.b16 %v3126_v18  ;;  %v3133_v37 = vld [vmem:[#allocation3 + $0xc] sm:$0x3] }
 0x317   : > { %v3313_v51 = vpack.c.b16 %v3309_v30, %v3309_v30  ;;  %v3080_v43 = vunpack.c.l.b16 %v3048_v14  ;;  %v3081_v28 = vunpack.c.l.b16 %v3049_v25  ;;  %v3226_v56 = vunpack.c.l.b16 %v3133_v37  ;;  %v3137_v20 = vld [vmem:[#allocation3 + $0xc] sm:$0x7]  ;;  %v5281_v37 = vld [vmem:[%s6953_s5 + $0xe8] sm:$0xff] }
 0x318   : > { %v3294_v6 = vrot.slane %v3290_v17, 1  ;;  %v3082_v2 = vunpack.c.l.b16 %v3050_v45  ;;  %v3167_v19 = vpack.c.b16 %v3163_v50, %v3163_v50  ;;  %v3185_v29 = vshll.u32 %v3166_v1, 16  ;;  %v5259_v45 = vld [vmem:[%s6953_s5 + $0x38] sm:$0xff] }
 0x319   : > { %v3326_v42 = vshll.u32 %v3313_v51, 16  ;;  %v3092_v39 = vsel %vm1513_vm11, %v3080_v43, %v3079_v57  ;;  %v3324_v54 = vshrl.u32 %v3313_v51, 16  ;;  %v3230_v5 = vpack.c.b16 %v3226_v56, %v3226_v56  ;;  %3789 = vmatpush.bf16.msrb.mxu3 %v5259_v45  ;;  %v5257_v57 = vld [vmem:[%s6953_s5 + $0x28] sm:$0xff]  ;;  %v5271_v45 = vld [vmem:[%s6953_s5 + $0x98] sm:$0xff] }
 0x31a   : > { %3300 = vrot.lane.b32.xlu2 %v3294_v6, %s5446_s22  ;;  %v3093_v48 = vsel %vm1515_vm12, %v3081_v28, %v3092_v39  ;;  %v3192_v52 = vshll.u32 %v3167_v19, 16  ;;  %v3190_v53 = vshrl.u32 %v3167_v19, 16  ;;  %v3165_v0 = vpack.c.b16 %v3161_v61, %v3161_v61  ;;  %v5258_v6 = vld [vmem:[%s6953_s5 + $0x30] sm:$0xff]  ;;  %v3135_v28 = vld [vmem:[#allocation3 + $0x4] sm:$0x7]  ;;  %v5253_v19 = vld [vmem:[%s6953_s5 + $0x8] sm:$0xff] }
 0x31b   : > { %v3328_v32 = vrot.slane %v3326_v42, 1  ;;  %v3094_v3 = vsel %vm1517_vm13, %v3082_v2, %v3093_v48  ;;  %v3187_v59 = vrot.slane %v3185_v29, 1  ;;  %v3183_v8 = vshrl.u32 %v3166_v1, 16  ;;  %v3127_v42 = vld [vmem:[#allocation3] sm:$0x6]  ;;  %v5272_v61 = vld [vmem:[%s6953_s5 + $0xa0] sm:$0xff] }
 0x31c   : > { %v3098_v13 = vpack.c.b16 %v3094_v3, %v3094_v3  ;;  %v3194_v16 = vrot.slane %v3192_v52, 1  ;;  %v3178_v63 = vshll.u32 %v3165_v0, 16  ;;  %v3176_v14 = vshrl.u32 %v3165_v0, 16  ;;  %v5283_v3 = vld [vmem:[%s6953_s5 + $0xf8] sm:$0xff] }
 0x31d   : > { %3298 = vrot.lane.b32.xlu1 %v3293_v46, %s5446_s22  ;;  %v3329_v22 = vor.u32 %v3328_v32, %v3324_v54  ;;  %v3188_v17 = vor.u32 %v3187_v59, %v3183_v8  ;;  %3790 = vmatpush.bf16.msrb.mxu3 %v5258_v6  ;;  %v3244_v2 = vunpack.c.l.b16 %v3135_v28  ;;  %v3208_v39 = vunpack.c.l.b16 %v3127_v42  ;;  %v3119_v52 = vld [vmem:[#allocation3] sm:$0x3]  ;;  %v3147_v42 = vld [vmem:[#allocation3 + $0x14] sm:$0x3] }
 0x31e   : > { %v3117_v26 = vsel %vm6490_vm1, %v3098_v13, %v3116_v36  ;;  %v3195_v11 = vor.u32 %v3194_v16, %v3190_v53  ;;  %v3180_v30 = vrot.slane %v3178_v63, 1  ;;  %v5255_v36 = vld [vmem:[%s6953_s5 + $0x18] sm:$0xff]  ;;  %3831 = vmatpush.bf16.msrb.mxu2 %v5283_v3  ;;  %v3152_v16 = vld [vmem:[#allocation3 + $0x8] sm:$0x6]  ;;  %v3245_v59 = vunpack.c.l.b16 %v3136_v12 }
 0x31f   : > { %3118 = vst [vmem:[#allocation3 + $0x10] sm:$0x7] %v3117_v26  ;;  %v3248_v46 = vpack.c.b16 %v3244_v2, %v3244_v2  ;;  %v5275_v13 = vld [vmem:[%s6953_s5 + $0xb8] sm:$0xff]  ;;  %v3212_v54 = vpack.c.b16 %v3208_v39, %v3208_v39  ;;  %v5282_v26 = vld [vmem:[%s6953_s5 + $0xf0] sm:$0xff]  ;;  %vm3440_vm13 = vcmask 1041408  }
 0x320   : > { %v3181_v25 = vor.u32 %v3180_v30, %v3176_v14  ;;  %3817 = vmatpush.bf16.msra.mxu1 %v5275_v13  ;;  %v3249_v2 = vpack.c.b16 %v3245_v59, %v3245_v59  ;;  %v5263_v59 = vld [vmem:[%s6953_s5 + $0x58] sm:$0xff] }
 0x321   : > { %3791 = vmatpush.bf16.msrb.mxu3 %v5257_v57  ;;  %v3255_v18 = vshll.u32 %v3248_v46, 16 }
 0x322   : > { %3346 = vrot.lane.b32.xlu2 %v3329_v22, %s5446_s22  ;;  %v5254_v22 = vld [vmem:[%s6953_s5 + $0x10] sm:$0xff]  ;;  %3832 = vmatpush.bf16.msrb.mxu2 %v5282_v26 }
 0x324   : > { %3818 = vmatpush.bf16.msra.mxu1 %v5274_v24 }
 0x325   : > { %3344 = vrot.lane.b32.xlu1 %v3322_v44, %s5446_s22  ;;  %3792 = vmatpush.bf16.msrb.mxu3 %v5256_v41  ;;  %v3216_v44 = vrot.slane %v3212_v54, 1 }
 0x326   : > { %v3142_v9 = vld [vmem:[#allocation3 + $0x10] sm:$0x6]  ;;  %3833 = vmatpush.bf16.msrb.mxu2 %v5281_v37  ;;  %v3122_v37 = vld [vmem:[#allocation3 + $0xc] sm:$0x3] }
 0x327   : > { %v3134_v55 = vld [vmem:[#allocation3 + $0x10] sm:$0x3]  ;;  %v3287_v40 = vunpack.c.l.b16 %v3142_v9  ;;  %v3257_v9 = vrot.slane %v3255_v18, 1 }
 0x328   : > { %v3150_v15 = vld [vmem:[#allocation3 + $0x10] sm:$0x7]  ;;  %v3227_v4 = vunpack.c.l.b16 %v3134_v55  ;;  %v3246_v55 = vunpack.c.l.b16 %v3137_v20  ;;  %v3128_v20 = vld [vmem:[#allocation3 + $0x4] sm:$0x6] }
 0x329   : > { %v3310_v49 = vunpack.c.l.b16 %v3150_v15  ;;  %v3291_v21 = vpack.c.b16 %v3287_v40, %v3287_v40  ;;  %v3138_v33 = vld [vmem:[#allocation3 + $0x10] sm:$0x7]  ;;  %3793 = vmatpush.bf16.msrb.mxu3 %v5255_v36  ;;  %v3130_v15 = vld [vmem:[#allocation3 + $0xc] sm:$0x6] }
 0x32a   : > { %v3231_v47 = vpack.c.b16 %v3227_v4, %v3227_v4  ;;  %v3247_v50 = vunpack.c.l.b16 %v3138_v33  ;;  %v5273_v40 = vld [vmem:[%s6953_s5 + $0xa8] sm:$0xff]  ;;  %v5278_v33 = vld [vmem:[%s6953_s5 + $0xd0] sm:$0xff] }
 0x32b   : > { %v3314_v23 = vpack.c.b16 %v3310_v49, %v3310_v49  ;;  %v3295_v38 = vrot.slane %v3291_v21, 1  ;;  %v3253_v49 = vshrl.u32 %v3248_v46, 16  ;;  %v3211_v21 = vunpack.c.l.b16 %v3130_v15  ;;  %3819 = vmatpush.bf16.msra.mxu1 %v5273_v40  ;;  %v5265_v18 = vld [vmem:[%s6953_s5 + $0x68] sm:$0xff] }
 0x32c   : > { %3238 = vrot.lane.b32.xlu2 %v3231_v47, %s5446_s22  ;;  %v6604_v4 = vpack.c.b16 %v3247_v50, %v3247_v50  ;;  %v5280_v47 = vld [vmem:[%s6953_s5 + $0xe0] sm:$0xff] }
 0x32d   : > { %v3333_v60 = vshll.u32 %v3314_v23, 16  ;;  %3302 = vrot.lane.b32.xlu0 %v3295_v38, %s5446_s22  ;;  %3236 = vrot.lane.b32.xlu1 %v3230_v5, %s5446_s22  ;;  %v3331_v34 = vshrl.u32 %v3314_v23, 16  ;;  %v5252_v23 = vld [vmem:[%s6953_s5] sm:$0xff]  ;;  %v3258_v38 = vor.u32 %v3257_v9, %v3253_v49  ;;  %v5267_v5 = vld [vmem:[%s6953_s5 + $0x78] sm:$0xff]  ;;  %v3215_v8 = vpack.c.b16 %v3211_v21, %v3211_v21 }
 0x32e   : > { %3794 = vmatpush.bf16.msrb.mxu3 %v5254_v22  ;;  %v3276_v29 = vshll.u32 %v6604_v4, 16  ;;  %3834 = vmatpush.bf16.msrb.mxu2 %v5280_v47  ;;  %v3274_v13 = vshrl.u32 %v6604_v4, 16  ;;  %v5270_v22 = vld [vmem:[%s6953_s5 + $0x90] sm:$0xff]  ;;  %v3262_v9 = vshll.u32 %v3249_v2, 16  ;;  %v5269_v21 = vld [vmem:[%s6953_s5 + $0x88] sm:$0xff]  ;;  %v5264_v47 = vld [vmem:[%s6953_s5 + $0x60] sm:$0xff] }
 0x32f   : > { %v3335_v10 = vrot.slane %v3333_v60, 1  ;;  %v6613_v60 = vpack.c.b16 %v3246_v55, %v3246_v55  ;;  %3820 = vmatpush.bf16.msra.mxu1 %v5272_v61  ;;  %v3219_v46 = vrot.slane %v3215_v8, 1  ;;  %v3260_v8 = vshrl.u32 %v3249_v2, 16 }
 0x330   : > { %v3278_v28 = vrot.slane %v3276_v29, 1 }
 0x331   : > { %v3336_v35 = vor.u32 %v3335_v10, %v3331_v34  ;;  %v3356_v34 = vunpack.c.l.b16 %v3152_v16  ;;  %v3269_v30 = vshll.u32 %v6613_v60, 16 }
 0x332   : > { %3795 = vmatpush.bf16.msrb.mxu3 %v5253_v19 }
 0x333   : > { %v3360_v6 = vpack.c.b16 %v3356_v34, %v3356_v34  ;;  %3821 = vmatpush.bf16.msra.mxu1 %v5271_v45  ;;  %v3153_v34 = vld [vmem:[#allocation3 + $0xc] sm:$0x6] }
 0x334   : > { %3202 = vrot.lane.b32.xlu2 %v3195_v11, %s5446_s22 }
 0x335   : > { %3348 = vrot.lane.b32.xlu0 %v3336_v35, %s5446_s22  ;;  %3200 = vrot.lane.b32.xlu1 %v3188_v17, %s5446_s22  ;;  %v3144_v35 = vld [vmem:[#allocation3 + $0x8] sm:$0x3]  ;;  %v5279_v17 = vld [vmem:[%s6953_s5 + $0xd8] sm:$0xff]  ;;  %v3364_v39 = vrot.slane %v3360_v6, 1 }
 0x336   : > { %3796 = vmatpush.bf16.msrb.mxu3 %v5252_v23  ;;  %3835 = vmatpush.bf16.msrb.mxu2 %v5279_v17  ;;  %v3267_v23 = vshrl.u32 %v6613_v60, 16  ;;  %v5268_v60 = vld [vmem:[%s6953_s5 + $0x80] sm:$0xff]  ;;  %v3146_v17 = vld [vmem:[#allocation3 + $0x10] sm:$0x3] }
 0x337   : > { %3552 = vst [vmem:[#allocation1 + $0x20] ss:$4 sm:$0xff] %v3364_v39  ;;  %3822 = vmatpush.bf16.msra.mxu1 %v5270_v22  ;;  %v3155_v22 = vld [vmem:[#allocation3 + $0x14] sm:$0x6] }
 0x33a   : > { %3803 = vmatpush.bf16.msra.mxu3 %v5267_v5  ;;  %3836 = vmatpush.bf16.msrb.mxu2 %v5278_v33  ;;  %v3264_v5 = vrot.slane %v3262_v9, 1 }
 0x33b   : > { %3823 = vmatpush.bf16.msra.mxu1 %v5269_v21  ;;  %v5286_v21 = vld [vmem:[%s6953_s5 + $0x110] sm:$0xff] }
 0x33d   : > { %3198 = vrot.lane.b32.xlu0 %v3181_v25, %s5446_s22  ;;  %v3129_v25 = vld [vmem:[#allocation3 + $0x8] sm:$0x6] }
 0x33e   : > { %v3210_v36 = vunpack.c.l.b16 %v3129_v25  ;;  %v3121_v25 = vld [vmem:[#allocation3 + $0x8] sm:$0x3] }
 0x33f   : > { %3824 = vmatpush.bf16.msra.mxu1 %v5268_v60 }
 0x340   : > { %v3214_v15 = vpack.c.b16 %v3210_v36, %v3210_v36 }
 0x342   : > { %v3218_v29 = vrot.slane %v3214_v15, 1  ;;  %v5260_v15 = vld [vmem:[%s6953_s5 + $0x40] sm:$0xff] }
 0x35b   : > { %v6558_v58 = vpop.permute.xlu2 %3196 }
 0x35c   : > { %v3370_v11 = vsel %vm639_vm9, %v3119_v52, %v6558_v58  ;;  %v5266_v58 = vld [vmem:[%s6953_s5 + $0x70] sm:$0xff] }
 0x35d   : > { %3804 = vmatpush.bf16.msra.mxu3 %v5266_v58 }
 0x361   : > { %3805 = vmatpush.bf16.msra.mxu3 %v5265_v18 }
 0x363   : > { %v3233_v51 = vpop.permute.xlu2 %3232 }
 0x364   : > { %v3382_v1 = vsel %vm639_vm9, %v3216_v44, %v3233_v51  ;;  %v3271_v44 = vrot.slane %v3269_v30, 1 }
 0x365   : > { %v3428_v10 = vrot.slane %v3382_v1, 6  ;;  %v3209_v1 = vunpack.c.l.b16 %v3128_v20  ;;  %3806 = vmatpush.bf16.msra.mxu3 %v5264_v47  ;;  %v3359_v20 = vunpack.c.l.b16 %v3155_v22  ;;  %v5285_v47 = vld [vmem:[%s6953_s5 + $0x108] sm:$0xff] }
 0x366   : > { %v3272_v61 = vor.u32 %v3271_v44, %v3267_v23  ;;  %v5284_v23 = vld [vmem:[%s6953_s5 + $0x100] sm:$0xff] }
 0x367   : > { %v3442_v41 = vsel %vm3440_vm13, %v3370_v11, %v3428_v10  ;;  %v5276_v10 = vld [vmem:[%s6953_s5 + $0xc0] sm:$0xff] }
 0x369   : > { %3807 = vmatpush.bf16.msra.mxu3 %v5263_v59 }
 0x374   : > { %v6566_v43 = vpop.permute.xlu2 %3300 }
 0x375   : > { %v3400_v11 = vsel %vm639_vm9, %v3272_v61, %v6566_v43  ;;  %v5262_v43 = vld [vmem:[%s6953_s5 + $0x50] sm:$0xff] }
 0x376   : > { %3808 = vmatpush.bf16.msra.mxu3 %v5262_v43 }
 0x379   : > { %v3297_v62 = vpop.permute.xlu0 %3296 }
 0x37a   : > { %v3394_v53 = vsel %vm639_vm9, %v3258_v38, %v3297_v62  ;;  %v3279_v62 = vor.u32 %v3278_v28, %v3274_v13 }
 0x37b   : > { %v3429_v51 = vrot.slane %v3394_v53, 4  ;;  %v3213_v53 = vpack.c.b16 %v3209_v1, %v3209_v1 }
 0x37c   : > { %v6573_v32 = vpop.permute.xlu2 %3346 }
 0x37d   : > { %v3217_v2 = vrot.slane %v3213_v53, 1 }
 0x381   : > { %v6623_v0 = vpop.permute.xlu0 %3234 }
 0x382   : > { %v3385_v33 = vsel %vm639_vm9, %v3217_v2, %v6623_v0  ;;  %v3363_v0 = vpack.c.b16 %v3359_v20, %v3359_v20 }
 0x386   : > { %v3239_v56 = vpop.permute.xlu2 %3238 }
 0x387   : > { %v6571_v48 = vpop.permute.xlu1 %3350  ;;  %v3391_v50 = vsel %vm639_vm9, %v3219_v46, %v3239_v56 }
 0x388   : > { %v3415_v24 = vsel %vm639_vm9, %v3147_v42, %v6571_v48  ;;  %v5277_v48 = vld [vmem:[%s6953_s5 + $0xc8] sm:$0xff]  ;;  %v3437_v56 = vrot.slane %v3391_v50, 6  ;;  %v3431_v50 = vrot.slane %v3385_v33, 6 }
 0x389   : > { %v3439_v49 = vrot.slane %v3415_v24, 2  ;;  %3837 = vmatpush.bf16.msrb.mxu2 %v5277_v48 }
 0x38d   : > { %3838 = vmatpush.bf16.msrb.mxu2 %v5276_v10 }
 0x38e   : > { %v3203_v26 = vpop.permute.xlu2 %3202 }
 0x38f   : > { %v6593_v27 = vpop.permute.xlu1 %3298  ;;  %v3379_v55 = vsel %vm639_vm9, %v3122_v37, %v3203_v26  ;;  %v3154_v26 = vld [vmem:[#allocation3 + $0x10] sm:$0x6] }
 0x390   : > { %v3462_v52 = vsel %vm3440_vm13, %v3379_v55, %v3437_v56 }
 0x397   : > { %v3345_v63 = vpop.permute.xlu1 %3344 }
 0x398   : > { %v3406_v14 = vsel %vm639_vm9, %v3144_v35, %v3345_v63  ;;  %v3357_v63 = vunpack.c.l.b16 %v3153_v34 }
 0x399   : > { %v3430_v57 = vrot.slane %v3406_v14, 2  ;;  %v3265_v14 = vor.u32 %v3264_v5, %v3260_v8 }
 0x39a   : > { %v3361_v6 = vpack.c.b16 %v3357_v63, %v3357_v63 }
 0x39b   : > { %v3446_v3 = vsel %vm3443_vm7, %v3429_v51, %v3430_v57  ;;  %v3435_v51 = vrot.slane %v3400_v11, 4  ;;  %v3145_v57 = vld [vmem:[#allocation3 + $0xc] sm:$0x3]  ;;  %v3397_v46 = vsel %vm639_vm9, %v3265_v14, %v6593_v27  ;;  %v3358_v27 = vunpack.c.l.b16 %v3154_v26 }
 0x39c   : > { %v3448_v54 = vsel %vm3447_vm5, %v3442_v41, %v3446_v3  ;;  %v3409_v39 = vsel %vm639_vm9, %v3145_v57, %v6573_v32  ;;  %v3365_v3 = vrot.slane %v3361_v6, 1  ;;  %v3432_v24 = vrot.slane %v3397_v46, 4  ;;  %v5261_v32 = vld [vmem:[%s6953_s5 + $0x48] sm:$0xff] }
 0x39d   : > { %3543 = vst [vmem:[#allocation1] ss:$4 sm:$0xff] %v3448_v54  ;;  %v3433_v18 = vrot.slane %v3409_v39, 2  ;;  %v3362_v37 = vpack.c.b16 %v3358_v27, %v3358_v27  ;;  %3809 = vmatpush.bf16.msra.mxu3 %v5261_v32 }
 0x39e   : > { %3555 = vst [vmem:[#allocation1 + $0x21] ss:$4 sm:$0xff] %v3365_v3 }
 0x39f   : > { %v3303_v19 = vpop.permute.xlu0 %3302  ;;  %v3237_v40 = vpop.permute.xlu1 %3236  ;;  %v3453_v9 = vsel %vm3443_vm7, %v3432_v24, %v3433_v18 }
 0x3a0   : > { %v3403_v4 = vsel %vm639_vm9, %v3279_v62, %v3303_v19  ;;  %v3388_v35 = vsel %vm639_vm9, %v3218_v29, %v3237_v40  ;;  %v3120_v62 = vld [vmem:[#allocation3 + $0x4] sm:$0x3]  ;;  %v3366_v40 = vrot.slane %v3362_v37, 1 }
 0x3a1   : > { %v3438_v12 = vrot.slane %v3403_v4, 4  ;;  %v3434_v28 = vrot.slane %v3388_v35, 6  ;;  %v3367_v4 = vrot.slane %v3363_v0, 1  ;;  %3810 = vmatpush.bf16.msra.mxu3 %v5260_v15 }
 0x3a2   : > { %3558 = vst [vmem:[#allocation1 + $0x22] ss:$4 sm:$0xff] %v3366_v40 }
 0x3a3   : > { %v3465_v38 = vsel %vm3443_vm7, %v3438_v12, %v3439_v49  ;;  %3561 = vst [vmem:[#allocation1 + $0x23] ss:$4 sm:$0xff] %v3367_v4  ;;  %v5287_v49 = vld [vmem:[%s6953_s5 + $0x118] sm:$0xff] }
 0x3a4   : > { %v3466_v16 = vsel %vm3447_vm5, %v3462_v52, %v3465_v38 }
 0x3a5   : > { %3549 = vst [vmem:[#allocation1 + $0x3] ss:$4 sm:$0xff] %v3466_v16  ;;  %v5370_v16 = vld [vmem:[%s6954_s6] ss:$0 sm:$0xff] }
 0x3a7   : > { %v3349_v30 = vpop.permute.xlu0 %3348  ;;  %v3201_v45 = vpop.permute.xlu1 %3200 }
 0x3a8   : > { %v3412_v58 = vsel %vm639_vm9, %v3146_v17, %v3349_v30  ;;  %v3376_v41 = vsel %vm639_vm9, %v3121_v25, %v3201_v45 }
 0x3a9   : > { %v3436_v42 = vrot.slane %v3412_v58, 2  ;;  %v3456_v36 = vsel %vm3440_vm13, %v3376_v41, %v3434_v28 }
 0x3aa   : > { %v3566_v38 = vld.sshfl [vmem:[#allocation1 + $0x20] sm:$0xff pattern:$0x73625140] }
 0x3ab   : > { %v3459_v13 = vsel %vm3443_vm7, %v3435_v51, %v3436_v42 }
 0x3ac   : > { %v3460_v54 = vsel %vm3447_vm5, %v3456_v36, %v3459_v13 }
 0x3ad   : > { %3547 = vst [vmem:[#allocation1 + $0x2] ss:$4 sm:$0xff] %v3460_v54 }
 0x3af   : > { %v3199_v44 = vpop.permute.xlu0 %3198 }
 0x3b0   : > { %v3373_v19 = vsel %vm639_vm9, %v3120_v62, %v3199_v44  ;;  %v3922_v62 = vld [vmem:[#allocation4 + $0x2] sm:$0x1]  ;;  %v3937_v44 = vld [vmem:[#allocation4 + $0x2] sm:$0x2] }
 0x3b1   : > { %v3450_v55 = vsel %vm3440_vm13, %v3373_v19, %v3431_v50  ;;  %v3923_v37 = vsel %vm5602_vm8, 0, %v3922_v62  ;;  %v3938_v0 = vsel %vm5680_vm4, 0, %v3937_v44 }
 0x3b2   : > { %v3454_v48 = vsel %vm3447_vm5, %v3450_v55, %v3453_v9  ;;  %3924 = vst [vmem:[#allocation4 + $0x2] sm:$0x1] %v3923_v37 }
 0x3b3   : > { %3545 = vst [vmem:[#allocation1 + $0x1] ss:$4 sm:$0xff] %v3454_v48 }
 0x3b4   : > { %3939 = vst [vmem:[#allocation4 + $0x2] sm:$0x2] %v3938_v0 }
 0x3ba   : > { %v3562_v1 = vld.sshfl [vmem:[#allocation1] sm:$0xff pattern:$0x73625140]  ;;  %v3564_v56 = vld.sshfl [vmem:[#allocation1 + $0x10] sm:$0xff pattern:$0x73625140] }
 0x3bb   : > { %3797 = vmatmul.bf16.vlgmr.msrb.gmra.mxu3 %v3562_v1  ;;  %3825 = vmatmul.bf16.vlgmr.msra.gmra.mxu1 %v3564_v56  ;;  %v3565_v12 = vld.sshfl [vmem:[#allocation1 + $0x18] sm:$0xff pattern:$0x73625140]  ;;  %v3563_v52 = vld.sshfl [vmem:[#allocation1 + $0x8] sm:$0xff pattern:$0x73625140] }
 0x3bc   : > { %3839 = vmatmul.bf16.vlgmr.msrb.gmra.mxu2 %v3565_v12  ;;  %3849 = vmatpush.bf16.msrb.mxu3 %v5287_v49  ;;  %v4011_v7 = vld [vmem:[#allocation4 + $0x2] sm:$0x3] }
 0x3c0   : > { %3850 = vmatpush.bf16.msrb.mxu3 %v5286_v21 }
 0x3c4   : > { %3851 = vmatpush.bf16.msrb.mxu3 %v5285_v47 }
 0x3c8   : > { %3852 = vmatpush.bf16.msrb.mxu3 %v5284_v23 }
 0x3cb   : > { %3811 = vmatmul.bf16.vlgmr.msra.gmra.mxu3 %v3563_v52  ;;  %v4019_v52 = vld [vmem:[#allocation4] sm:$0x3] }
 0x3db   : > { %5047 = vmatmul.msk.bf16.vlgmr.msrb.gmra.mxu3 %vm639_vm9, %v3566_v38 }
 0x438   : > { %v3826_v59 = vpop.f32.mrf.mxu1 }
 0x43e   : > { %v3798_v61 = vpop.f32.mrf.mxu3 }
 0x43f   : > { %v3799_v10 = vadd.f32 %v5370_v16, %v3798_v61  ;;  %v3840_v11 = vpop.f32.mrf.mxu2 }
 0x440   : > { %v3828_v13 = vpop.f32.mrf.mxu1 }
 0x446   : > { %v3800_v5 = vpop.f32.mrf.mxu3 }
 0x447   : > { %v3801_v41 = vadd.f32 %v5370_v16, %v3800_v5  ;;  %v3842_v24 = vpop.f32.mrf.mxu2 }
 0x44e   : > { %v3812_v29 = vpop.f32.mrf.mxu3 }
 0x44f   : > { %v3813_v53 = vadd.f32 %v3812_v29, %v3799_v10 }
 0x451   : > { %v3827_v34 = vadd.f32 %v3826_v59, %v3813_v53 }
 0x453   : > { %v3841_v8 = vadd.f32 %v3840_v11, %v3827_v34 }
 0x456   : > { %v3814_v60 = vpop.f32.mrf.mxu3 }
 0x457   : > { %v3815_v2 = vadd.f32 %v3814_v60, %v3801_v41  ;;  %v4021_v41 = vld [vmem:[#allocation4] sm:$0x2] }
 0x459   : > { %v3829_v33 = vadd.f32 %v3828_v13, %v3815_v2 }
 0x45b   : > { %v3843_v20 = vadd.f32 %v3842_v24, %v3829_v33 }
 0x45e   : > { %v3854_v35 = vpop.f32.mrf.mxu3 }
 0x45f   : > { %v3855_v63 = vadd.f32 %v3854_v35, %v3841_v8 }
 0x461   : > { %v3859_v17 = vmax.f32 %v3855_v63, 0.0 }
 0x463   : > { %v3863_v30 = vrot.slane %v3859_v17, 4  ;;  %v3867_v14 = vsel %vm1249_vm3, %v3859_v17, -inf }
 0x465   : > { %v3868_v25 = vsel %vm1249_vm3, %v3863_v30, -inf }
 0x466   : > { %v3869_v45 = vmax.f32 %v3867_v14, %v3868_v25  ;;  %v3856_v50 = vpop.f32.mrf.mxu3  ;;  %v3925_v14 = vld [vmem:[#allocation4 + $0x4] sm:$0x1]  ;;  %v3940_v25 = vld [vmem:[#allocation4 + $0x4] sm:$0x2] }
 0x467   : > { %v3857_v55 = vadd.f32 %v3856_v50, %v3843_v20 }
 0x468   : > { %v3875_v58 = vrot.slane %v3869_v45, 2 }
 0x469   : > { %v3860_v4 = vmax.f32 %v3857_v55, 0.0 }
 0x46a   : > { %v3877_v6 = vsel %vm3440_vm13, %v3869_v45, %v3875_v58  ;;  %v3879_v51 = vsel %vm3878_vm2, %v3869_v45, %v3875_v58  ;;  %v3926_v45 = vsel %vm5602_vm8, 0, %v3925_v14  ;;  %v3941_v58 = vsel %vm5680_vm4, 0, %v3940_v25  ;;  %v4033_v14 = vld [vmem:[#allocation4 + $0x6] sm:$0x3] }
 0x46b   : > { %v3880_v57 = vrot.slane %v3879_v51, 2  ;;  %v3888_v28 = vsel %vm800_vm10, %v3877_v6, -inf  ;;  %v3864_v1 = vrot.slane %v3860_v4, 4  ;;  %v3870_v12 = vsel %vm1249_vm3, %v3860_v4, -inf  ;;  %3927 = vst [vmem:[#allocation4 + $0x4] sm:$0x1] %v3926_v45 }
 0x46c   : > { %v3889_v42 = vrot.slane %v3888_v28, 4  ;;  %3942 = vst [vmem:[#allocation4 + $0x4] sm:$0x2] %v3941_v58  ;;  %vm4189_vm4 = vcmask 1040384   ;;  %vm4197_vm8 = vcmask 1042432  }
 0x46d   : > { %v3895_v43 = vsel %vm800_vm10, %v3880_v57, -inf  ;;  %v3871_v21 = vsel %vm1249_vm3, %v3864_v1, -inf  ;;  %vm4009_vm3 = vsmask.f32 1282 }
 0x46e   : > { %v3890_v39 = vmax.f32 %v3888_v28, %v3889_v42  ;;  %v3896_v46 = vrot.slane %v3895_v43, 4  ;;  %v3872_v47 = vmax.f32 %v3870_v12, %v3871_v21  ;;  %vm6747_vm6 = vmand %vm800_vm10, %vm4009_vm3 }
 0x470   : > { %v3891_v3 = vrot.slane %v3890_v39, 2  ;;  %v3897_v36 = vmax.f32 %v3895_v43, %v3896_v46  ;;  %v3876_v23 = vrot.slane %v3872_v47, 2 }
 0x472   : > { %v3892_v54 = vmax.f32 %v3890_v39, %v3891_v3  ;;  %v3898_v26 = vrot.slane %v3897_v36, 2  ;;  %v3881_v38 = vsel %vm3440_vm13, %v3872_v47, %v3876_v23  ;;  %v3882_v61 = vsel %vm3878_vm2, %v3872_v47, %v3876_v23 }
 0x473   : > { %v3883_v29 = vrot.slane %v3882_v61, 2  ;;  %v3902_v16 = vsel %vm800_vm10, %v3881_v38, -inf }
 0x474   : > { %v3893_v22 = vrot.slane %v3892_v54, 1  ;;  %v3899_v18 = vmax.f32 %v3897_v36, %v3898_v26  ;;  %v3903_v53 = vrot.slane %v3902_v16, 4 }
 0x475   : > { %v3909_v59 = vsel %vm800_vm10, %v3883_v29, -inf }
 0x476   : > { %v3894_v32 = vmax.f32 %v3892_v54, %v3893_v22  ;;  %v3900_v27 = vrot.slane %v3899_v18, 1  ;;  %v3904_v11 = vmax.f32 %v3902_v16, %v3903_v53  ;;  %v3910_v8 = vrot.slane %v3909_v59, 4 }
 0x478   : > { %v3901_v19 = vmax.f32 %v3899_v18, %v3900_v27  ;;  %v3946_v9 = vpack.c.bf16 %v3894_v32, %v3894_v32  ;;  %v3905_v17 = vrot.slane %v3904_v11, 2  ;;  %v3911_v30 = vmax.f32 %v3909_v59, %v3910_v8 }
 0x47a   : > { %v3947_v15 = vpack.c.bf16 %v3901_v19, %v3901_v19  ;;  %v3954_v40 = vrot.slane %v3946_v9, 2  ;;  %v3906_v51 = vmax.f32 %v3904_v11, %v3905_v17  ;;  %v3912_v57 = vrot.slane %v3911_v30, 2 }
 0x47c   : > { %v3955_v48 = vrot.slane %v3947_v15, 2  ;;  %v3960_v49 = vsel %vm3440_vm13, %v3946_v9, %v3954_v40  ;;  %v3907_v42 = vrot.slane %v3906_v51, 1  ;;  %v3913_v43 = vmax.f32 %v3911_v30, %v3912_v57  ;;  %v4035_v57 = vld [vmem:[#allocation4 + $0x6] sm:$0x2] }
 0x47d   : > { %3970 = vst [vmem:[#allocation1] ss:$2 sm:$0xff] %v3960_v49 }
 0x47e   : > { %v3963_v56 = vsel %vm3440_vm13, %v3947_v15, %v3955_v48  ;;  %v3908_v46 = vmax.f32 %v3906_v51, %v3907_v42  ;;  %v3914_v3 = vrot.slane %v3913_v43, 1  ;;  %v4014_v48 = vld [vmem:[#allocation4 + $0x4] sm:$0x3] }
 0x47f   : > { %3974 = vst [vmem:[#allocation1 + $0x10] ss:$2 sm:$0xff] %v3963_v56 }
 0x480   : > { %v3915_v13 = vmax.f32 %v3913_v43, %v3914_v3  ;;  %v3948_v33 = vpack.c.bf16 %v3908_v46, %v3908_v46  ;;  %v5295_v46 = vld [vmem:[%s6955_s7 + $0x38] sm:$0xff]  ;;  %v5293_v3 = vld [vmem:[%s6955_s7 + $0x28] sm:$0xff] }
 0x481   : > { %4513 = vmatpush.bf16.msra.mxu3 %v5295_v46 }
 0x482   : > { %v3949_v26 = vpack.c.bf16 %v3915_v13, %v3915_v13  ;;  %v3956_v22 = vrot.slane %v3948_v33, 2  ;;  %v5303_v13 = vld [vmem:[%s6955_s7 + $0x78] sm:$0xff] }
 0x483   : > { %4526 = vmatpush.bf16.msrb.mxu1 %v5303_v13 }
 0x484   : > { %v3971_v5 = vld.sshfl [vmem:[#allocation1] sm:$0xff pattern:$0x75643120]  ;;  %v3957_v18 = vrot.slane %v3949_v26, 2  ;;  %v3966_v24 = vsel %vm3440_vm13, %v3948_v33, %v3956_v22  ;;  %v5311_v33 = vld [vmem:[%s6955_s7 + $0xb8] sm:$0xff] }
 0x485   : > { %v3985_v10 = vunpack.c.l.b16 %v3971_v5  ;;  %3978 = vst [vmem:[#allocation1 + $0x20] ss:$2 sm:$0xff] %v3966_v24  ;;  %4539 = vmatpush.bf16.msra.mxu2 %v5311_v33  ;;  %v5290_v24 = vld [vmem:[%s6955_s7 + $0x10] sm:$0xff] }
 0x486   : > { %v3975_v60 = vld.sshfl [vmem:[#allocation1 + $0x10] sm:$0xff pattern:$0x75643120]  ;;  %v3969_v32 = vsel %vm3440_vm13, %v3949_v26, %v3957_v18 }
 0x487   : > { %v3986_v34 = vunpack.c.l.b16 %v3975_v60  ;;  %4037 = vst [vmem:[#allocation1] ss:$4 sm:$0xff] %v4019_v52  ;;  %v3989_v35 = vrot.slane %v3985_v10, 7  ;;  %v5302_v26 = vld [vmem:[%s6955_s7 + $0x70] sm:$0xff] }
 0x488   : > { %3982 = vst [vmem:[#allocation1 + $0x30] ss:$2 sm:$0xff] %v3969_v32  ;;  %v5310_v18 = vld [vmem:[%s6955_s7 + $0xb0] sm:$0xff]  ;;  %4527 = vmatpush.bf16.msrb.mxu1 %v5302_v26  ;;  %v5301_v32 = vld [vmem:[%s6955_s7 + $0x68] sm:$0xff] }
 0x489   : > { %v3990_v63 = vrot.slane %v3986_v34, 6  ;;  %4540 = vmatpush.bf16.msra.mxu2 %v5310_v18 }
 0x48b   : > { %v3991_v6 = vsel %vm1513_vm11, %v3990_v63, %v3989_v35 }
 0x48c   : > { %v3995_v28 = vpack.c.b16 %v3991_v6, %v3991_v6  ;;  %v3979_v50 = vld.sshfl [vmem:[#allocation1 + $0x20] sm:$0xff pattern:$0x75643120]  ;;  %4528 = vmatpush.bf16.msrb.mxu1 %v5301_v32 }
 0x48d   : > { %v3987_v44 = vunpack.c.l.b16 %v3979_v50  ;;  %v5289_v50 = vld [vmem:[%s6955_s7 + $0x8] sm:$0xff] }
 0x48e   : > { %v6744_v2 = vld.sshfl [vmem:[#allocation1] sm:$0xff pattern:$0x73625140]  ;;  %v3997_v39 = vrot.slane %v3995_v28, 2 }
 0x48f   : > { %4060 = vst [vmem:[#allocation1] ss:$4 sm:$0xff] %v4021_v41  ;;  %v3983_v37 = vld.sshfl [vmem:[#allocation1 + $0x30] sm:$0xff pattern:$0x75643120]  ;;  %v3992_v55 = vrot.slane %v3987_v44, 7 }
 0x490   : > { %v4001_v36 = vsel %vm3440_vm13, %v3995_v28, %v3997_v39  ;;  %v3988_v0 = vunpack.c.l.b16 %v3983_v37  ;;  %v4045_v6 = vshll.u32 %v6744_v2, 16  ;;  %v4043_v28 = vshrl.u32 %v6744_v2, 16  ;;  %v5294_v2 = vld [vmem:[%s6955_s7 + $0x30] sm:$0xff]  ;;  %v5308_v44 = vld [vmem:[%s6955_s7 + $0xa0] sm:$0xff] }
 0x491   : > { %v4012_v54 = vsel %vm6747_vm6, %v4001_v36, %v4011_v7  ;;  %4514 = vmatpush.bf16.msra.mxu3 %v5294_v2  ;;  %v5292_v36 = vld [vmem:[%s6955_s7 + $0x20] sm:$0xff] }
 0x492   : > { %4013 = vst [vmem:[#allocation4 + $0x2] sm:$0x3] %v4012_v54  ;;  %v3993_v15 = vrot.slane %v3988_v0, 6  ;;  %v4047_v51 = vrot.slane %v4045_v6, 1  ;;  %v5291_v54 = vld [vmem:[%s6955_s7 + $0x18] sm:$0xff]  ;;  %v5288_v37 = vld [vmem:[%s6955_s7] sm:$0xff] }
 0x493   : > { %v5299_v0 = vld [vmem:[%s6955_s7 + $0x58] sm:$0xff] }
 0x494   : > { %v3994_v40 = vsel %vm1513_vm11, %v3993_v15, %v3992_v55  ;;  %v4048_v42 = vor.u32 %v4047_v51, %v4043_v28  ;;  %v5298_v55 = vld [vmem:[%s6955_s7 + $0x50] sm:$0xff] }
 0x495   : > { %v3996_v4 = vpack.c.b16 %v3994_v40, %v3994_v40  ;;  %4515 = vmatpush.bf16.msra.mxu3 %v5293_v3  ;;  %v5306_v15 = vld [vmem:[%s6955_s7 + $0x90] sm:$0xff] }
 0x496   : > { %v6756_v27 = vld.sshfl [vmem:[#allocation1] sm:$0xff pattern:$0x73625140]  ;;  %v5318_v40 = vld [vmem:[%s6955_s7 + $0xf0] sm:$0xff] }
 0x497   : > { %v3998_v49 = vrot.slane %v3996_v4, 2  ;;  %v4068_v3 = vrot.slane %v6756_v27, 1 }
 0x499   : > { %v4023_v20 = vld [vmem:[#allocation4 + $0x2] sm:$0x1]  ;;  %v4022_v1 = vld [vmem:[#allocation4 + $0x2] sm:$0x2]  ;;  %v4004_v21 = vsel %vm3440_vm13, %v3996_v4, %v3998_v49  ;;  %4516 = vmatpush.bf16.msra.mxu3 %v5292_v36  ;;  %v5305_v49 = vld [vmem:[%s6955_s7 + $0x88] sm:$0xff] }
 0x49a   : > { %4071 = vst [vmem:[#allocation1] ss:$4 sm:$0xff] %v4023_v20  ;;  %v4020_v62 = vld [vmem:[#allocation4 + $0x2] sm:$0x3]  ;;  %v4015_v23 = vsel %vm6747_vm6, %v4004_v21, %v4014_v48  ;;  %v5309_v20 = vld [vmem:[%s6955_s7 + $0xa8] sm:$0xff]  ;;  %v5296_v21 = vld [vmem:[%s6955_s7 + $0x40] sm:$0xff] }
 0x49b   : > { %4041 = vst [vmem:[#allocation1 + $0x20] ss:$4 sm:$0xff] %v4020_v62  ;;  %v4025_v19 = vld [vmem:[#allocation4 + $0x2] sm:$0x3]  ;;  %v5300_v62 = vld [vmem:[%s6955_s7 + $0x60] sm:$0xff]  ;;  %4541 = vmatpush.bf16.msra.mxu2 %v5309_v20  ;;  %v5297_v48 = vld [vmem:[%s6955_s7 + $0x48] sm:$0xff] }
 0x49c   : > { %v4027_v47 = vld [vmem:[#allocation4 + $0x2] sm:$0x2]  ;;  %4016 = vst [vmem:[#allocation4 + $0x4] sm:$0x3] %v4015_v23  ;;  %4529 = vmatpush.bf16.msrb.mxu1 %v5300_v62  ;;  %v5316_v23 = vld [vmem:[%s6955_s7 + $0xe0] sm:$0xff] }
 0x49d   : > { %4517 = vmatpush.bf16.msra.mxu3 %v5291_v54 }
 0x49f   : > { %4542 = vmatpush.bf16.msra.mxu2 %v5308_v44 }
 0x4a0   : > { %4530 = vmatpush.bf16.msrb.mxu1 %v5299_v0 }
 0x4a1   : > { %v4072_v9 = vld.sshfl [vmem:[#allocation1] sm:$0xff pattern:$0x73625140]  ;;  %4518 = vmatpush.bf16.msra.mxu3 %v5290_v24  ;;  %v4017_v24 = vld [vmem:[#allocation4] sm:$0x1] }
 0x4a2   : > { %4079 = vrot.lane.b32.xlu0 %v4072_v9, %s5446_s22  ;;  %4084 = vst [vmem:[#allocation1] ss:$4 sm:$0xff] %v4025_v19  ;;  %v4042_v56 = vld.sshfl [vmem:[#allocation1 + $0x20] sm:$0xff pattern:$0x73625140]  ;;  %v5307_v19 = vld [vmem:[%s6955_s7 + $0x98] sm:$0xff] }
 0x4a3   : > { %4065 = vst [vmem:[#allocation1 + $0x20] ss:$4 sm:$0xff] %v4022_v1  ;;  %v4024_v61 = vld [vmem:[#allocation4 + $0x4] sm:$0x1]  ;;  %v4051_v8 = vshll.u32 %v4042_v56, 16  ;;  %v4049_v30 = vshrl.u32 %v4042_v56, 16  ;;  %4543 = vmatpush.bf16.msra.mxu2 %v5307_v19 }
 0x4a4   : > { %v4032_v29 = vld [vmem:[#allocation4 + $0x4] sm:$0x3]  ;;  %v5319_v9 = vld [vmem:[%s6955_s7 + $0xf8] sm:$0xff]  ;;  %4531 = vmatpush.bf16.msrb.mxu1 %v5298_v55  ;;  %v5317_v1 = vld [vmem:[%s6955_s7 + $0xe8] sm:$0xff] }
 0x4a5   : > { %v4026_v16 = vld [vmem:[#allocation4 + $0x4] sm:$0x3]  ;;  %v4053_v17 = vrot.slane %v4051_v8, 1  ;;  %4519 = vmatpush.bf16.msra.mxu3 %v5289_v50 }
 0x4a6   : > { %v4028_v35 = vld [vmem:[#allocation4 + $0x4] sm:$0x2]  ;;  %v4030_v36 = vld [vmem:[#allocation4 + $0x4] sm:$0x1] }
 0x4a7   : > { %v4054_v25 = vor.u32 %v4053_v17, %v4049_v30  ;;  %v4034_v22 = vld [vmem:[#allocation4 + $0x4] sm:$0x2]  ;;  %4544 = vmatpush.bf16.msra.mxu2 %v5306_v15  ;;  %v5321_v17 = vld [vmem:[%s6955_s7 + $0x108] sm:$0xff] }
 0x4a8   : > { %4532 = vmatpush.bf16.msrb.mxu1 %v5297_v48 }
 0x4a9   : > { %v6760_v12 = vld.sshfl [vmem:[#allocation1] sm:$0xff pattern:$0x73625140]  ;;  %4520 = vmatpush.bf16.msra.mxu3 %v5288_v37 }
 0x4aa   : > { %4103 = vst [vmem:[#allocation1] ss:$4 sm:$0xff] %v4027_v47  ;;  %v6765_v52 = vld.sshfl [vmem:[#allocation1 + $0x20] sm:$0xff pattern:$0x73625140] }
 0x4ab   : > { %4076 = vst [vmem:[#allocation1 + $0x20] ss:$4 sm:$0xff] %v4024_v61  ;;  %4545 = vmatpush.bf16.msra.mxu2 %v5305_v49  ;;  %v5304_v47 = vld [vmem:[%s6955_s7 + $0x80] sm:$0xff]  ;;  %v5323_v61 = vld [vmem:[%s6955_s7 + $0x118] sm:$0xff] }
 0x4ac   : > { %4533 = vmatpush.bf16.msrb.mxu1 %v5296_v21 }
 0x4ad   : > { %4552 = vmatpush.bf16.msrb.mxu3 %v5319_v9 }
 0x4af   : > { %4546 = vmatpush.bf16.msra.mxu2 %v5304_v47 }
 0x4b0   : > { %4569 = vmatpush.bf16.msra.mxu1 %v5323_v61 }
 0x4b1   : > { %v4104_v38 = vld.sshfl [vmem:[#allocation1] sm:$0xff pattern:$0x73625140]  ;;  %4553 = vmatpush.bf16.msrb.mxu3 %v5318_v40 }
 0x4b2   : > { %v4111_v5 = vrot.slane %v4104_v38, 1  ;;  %4118 = vst [vmem:[#allocation1] ss:$4 sm:$0xff] %v4032_v29  ;;  %v4077_v10 = vld.sshfl [vmem:[#allocation1 + $0x20] sm:$0xff pattern:$0x73625140] }
 0x4b3   : > { %4081 = vrot.lane.b32.xlu1 %v4077_v10, %s5446_s22  ;;  %4088 = vst [vmem:[#allocation1 + $0x20] ss:$4 sm:$0xff] %v4026_v16  ;;  %v5315_v16 = vld [vmem:[%s6955_s7 + $0xd8] sm:$0xff]  ;;  %v5322_v10 = vld [vmem:[%s6955_s7 + $0x110] sm:$0xff] }
 0x4b4   : > { %4113 = vrot.lane.b32.xlu2 %v4111_v5, %s5446_s22  ;;  %4570 = vmatpush.bf16.msra.mxu1 %v5322_v10 }
 0x4b5   : > { %4554 = vmatpush.bf16.msrb.mxu3 %v5317_v1 }
 0x4b8   : > { %4571 = vmatpush.bf16.msra.mxu1 %v5321_v17 }
 0x4b9   : > { %v4119_v53 = vld.sshfl [vmem:[#allocation1] sm:$0xff pattern:$0x73625140]  ;;  %4555 = vmatpush.bf16.msrb.mxu3 %v5316_v23 }
 0x4ba   : > { %v4126_v60 = vshll.u32 %v4119_v53, 16  ;;  %v4124_v59 = vshrl.u32 %v4119_v53, 16  ;;  %v6769_v63 = vld.sshfl [vmem:[#allocation1 + $0x20] sm:$0xff pattern:$0x73625140]  ;;  %v4069_v53 = vrot.slane %v6765_v52, 1 }
 0x4bb   : > { %4108 = vst [vmem:[#allocation1 + $0x20] ss:$4 sm:$0xff] %v4028_v35  ;;  %v4098_v5 = vshll.u32 %v6769_v63, 16  ;;  %v5314_v35 = vld [vmem:[%s6955_s7 + $0xd0] sm:$0xff]  ;;  %v4096_v52 = vshrl.u32 %v6769_v63, 16  ;;  %v5320_v63 = vld [vmem:[%s6955_s7 + $0x100] sm:$0xff] }
 0x4bc   : > { %v4128_v34 = vrot.slane %v4126_v60, 1  ;;  %4141 = vst [vmem:[#allocation1] ss:$4 sm:$0xff] %v4034_v22  ;;  %v4031_v60 = vld [vmem:[#allocation4 + $0x6] sm:$0x1]  ;;  %4572 = vmatpush.bf16.msra.mxu1 %v5320_v63 }
 0x4bd   : > { %4556 = vmatpush.bf16.msrb.mxu3 %v5315_v16  ;;  %v5371_v23 = vld [vmem:[%s6956_s8] ss:$0 sm:$0xff] }
 0x4be   : > { %v4129_v11 = vor.u32 %v4128_v34, %v4124_v59  ;;  %v4092_v34 = vshll.u32 %v6760_v12, 16 }
 0x4c0   : > { %4136 = vrot.lane.b32.xlu1 %v4129_v11, %s5446_s22  ;;  %v4100_v11 = vrot.slane %v4098_v5, 1 }
 0x4c1   : > { %4557 = vmatpush.bf16.msrb.mxu3 %v5314_v35 }
 0x4c2   : > { %v4109_v45 = vld.sshfl [vmem:[#allocation1 + $0x20] sm:$0xff pattern:$0x73625140]  ;;  %v4101_v51 = vor.u32 %v4100_v11, %v4096_v52 }
 0x4c3   : > { %v4112_v58 = vrot.slane %v4109_v45, 1  ;;  %4122 = vst [vmem:[#allocation1 + $0x20] ss:$4 sm:$0xff] %v4033_v14  ;;  %v4094_v45 = vrot.slane %v4092_v34, 1 }
 0x4c4   : > { %v4142_v22 = vld.sshfl [vmem:[#allocation1] sm:$0xff pattern:$0x73625140] }
 0x4c5   : > { %4115 = vrot.lane.b32.xlu0 %v4112_v58, %s5446_s22  ;;  %v5048_v44 = vrot.slane %v4142_v22, 5 }
 0x4c8   : > { %4057 = vrot.lane.b32.xlu1 %v4054_v25, %s5446_s22  ;;  %v4018_v25 = vld [vmem:[#allocation4 + $0x2] sm:$0x1] }
 0x4ca   : > { %v4123_v41 = vld.sshfl [vmem:[#allocation1 + $0x20] sm:$0xff pattern:$0x73625140] }
 0x4cb   : > { %v4132_v43 = vshll.u32 %v4123_v41, 16  ;;  %4146 = vst [vmem:[#allocation1 + $0x20] ss:$4 sm:$0xff] %v4035_v57  ;;  %v4130_v39 = vshrl.u32 %v4123_v41, 16 }
 0x4cd   : > { %4055 = vrot.lane.b32.xlu0 %v4048_v42, %s5446_s22  ;;  %v4134_v31 = vrot.slane %v4132_v43, 1  ;;  %v5313_v42 = vld [vmem:[%s6955_s7 + $0xc8] sm:$0xff]  ;;  %v4090_v43 = vshrl.u32 %v6760_v12, 16  ;;  %v5312_v12 = vld [vmem:[%s6955_s7 + $0xc0] sm:$0xff] }
 0x4ce   : > { %4558 = vmatpush.bf16.msrb.mxu3 %v5313_v42 }
 0x4cf   : > { %v4135_v7 = vor.u32 %v4134_v31, %v4130_v39  ;;  %v4095_v2 = vor.u32 %v4094_v45, %v4090_v43 }
 0x4d1   : > { %4138 = vrot.lane.b32.xlu2 %v4135_v7, %s5446_s22  ;;  %s4606_s22 = sshll.u32 %s4602_s24, 4  ;;  %s4607_s22 = int_to_ptr.hbm [resolvable:$true] %s4606_s22 }
 0x4d2   : > { %v4147_v6 = vld.sshfl [vmem:[#allocation1 + $0x20] sm:$0xff pattern:$0x73625140]  ;;  %4559 = vmatpush.bf16.msrb.mxu3 %v5312_v12  ;;  %s5394_s28 = sshra.s32 %s4607_s22, 4  ;;  %s5395_s28 = int_to_ptr.hbm [resolvable:$true] %s5394_s28 }
 0x4d3   : > { %v5049_v7 = vrot.slane %v4147_v6, 5  ;;  %s5396_s29 = scalar_lea.hbm %s5395_s28, 1  ;;  %p5401_p0 = scmp.lt.s32.totalorder %s5395_s28, %s6957_s9 }
 0x4d4   : > { %p5397_p11 = scmp.ne.s32.totalorder %s5395_s28, %s5396_s29  ;;  %p5402_p1 = scmp.lt.s32.totalorder %s5400_s16, %s5396_s29 }
 0x4d6   : > { %p5398_p12 = pnand %p5397_p11, %p5535_p5  ;;  %p5403_p2 = por %p5402_p1, %p5401_p0 }
 0x4d8   : > { %p5399_p13 = pneg %p5398_p12 }
 0x4da   : > { %p5404_p3 = pnand %p5403_p2, %p5399_p13 }
 0x50e   : > { %v4114_v56 = vpop.permute.xlu2 %4113 }
 0x50f   : > { %v4165_v27 = vsel %vm639_vm9, %v4095_v2, %v4114_v56 }
 0x510   : > { %v4182_v62 = vrot.slane %v4165_v27, 6 }
 0x514   : > { %v4080_v29 = vpop.permute.xlu0 %4079 }
 0x515   : > { %v4159_v26 = vsel %vm639_vm9, %v4068_v3, %v4080_v29 }
 0x516   : > { %v4181_v20 = vrot.slane %v4159_v26, 7 }
 0x525   : > { %v4082_v4 = vpop.permute.xlu1 %4081 }
 0x526   : > { %v4162_v8 = vsel %vm639_vm9, %v4069_v53, %v4082_v4 }
 0x527   : > { %v4185_v58 = vrot.slane %v4162_v8, 7 }
 0x52b   : > { %v4139_v59 = vpop.permute.xlu2 %4138 }
 0x52c   : > { %v4174_v30 = vsel %vm639_vm9, %v4031_v60, %v4139_v59 }
 0x52d   : > { %v4187_v28 = vrot.slane %v4174_v30, 5 }
 0x52f   : > { %v4205_v13 = vsel %vm1515_vm12, %v4187_v28, %v5049_v7 }
 0x532   : > { %v4137_v38 = vpop.permute.xlu1 %4136 }
 0x533   : > { %v4171_v33 = vsel %vm639_vm9, %v4030_v36, %v4137_v38 }
 0x534   : > { %v4183_v32 = vrot.slane %v4171_v33, 5 }
 0x536   : > { %v4196_v19 = vsel %vm1515_vm12, %v4183_v32, %v5048_v44 }
 0x537   : > { %v4116_v41 = vpop.permute.xlu0 %4115 }
 0x538   : > { %v4168_v39 = vsel %vm639_vm9, %v4101_v51, %v4116_v41 }
 0x539   : > { %v4186_v46 = vrot.slane %v4168_v39, 6 }
 0x53a   : > { %v4058_v14 = vpop.permute.xlu1 %4057 }
 0x53b   : > { %v4156_v57 = vsel %vm639_vm9, %v4018_v25, %v4058_v14 }
 0x53c   : > { %v4200_v31 = vsel %vm4189_vm4, %v4156_v57, %v4185_v58 }
 0x53d   : > { %v4202_v54 = vsel %vm3440_vm13, %v4200_v31, %v4186_v46 }
 0x53e   : > { %v4206_v18 = vsel %vm4197_vm8, %v4202_v54, %v4205_v13 }
 0x53f   : > { %4285 = vst [vmem:[#allocation1 + $0x1] ss:$9 sm:$0xff] %v4206_v18  ;;  %v4056_v50 = vpop.permute.xlu0 %4055 }
 0x540   : > { %v4153_v37 = vsel %vm639_vm9, %v4017_v24, %v4056_v50 }
 0x541   : > { %v4191_v0 = vsel %vm4189_vm4, %v4153_v37, %v4181_v20 }
 0x542   : > { %v4193_v9 = vsel %vm3440_vm13, %v4191_v0, %v4182_v62 }
 0x543   : > { %v4198_v55 = vsel %vm4197_vm8, %v4193_v9, %v4196_v19 }
 0x544   : > { %4283 = vst [vmem:[#allocation1] ss:$9 sm:$0xff] %v4198_v55 }
 0x54b   : > { %v4286_v15 = vld [vmem:[#allocation1] sm:$0xff]  ;;  %v4287_v40 = vld [vmem:[#allocation1 + $0x9] sm:$0xff]  ;;  %v4288_v4 = vld [vmem:[#allocation1 + $0x12] sm:$0xff] }
 0x54c   : > { %4521 = vmatmul.bf16.vlgmr.msra.gmra.mxu3 %v4286_v15  ;;  %4534 = vmatmul.bf16.vlgmr.msrb.gmra.mxu1 %v4287_v40  ;;  %v4289_v48 = vld [vmem:[#allocation1 + $0x1b] sm:$0xff]  ;;  %v4290_v49 = vld [vmem:[#allocation1 + $0x24] sm:$0xff] }
 0x54d   : > { %4547 = vmatmul.bf16.vlgmr.msra.gmra.mxu2 %v4288_v4 }
 0x55c   : > { %4560 = vmatmul.bf16.vlgmr.msrb.gmra.mxu3 %v4289_v48  ;;  %5194 = vmatmul.msk.bf16.vlgmr.msra.gmra.mxu1 %vm639_vm9, %v4290_v49  ;;  %vm6988_vm9 = vcmask 516096  }
 0x5c9   : > { %v4535_v1 = vpop.f32.mrf.mxu1 }
 0x5cf   : > { %v4522_v56 = vpop.f32.mrf.mxu3 }
 0x5d0   : > { %v4548_v21 = vpop.f32.mrf.mxu2  ;;  %v4523_v38 = vadd.f32 %v5371_v23, %v4522_v56 }
 0x5d1   : > { %v4537_v47 = vpop.f32.mrf.mxu1 }
 0x5d2   : > { %v4536_v16 = vadd.f32 %v4535_v1, %v4523_v38 }
 0x5d4   : > { %v4549_v10 = vadd.f32 %v4548_v21, %v4536_v16 }
 0x5d7   : > { %v4524_v61 = vpop.f32.mrf.mxu3 }
 0x5d8   : > { %v4550_v5 = vpop.f32.mrf.mxu2 }
 0x5d9   : > { %v4574_v29 = vpop.f32.mrf.mxu1 }
 0x5df   : > { %v4561_v53 = vpop.f32.mrf.mxu3 }
 0x5e0   : > { %v4562_v60 = vadd.f32 %v4561_v53, %v4549_v10 }
 0x5e1   : > { %v4576_v59 = vpop.f32.mrf.mxu1 }
 0x5e2   : > { %v4575_v34 = vadd.f32 %v4574_v29, %v4562_v60 }
 0x5e4   : > { %v4578_v11 = vmax.f32 %v4575_v34, 0.0 }
 0x5e6   : > { %v4580_v8 = vrot.slane %v4578_v11, 2  ;;  %v4582_v17 = vsel %vm800_vm10, %v4578_v11, -inf }
 0x5e7   : > { %v4563_v35 = vpop.f32.mrf.mxu3 }
 0x5e8   : > { %v4583_v30 = vsel %vm800_vm10, %v4580_v8, -inf }
 0x5e9   : > { %v4584_v52 = vmax.f32 %v4582_v17, %v4583_v30 }
 0x5eb   : > { %v4585_v14 = vsel %vm800_vm10, %v4584_v52, -inf }
 0x5ec   : > { %v4586_v25 = vrot.slane %v4585_v14, 4 }
 0x5ee   : > { %v4587_v45 = vmax.f32 %v4585_v14, %v4586_v25 }
 0x5f0   : > { %v4588_v58 = vrot.slane %v4587_v45, 2 }
 0x5f2   : > { %v4589_v6 = vmax.f32 %v4587_v45, %v4588_v58 }
 0x5f4   : > { %v4590_v51 = vrot.slane %v4589_v6, 1 }
 0x5f6   : > { %v4591_v57 = vmax.f32 %v4589_v6, %v4590_v51 }
 0x5f8   : > { %4592 = vst.msk [vmem:[%s324_s25] sm:$0x1] %vm6988_vm9, %v4591_v57 }
 0x5f9   : > { %5407 = shalt.err (!%p5404_p3)
}
 0x5fa   : > { %5326 = dma.vmem_to_hbm [thread:$0]  (%p5535_p5), %s4605_s26, 16, %s4607_s22, %s4594_s27  }
 0x5fb PF: > { %p5332_p4 = scmp.ge.s32.totalorder %s5442_s12, 2  ;;  %s4618_s17 = sand.u32 1, %s5430_s30  }
 0x5fc   : > { %s4619_s24 = scalar_lea.sflag [#allocation6], %s4618_s17 }
 0x5fd   : > { %p5329_p7 = pnand %p5332_p4, %p5539_p6 }
 0x5ff   : > { %p5330_p8 = pneg %p5329_p7 }
 0x601   : > { %5425 = dma.done.wait (%p5330_p8), %s4619_s24, 16  }
 0x602   : > { %5427 = vsyncadd (%p5330_p8), %s4619_s24, 4294967280  ;;  %p19_p9 = scmp.ge.s32.totalorder %s5522_s15, 4   ;;  %s6989_s30 = smov %s5434_s10 }
 0x603   : > { %s6990_s10 = smov %s5438_s11  ;;  %s6991_s11 = smov %s5533_s18 }
 0x604   : > { %s6992_s12 = smov %s5522_s15  ;;  %21 = sbr.rel (!%p19_p9) target bundleno = 3 (0x3), region = 118 }
 0x609   :  { %4624 = vsyncpa [#allocation6], 1 }
 0x60a   :  { %4626 = vsyncpa [#allocation6 + $0x1], 1 }

</bundles_post_ra>
